<compile_context>
chip_gen: v5e
topology: v5e:2x2
jax: 0.10.0
libtpu: 0.0.40
codegen_flags: <defaults>
</compile_context>

<pallas_src>
import functools
import math

import jax
import jax.numpy as jnp
from jax import lax
from jax.experimental import pallas as pl
from jax.experimental.pallas import tpu as pltpu

_LANE = 128
_MAX_TILE = 2048                 # sublane rows per grid step (pipelining tile)
_SPLIT = 2                       # 2-way pixel split so 2-TC chips (v7x) stay busy
_VMEM_LIMIT = 32 * 1024 * 1024   # fits v5e/v6e/v7x; worst-case working set ~12 MiB


def _round_up(x, m):
    return -(-x // m) * m


def _plan_tiles(n_pix, max_tile=_MAX_TILE, split=_SPLIT):
    """Pick (s_tile, s_pad): tile rows per grid step and padded total rows.

    s_tile is always a multiple of 32 (int8 sublane tiling) and s_pad a multiple
    of split * s_tile, so blocks never fall back to a single huge full-S block.
    """
    s_raw = -(-n_pix // _LANE)
    target = -(-s_raw // split)
    if target <= 128:
        s_tile = _round_up(max(target, 1), 32)
    else:
        s_tile = min(max_tile, _round_up(target, 128))
    s_pad = _round_up(s_raw, split * s_tile)
    return s_tile, s_pad


def _pick_chunk(s_tile):
    for c in (256, 128, 64, 32):
        if s_tile % c == 0:
            return c
    return s_tile


def _decode_od_block(pix_ref, log_io):
    """XOR-biased int8 pixel block -> list of 3 (S_TILE, 128) f32 OD planes."""
    od = []
    for ch in range(3):
        xi = pix_ref[0, ch].astype(jnp.float32)          # int8 -> f32
        x = jnp.maximum(xi + 128.0, 1.0)                  # undo 0x80 bias; zeros -> 1
        od.append(log_io - jnp.log(x))                    # OD = log(Io) - log(I)
    return od


# ----------------------------- Pallas kernels ------------------------------

def _gram_kernel(pix_ref, gram_ref, *, log_io, beta, chunk):
    # Accumulate the 10 unique masked Gram sums (per-lane partials) across the
    # pixel-tile ("arbitrary") grid axis; gram block stays resident in VMEM.
    @pl.when(pl.program_id(2) == 0)
    def _():
        gram_ref[...] = jnp.zeros_like(gram_ref)

    s_tile = pix_ref.shape[2]
    lane = pix_ref.shape[3]
    n_chunks = s_tile // chunk

    sums = [jnp.zeros((1, lane), jnp.float32) for _ in range(10)]
    for ci in range(n_chunks):                            # static unroll (small)
        od = []
        for chn in range(3):
            xi = pix_ref[0, chn, pl.ds(ci * chunk, chunk), :].astype(jnp.float32)
            od.append(log_io - jnp.log(jnp.maximum(xi + 128.0, 1.0)))
        keep = (jnp.minimum(jnp.minimum(od[0], od[1]), od[2]) >= beta
                ).astype(jnp.float32)
        m0, m1, m2 = od[0] * keep, od[1] * keep, od[2] * keep
        parts = (
            jnp.sum(m0 * od[0], axis=0, keepdims=True),
            jnp.sum(m0 * od[1], axis=0, keepdims=True),
            jnp.sum(m0 * od[2], axis=0, keepdims=True),
            jnp.sum(m1 * od[1], axis=0, keepdims=True),
            jnp.sum(m1 * od[2], axis=0, keepdims=True),
            jnp.sum(m2 * od[2], axis=0, keepdims=True),
            jnp.sum(m0, axis=0, keepdims=True),
            jnp.sum(m1, axis=0, keepdims=True),
            jnp.sum(m2, axis=0, keepdims=True),
            jnp.sum(keep, axis=0, keepdims=True),
        )
        sums = [s + p for s, p in zip(sums, parts)]

    pad = jnp.zeros((6, lane), jnp.float32)
    gram_ref[0, 0] = gram_ref[0, 0] + jnp.concatenate(sums + [pad], axis=0)


def _proj2_kernel(mat_ref, pix_ref, out_ref, *, log_io, beta, mask_fill):
    # out[r] = sum_k mat[r, k] * OD[k]  via scalar-broadcast FMAs (mat in SMEM).
    b = pl.program_id(0)
    od = _decode_od_block(pix_ref, log_io)
    p0 = mat_ref[b, 0] * od[0] + mat_ref[b, 1] * od[1] + mat_ref[b, 2] * od[2]
    p1 = mat_ref[b, 3] * od[0] + mat_ref[b, 4] * od[1] + mat_ref[b, 5] * od[2]
    if mask_fill is not None:
        keep = jnp.minimum(jnp.minimum(od[0], od[1]), od[2]) >= beta
        p0 = jnp.where(keep, p0, jnp.float32(mask_fill[0]))
        p1 = jnp.where(keep, p1, jnp.float32(mask_fill[1]))
    out_ref[0, 0] = p0
    out_ref[0, 1] = p1


def _finalize_kernel(params_ref, pix_ref, out_ref, *, log_io):
    # params[b] = flattened 3x3 M = HERef @ diag(maxCRef/maxC) @ pinv(HE);
    # Inorm = exp(log(Io) - M @ OD) clipped > 255 -> 254, emitted as bytes.
    b = pl.program_id(0)
    od = _decode_od_block(pix_ref, log_io)
    for ch in range(3):
        stain = (params_ref[b, 3 * ch] * od[0]
                 + params_ref[b, 3 * ch + 1] * od[1]
                 + params_ref[b, 3 * ch + 2] * od[2])
        inorm = jnp.exp(log_io - stain)
        inorm = jnp.where(inorm > 255.0, 254.0, inorm)
        # f32 -> i32 (truncate toward zero, matches numpy astype) -> i8 bit pattern
        out_ref[0, ch] = inorm.astype(jnp.int32).astype(jnp.int8)


# ----------------------------- pallas_call wrappers -------------------------

def _make_gram_in_map(nt2):
    def idx(bi, ci, ti):
        return (bi, 0, ci * nt2 + ti, 0)
    return idx


def _gram_call(pix, log_io, beta, s_tile, split):
    b, _, s_pad, lane = pix.shape
    nt = s_pad // s_tile
    nt2 = nt // split
    chunk = _pick_chunk(s_tile)
    n_el = b * s_pad * lane
    kern = functools.partial(_gram_kernel, log_io=log_io, beta=beta, chunk=chunk)
    return pl.pallas_call(
        kern,
        grid=(b, split, nt2),
        in_specs=[pl.BlockSpec((1, 3, s_tile, lane), _make_gram_in_map(nt2))],
        out_specs=pl.BlockSpec((1, 1, 16, lane), lambda bi, ci, ti: (bi, ci, 0, 0)),
        out_shape=jax.ShapeDtypeStruct((b, split, 16, lane), jnp.float32),
        compiler_params=pltpu.CompilerParams(
            dimension_semantics=("parallel", "parallel", "arbitrary"),
            vmem_limit_bytes=_VMEM_LIMIT),
        cost_estimate=pl.CostEstimate(
            flops=int(30 * n_el), transcendentals=int(3 * n_el),
            bytes_accessed=int(3 * n_el + b * split * 16 * lane * 4)),
    )(pix)


def _proj_call(mat_flat, pix, log_io, beta, s_tile, mask_fill):
    b, _, s_pad, lane = pix.shape
    nt = s_pad // s_tile
    n_el = b * s_pad * lane
    kern = functools.partial(_proj2_kernel, log_io=log_io, beta=beta,
                             mask_fill=mask_fill)
    gs = pltpu.PrefetchScalarGridSpec(
        num_scalar_prefetch=1,
        grid=(b, nt),
        in_specs=[pl.BlockSpec((1, 3, s_tile, lane), lambda bi, ti, m: (bi, 0, ti, 0))],
        out_specs=pl.BlockSpec((1, 2, s_tile, lane), lambda bi, ti, m: (bi, 0, ti, 0)),
    )
    return pl.pallas_call(
        kern,
        grid_spec=gs,
        out_shape=jax.ShapeDtypeStruct((b, 2, s_pad, lane), jnp.float32),
        compiler_params=pltpu.CompilerParams(
            dimension_semantics=("parallel", "parallel"),
            vmem_limit_bytes=_VMEM_LIMIT),
        cost_estimate=pl.CostEstimate(
            flops=int(20 * n_el), transcendentals=int(3 * n_el),
            bytes_accessed=int(11 * n_el)),
    )(mat_flat, pix)


def _finalize_call(params, pix, log_io, s_tile):
    b, _, s_pad, lane = pix.shape
    nt = s_pad // s_tile
    n_el = b * s_pad * lane
    kern = functools.partial(_finalize_kernel, log_io=log_io)
    gs = pltpu.PrefetchScalarGridSpec(
        num_scalar_prefetch=1,
        grid=(b, nt),
        in_specs=[pl.BlockSpec((1, 3, s_tile, lane), lambda bi, ti, p: (bi, 0, ti, 0))],
        out_specs=pl.BlockSpec((1, 3, s_tile, lane), lambda bi, ti, p: (bi, 0, ti, 0)),
    )
    return pl.pallas_call(
        kern,
        grid_spec=gs,
        out_shape=jax.ShapeDtypeStruct((b, 3, s_pad, lane), jnp.int8),
        compiler_params=pltpu.CompilerParams(
            dimension_semantics=("parallel", "parallel"),
            vmem_limit_bytes=_VMEM_LIMIT),
        cost_estimate=pl.CostEstimate(
            flops=int(22 * n_el), transcendentals=int(6 * n_el),
            bytes_accessed=int(6 * n_el)),
    )(params, pix)


# ----------------------------- percentiles (glue) ---------------------------

def _pct_from_sorted(srt, n, q):
    # percentile_numba semantics on a pre-sorted array restricted to first n values
    rank = q / 100.0 * (n - 1.0)
    low = jnp.floor(rank).astype(jnp.int32)
    high = jnp.ceil(rank).astype(jnp.int32)
    wgt = rank - jnp.floor(rank)
    return srt[low] * (1.0 - wgt) + srt[high] * wgt


# ----------------------------- forward --------------------------------------

@functools.partial(jax.jit, static_argnames=("alpha", "beta", "io", "heref"))
def _macenko_forward(x, maxcref, *, alpha, beta, io, heref):
    b, h, w, c = x.shape
    assert c == 3
    n_pix = h * w
    log_io = float(math.log(io))
    s_tile, s_pad = _plan_tiles(n_pix)
    n_pad_pix = s_pad * _LANE

    # --- host-side repack: pad pixel axis, 0x80-bias, 1 byte/px channel-major ---
    flat = x.astype(jnp.uint8).reshape(b, n_pix, 3)
    if n_pad_pix != n_pix:
        # pad value 255 -> OD < 0 < beta, so padded pixels never pass the beta
        # filter; they are cropped out before the percentile sorts.
        flat = jnp.pad(flat, ((0, 0), (0, n_pad_pix - n_pix), (0, 0)),
                       constant_values=255)
    flat = jnp.bitwise_xor(flat, jnp.uint8(0x80))     # in-kernel decode = max(x+128, 1)
    x_i8 = lax.bitcast_convert_type(flat, jnp.int8)
    # TODO(synk): uint8 NHWC->channel-major relayout stays in XLA; a dedicated Pallas
    # repack kernel would avoid the slow sub-byte transpose path if it shows up.
    pix = jnp.transpose(x_i8, (0, 2, 1)).reshape(b, 3, s_pad, _LANE)

    # ---- kernel 1: masked Gram sums -> covariance of beta-filtered OD pixels ----
    gram = _gram_call(pix, log_io, beta, s_tile, _SPLIT)          # (b, 2, 16, 128)
    g = jnp.sum(gram, axis=(1, 3))                                # (b, 16)
    n_sel = jnp.maximum(g[:, 9], 2.0)   # guard: <2 selected pixels would NaN (ref skips tile)
    svec = g[:, 6:9]
    m2 = jnp.stack([jnp.stack([g[:, 0], g[:, 1], g[:, 2]], axis=-1),
                    jnp.stack([g[:, 1], g[:, 3], g[:, 4]], axis=-1),
                    jnp.stack([g[:, 2], g[:, 4], g[:, 5]], axis=-1)], axis=1)
    mean = svec / n_sel[:, None]
    cov = (m2 - n_sel[:, None, None] * mean[:, :, None] * mean[:, None, :]) / (
        n_sel[:, None, None] - 1.0)

    # TODO(synk): 3x3 symmetric eigendecomposition has no Pallas equivalent; jnp.linalg.eigh
    _, eigvecs = jnp.linalg.eigh(cov)                             # ascending eigenvalues
    e = eigvecs[:, :, 1:3]                                        # (b, 3, 2)
    et_flat = jnp.transpose(e, (0, 2, 1)).reshape(b, 6).astype(jnp.float32)

    # ---- kernel 2 (1st use): E^T @ OD with beta mask; masked pixels -> angle +pi ----
    proj = _proj_call(et_flat, pix, log_io, beta, s_tile, mask_fill=(-1.0, 0.0))
    proj = proj.reshape(b, 2, n_pad_pix)[:, :, :n_pix]
    # TODO(synk): arctan2 + exact sort-based percentiles stay in XLA (no Mosaic sort/atan2);
    # an in-kernel histogram percentile would remove these sorts but change numerics.
    phi = jnp.arctan2(proj[:, 1], proj[:, 0])
    phi_sorted = jnp.sort(phi, axis=-1)   # masked pixels == +pi sort to the tail; one sort
    min_phi = jax.vmap(_pct_from_sorted, (0, 0, None))(phi_sorted, n_sel, float(alpha))
    max_phi = jax.vmap(_pct_from_sorted, (0, 0, None))(phi_sorted, n_sel,
                                                       100.0 - float(alpha))

    v_min = jnp.einsum("bij,bj->bi", e,
                       jnp.stack([jnp.cos(min_phi), jnp.sin(min_phi)], axis=-1))
    v_max = jnp.einsum("bij,bj->bi", e,
                       jnp.stack([jnp.cos(max_phi), jnp.sin(max_phi)], axis=-1))
    cond = (v_min[:, 0] > v_max[:, 0])[:, None, None]
    he = jnp.where(cond,
                   jnp.stack([v_min, v_max], axis=-1),
                   jnp.stack([v_max, v_min], axis=-1))            # (b, 3, 2)

    # TODO(synk): pseudo-inverse (SVD of a 3x2) stays in plain JAX
    he_pinv = jax.vmap(jnp.linalg.pinv)(he).astype(jnp.float32)   # (b, 2, 3)
    pinv_flat = he_pinv.reshape(b, 6)

    # ---- kernel 2 (2nd use): C = pinv(HE) @ OD over all pixels ----
    c_all = _proj_call(pinv_flat, pix, log_io, beta, s_tile, mask_fill=None)
    c_real = c_all.reshape(b, 2, n_pad_pix)[:, :, :n_pix]
    c_sorted = jnp.sort(c_real, axis=-1)
    rank = 99.0 / 100.0 * (n_pix - 1)
    lo, hi = int(math.floor(rank)), int(math.ceil(rank))
    wgt = rank - lo
    max_c = c_sorted[..., lo] * (1.0 - wgt) + c_sorted[..., hi] * wgt     # (b, 2)

    # fold C2 = (maxCRef/maxC) * C and stain = HERef @ C2 into one per-batch 3x3
    scale = (maxcref[None, :] / max_c).astype(jnp.float32)
    heref_arr = jnp.asarray(heref, jnp.float32)                   # (3, 2)
    m = jnp.einsum("ir,br,brk->bik", heref_arr, scale, he_pinv)   # (b, 3, 3)
    params = m.reshape(b, 9).astype(jnp.float32)

    # ---- kernel 3: Inorm = exp(log Io - M @ OD), clip, emitted as bytes ----
    out_i8 = _finalize_call(params, pix, log_io, s_tile)          # (b, 3, S_pad, 128) int8
    out_u8 = lax.bitcast_convert_type(out_i8, jnp.uint8).reshape(b, 3, n_pad_pix)
    out_u8 = out_u8[:, :, :n_pix]
    # mirrors the reference's np.reshape(Inorm.T, (w, h, 3)) quirk (h/w swap when h != w)
    return jnp.transpose(out_u8, (0, 2, 1)).reshape(b, w, h, 3)


# ----------------------------- module --------------------------------------

class MacenkoNormalizerPallas:
    def __init__(self, alpha=1, beta=0.15, Io=240):
        self.alpha = float(alpha)
        self.beta = float(beta)
        self.Io = float(Io)
        # deterministic parameters from the reference module
        self.HERef = ((0.5626, 0.2159), (0.7201, 0.8012), (0.4062, 0.5581))
        self.maxCRef = jnp.array([1.9705, 1.0308], dtype=jnp.float32)

    def __call__(self, x):
        if x.ndim == 3:
            x = x[None]
        return _macenko_forward(x, self.maxCRef, alpha=self.alpha, beta=self.beta,
                                io=self.Io, heref=self.HERef)


# ----------------------------- demo -----------------------------------------

if __name__ == "__main__":
    key = jax.random.PRNGKey(0)
    # small H&E-like tiles: values away from 0 / 255 so the stain fit is well-posed
    x = jax.random.randint(key, (2, 16, 16, 3), 30, 225, dtype=jnp.int32).astype(jnp.uint8)

    normalizer = MacenkoNormalizerPallas(alpha=1, beta=0.15, Io=240)
    out = jax.block_until_ready(normalizer(x))

    assert out.shape == (2, 16, 16, 3), out.shape
    assert out.dtype == jnp.uint8, out.dtype
    print("KERNEL_OK")
</pallas_src>

<mosaic_0001>
module attributes {stable_mosaic.version = 11 : i64} {
  func.func @_gram_kernel(%arg0: i32, %arg1: i32, %arg2: i32, %arg3: memref<1x3x32x128xi8, #tpu.memory_space<vmem>>, %arg4: memref<1x1x16x128xf32, #tpu.memory_space<vmem>>) attributes {dimension_semantics = [#tpu.dimension_semantics<parallel>, #tpu.dimension_semantics<parallel>, #tpu.dimension_semantics<arbitrary>], iteration_bounds = array<i64: 2, 2, 1>, scalar_prefetch = 0 : i64, scratch_operands = 0 : i64, tpu.core_type = #tpu.core_type<tc>, window_params = [{transform_indices = @transform_0, window_bounds = array<i64: 1, 3, 32, 128>}, {transform_indices = @transform_1, window_bounds = array<i64: 1, 1, 16, 128>}]} {
    %c0_i32 = arith.constant 0 : i32
    %0 = arith.cmpi eq, %arg2, %c0_i32 : i32
    %1 = arith.extui %0 : i1 to i32
    %c0_i32_0 = arith.constant 0 : i32
    %2 = arith.cmpi ne, %1, %c0_i32_0 : i32
    scf.if %2 {
      %cst_48 = arith.constant 0.000000e+00 : f32
      %96 = vector.broadcast %cst_48 : f32 to vector<1x1x16x128xf32>
      %c0_49 = arith.constant 0 : index
      %c0_50 = arith.constant 0 : index
      %c0_51 = arith.constant 0 : index
      %c0_52 = arith.constant 0 : index
      %97 = vector.load %arg4[%c0_49, %c0_50, %c0_51, %c0_52] : memref<1x1x16x128xf32, #tpu.memory_space<vmem>>, vector<1x1x16x128xf32>
      tpu.vector_store %arg4[%c0_49, %c0_50, %c0_51, %c0_52], %96 {strides = array<i32>} : memref<1x1x16x128xf32, #tpu.memory_space<vmem>>, vector<1x1x16x128xf32>,
    } else {
    }
    %cst = arith.constant 0.000000e+00 : f32
    %3 = vector.broadcast %cst : f32 to vector<1x128xf32>
    %cst_1 = arith.constant 0.000000e+00 : f32
    %4 = vector.broadcast %cst_1 : f32 to vector<1x128xf32>
    %cst_2 = arith.constant 0.000000e+00 : f32
    %5 = vector.broadcast %cst_2 : f32 to vector<1x128xf32>
    %cst_3 = arith.constant 0.000000e+00 : f32
    %6 = vector.broadcast %cst_3 : f32 to vector<1x128xf32>
    %cst_4 = arith.constant 0.000000e+00 : f32
    %7 = vector.broadcast %cst_4 : f32 to vector<1x128xf32>
    %cst_5 = arith.constant 0.000000e+00 : f32
    %8 = vector.broadcast %cst_5 : f32 to vector<1x128xf32>
    %cst_6 = arith.constant 0.000000e+00 : f32
    %9 = vector.broadcast %cst_6 : f32 to vector<1x128xf32>
    %cst_7 = arith.constant 0.000000e+00 : f32
    %10 = vector.broadcast %cst_7 : f32 to vector<1x128xf32>
    %cst_8 = arith.constant 0.000000e+00 : f32
    %11 = vector.broadcast %cst_8 : f32 to vector<1x128xf32>
    %cst_9 = arith.constant 0.000000e+00 : f32
    %12 = vector.broadcast %cst_9 : f32 to vector<1x128xf32>
    %c0 = arith.constant 0 : index
    %c0_10 = arith.constant 0 : index
    %c0_11 = arith.constant 0 : index
    %c0_12 = arith.constant 0 : index
    %13 = vector.load %arg3[%c0, %c0_10, %c0_11, %c0_12] : memref<1x3x32x128xi8, #tpu.memory_space<vmem>>, vector<1x1x32x128xi8>
    %14 = vector.shape_cast %13 : vector<1x1x32x128xi8> to vector<32x128xi8>
    %15 = arith.sitofp %14 : vector<32x128xi8> to vector<32x128xf32>
    %cst_13 = arith.constant 1.280000e+02 : f32
    %16 = vector.broadcast %cst_13 : f32 to vector<32x128xf32>
    %17 = arith.addf %15, %16 : vector<32x128xf32>
    %cst_14 = arith.constant 1.000000e+00 : f32
    %18 = vector.broadcast %cst_14 : f32 to vector<32x128xf32>
    %19 = arith.maximumf %17, %18 : vector<32x128xf32>
    %20 = math.log %19 : vector<32x128xf32>
    %cst_15 = arith.constant 5.48063898 : f32
    %21 = vector.broadcast %cst_15 : f32 to vector<32x128xf32>
    %22 = arith.subf %21, %20 : vector<32x128xf32>
    %c0_16 = arith.constant 0 : index
    %c1 = arith.constant 1 : index
    %c0_17 = arith.constant 0 : index
    %c0_18 = arith.constant 0 : index
    %23 = vector.load %arg3[%c0_16, %c1, %c0_17, %c0_18] : memref<1x3x32x128xi8, #tpu.memory_space<vmem>>, vector<1x1x32x128xi8>
    %24 = vector.shape_cast %23 : vector<1x1x32x128xi8> to vector<32x128xi8>
    %25 = arith.sitofp %24 : vector<32x128xi8> to vector<32x128xf32>
    %cst_19 = arith.constant 1.280000e+02 : f32
    %26 = vector.broadcast %cst_19 : f32 to vector<32x128xf32>
    %27 = arith.addf %25, %26 : vector<32x128xf32>
    %cst_20 = arith.constant 1.000000e+00 : f32
    %28 = vector.broadcast %cst_20 : f32 to vector<32x128xf32>
    %29 = arith.maximumf %27, %28 : vector<32x128xf32>
    %30 = math.log %29 : vector<32x128xf32>
    %cst_21 = arith.constant 5.48063898 : f32
    %31 = vector.broadcast %cst_21 : f32 to vector<32x128xf32>
    %32 = arith.subf %31, %30 : vector<32x128xf32>
    %c0_22 = arith.constant 0 : index
    %c2 = arith.constant 2 : index
    %c0_23 = arith.constant 0 : index
    %c0_24 = arith.constant 0 : index
    %33 = vector.load %arg3[%c0_22, %c2, %c0_23, %c0_24] : memref<1x3x32x128xi8, #tpu.memory_space<vmem>>, vector<1x1x32x128xi8>
    %34 = vector.shape_cast %33 : vector<1x1x32x128xi8> to vector<32x128xi8>
    %35 = arith.sitofp %34 : vector<32x128xi8> to vector<32x128xf32>
    %cst_25 = arith.constant 1.280000e+02 : f32
    %36 = vector.broadcast %cst_25 : f32 to vector<32x128xf32>
    %37 = arith.addf %35, %36 : vector<32x128xf32>
    %cst_26 = arith.constant 1.000000e+00 : f32
    %38 = vector.broadcast %cst_26 : f32 to vector<32x128xf32>
    %39 = arith.maximumf %37, %38 : vector<32x128xf32>
    %40 = math.log %39 : vector<32x128xf32>
    %cst_27 = arith.constant 5.48063898 : f32
    %41 = vector.broadcast %cst_27 : f32 to vector<32x128xf32>
    %42 = arith.subf %41, %40 : vector<32x128xf32>
    %43 = arith.minimumf %22, %32 : vector<32x128xf32>
    %44 = arith.minimumf %43, %42 : vector<32x128xf32>
    %cst_28 = arith.constant 1.500000e-01 : f32
    %45 = vector.broadcast %cst_28 : f32 to vector<32x128xf32>
    %46 = arith.cmpf oge, %44, %45 : vector<32x128xf32>
    %47 = arith.extui %46 : vector<32x128xi1> to vector<32x128xi32>
    %48 = arith.sitofp %47 : vector<32x128xi32> to vector<32x128xf32>
    %49 = arith.mulf %22, %48 : vector<32x128xf32>
    %50 = arith.mulf %32, %48 : vector<32x128xf32>
    %51 = arith.mulf %42, %48 : vector<32x128xf32>
    %52 = arith.mulf %49, %22 : vector<32x128xf32>
    %cst_29 = arith.constant dense<0.000000e+00> : vector<128xf32>
    %53 = vector.multi_reduction <add>, %52, %cst_29 [0] : vector<32x128xf32> to vector<128xf32>
    %54 = vector.shape_cast %53 : vector<128xf32> to vector<1x128xf32>
    %55 = arith.mulf %49, %32 : vector<32x128xf32>
    %cst_30 = arith.constant dense<0.000000e+00> : vector<128xf32>
    %56 = vector.multi_reduction <add>, %55, %cst_30 [0] : vector<32x128xf32> to vector<128xf32>
    %57 = vector.shape_cast %56 : vector<128xf32> to vector<1x128xf32>
    %58 = arith.mulf %49, %42 : vector<32x128xf32>
    %cst_31 = arith.constant dense<0.000000e+00> : vector<128xf32>
    %59 = vector.multi_reduction <add>, %58, %cst_31 [0] : vector<32x128xf32> to vector<128xf32>
    %60 = vector.shape_cast %59 : vector<128xf32> to vector<1x128xf32>
    %61 = arith.mulf %50, %32 : vector<32x128xf32>
    %cst_32 = arith.constant dense<0.000000e+00> : vector<128xf32>
    %62 = vector.multi_reduction <add>, %61, %cst_32 [0] : vector<32x128xf32> to vector<128xf32>
    %63 = vector.shape_cast %62 : vector<128xf32> to vector<1x128xf32>
    %64 = arith.mulf %50, %42 : vector<32x128xf32>
    %cst_33 = arith.constant dense<0.000000e+00> : vector<128xf32>
    %65 = vector.multi_reduction <add>, %64, %cst_33 [0] : vector<32x128xf32> to vector<128xf32>
    %66 = vector.shape_cast %65 : vector<128xf32> to vector<1x128xf32>
    %67 = arith.mulf %51, %42 : vector<32x128xf32>
    %cst_34 = arith.constant dense<0.000000e+00> : vector<128xf32>
    %68 = vector.multi_reduction <add>, %67, %cst_34 [0] : vector<32x128xf32> to vector<128xf32>
    %69 = vector.shape_cast %68 : vector<128xf32> to vector<1x128xf32>
    %cst_35 = arith.constant dense<0.000000e+00> : vector<128xf32>
    %70 = vector.multi_reduction <add>, %49, %cst_35 [0] : vector<32x128xf32> to vector<128xf32>
    %71 = vector.shape_cast %70 : vector<128xf32> to vector<1x128xf32>
    %cst_36 = arith.constant dense<0.000000e+00> : vector<128xf32>
    %72 = vector.multi_reduction <add>, %50, %cst_36 [0] : vector<32x128xf32> to vector<128xf32>
    %73 = vector.shape_cast %72 : vector<128xf32> to vector<1x128xf32>
    %cst_37 = arith.constant dense<0.000000e+00> : vector<128xf32>
    %74 = vector.multi_reduction <add>, %51, %cst_37 [0] : vector<32x128xf32> to vector<128xf32>
    %75 = vector.shape_cast %74 : vector<128xf32> to vector<1x128xf32>
    %cst_38 = arith.constant dense<0.000000e+00> : vector<128xf32>
    %76 = vector.multi_reduction <add>, %48, %cst_38 [0] : vector<32x128xf32> to vector<128xf32>
    %77 = vector.shape_cast %76 : vector<128xf32> to vector<1x128xf32>
    %78 = arith.addf %3, %54 : vector<1x128xf32>
    %79 = arith.addf %4, %57 : vector<1x128xf32>
    %80 = arith.addf %5, %60 : vector<1x128xf32>
    %81 = arith.addf %6, %63 : vector<1x128xf32>
    %82 = arith.addf %7, %66 : vector<1x128xf32>
    %83 = arith.addf %8, %69 : vector<1x128xf32>
    %84 = arith.addf %9, %71 : vector<1x128xf32>
    %85 = arith.addf %10, %73 : vector<1x128xf32>
    %86 = arith.addf %11, %75 : vector<1x128xf32>
    %87 = arith.addf %12, %77 : vector<1x128xf32>
    %cst_39 = arith.constant 0.000000e+00 : f32
    %88 = vector.broadcast %cst_39 : f32 to vector<6x128xf32>
    %c0_40 = arith.constant 0 : index
    %c0_41 = arith.constant 0 : index
    %c0_42 = arith.constant 0 : index
    %c0_43 = arith.constant 0 : index
    %89 = vector.load %arg4[%c0_40, %c0_41, %c0_42, %c0_43] : memref<1x1x16x128xf32, #tpu.memory_space<vmem>>, vector<1x1x16x128xf32>
    %90 = vector.shape_cast %89 : vector<1x1x16x128xf32> to vector<16x128xf32>
    %91 = tpu.concatenate %78, %79, %80, %81, %82, %83, %84, %85, %86, %87, %88 in 0 : vector<1x128xf32>, vector<1x128xf32>, vector<1x128xf32>, vector<1x128xf32>, vector<1x128xf32>, vector<1x128xf32>, vector<1x128xf32>, vector<1x128xf32>, vector<1x128xf32>, vector<1x128xf32>, vector<6x128xf32> -> vector<16x128xf32>
    %92 = arith.addf %90, %91 : vector<16x128xf32>
    %c0_44 = arith.constant 0 : index
    %c0_45 = arith.constant 0 : index
    %c0_46 = arith.constant 0 : index
    %c0_47 = arith.constant 0 : index
    %93 = vector.load %arg4[%c0_44, %c0_45, %c0_46, %c0_47] : memref<1x1x16x128xf32, #tpu.memory_space<vmem>>, vector<1x1x16x128xf32>
    %94 = vector.shape_cast %93 : vector<1x1x16x128xf32> to vector<16x128xf32>
    %95 = vector.shape_cast %92 : vector<16x128xf32> to vector<1x1x16x128xf32>
    tpu.vector_store %arg4[%c0_44, %c0_45, %c0_46, %c0_47], %95 {strides = array<i32>} : memref<1x1x16x128xf32, #tpu.memory_space<vmem>>, vector<1x1x16x128xf32>,
    return
  }
  func.func @transform_0(%arg0: i32, %arg1: i32, %arg2: i32) -> (i32, i32, i32, i32) {
    %c1_i32 = arith.constant 1 : i32
    %0 = arith.muli %arg1, %c1_i32 : i32
    %1 = arith.addi %0, %arg2 : i32
    %c0_i32 = arith.constant 0 : i32
    %c0_i32_0 = arith.constant 0 : i32
    %c0_i32_1 = arith.constant 0 : i32
    return %arg0, %c0_i32, %1, %c0_i32_0 : i32, i32, i32, i32
  }
  func.func @transform_1(%arg0: i32, %arg1: i32, %arg2: i32) -> (i32, i32, i32, i32) {
    %c0_i32 = arith.constant 0 : i32
    %c0_i32_0 = arith.constant 0 : i32
    %c0_i32_1 = arith.constant 0 : i32
    return %arg0, %arg1, %c0_i32, %c0_i32_0 : i32, i32, i32, i32
  }
}

module attributes {stable_mosaic.version = 11 : i64} {
  func.func @_proj2_kernel(%arg0: i32, %arg1: i32, %arg2: memref<2x6xf32, #tpu.memory_space<smem>>, %arg3: memref<1x3x32x128xi8, #tpu.memory_space<vmem>>, %arg4: memref<1x2x32x128xf32, #tpu.memory_space<vmem>>) attributes {dimension_semantics = [#tpu.dimension_semantics<parallel>, #tpu.dimension_semantics<parallel>], iteration_bounds = array<i64: 2, 2>, scalar_prefetch = 1 : i64, scratch_operands = 0 : i64, tpu.core_type = #tpu.core_type<tc>, window_params = [{transform_indices = @transform_0, window_bounds = array<i64: 1, 3, 32, 128>}, {transform_indices = @transform_1, window_bounds = array<i64: 1, 2, 32, 128>}]} {
    %c0 = arith.constant 0 : index
    %c0_0 = arith.constant 0 : index
    %c0_1 = arith.constant 0 : index
    %c0_2 = arith.constant 0 : index
    %0 = vector.load %arg3[%c0, %c0_0, %c0_1, %c0_2] : memref<1x3x32x128xi8, #tpu.memory_space<vmem>>, vector<1x1x32x128xi8>
    %1 = vector.shape_cast %0 : vector<1x1x32x128xi8> to vector<32x128xi8>
    %2 = arith.sitofp %1 : vector<32x128xi8> to vector<32x128xf32>
    %cst = arith.constant 1.280000e+02 : f32
    %3 = vector.broadcast %cst : f32 to vector<32x128xf32>
    %4 = arith.addf %2, %3 : vector<32x128xf32>
    %cst_3 = arith.constant 1.000000e+00 : f32
    %5 = vector.broadcast %cst_3 : f32 to vector<32x128xf32>
    %6 = arith.maximumf %4, %5 : vector<32x128xf32>
    %7 = math.log %6 : vector<32x128xf32>
    %cst_4 = arith.constant 5.48063898 : f32
    %8 = vector.broadcast %cst_4 : f32 to vector<32x128xf32>
    %9 = arith.subf %8, %7 : vector<32x128xf32>
    %c0_5 = arith.constant 0 : index
    %c1 = arith.constant 1 : index
    %c0_6 = arith.constant 0 : index
    %c0_7 = arith.constant 0 : index
    %10 = vector.load %arg3[%c0_5, %c1, %c0_6, %c0_7] : memref<1x3x32x128xi8, #tpu.memory_space<vmem>>, vector<1x1x32x128xi8>
    %11 = vector.shape_cast %10 : vector<1x1x32x128xi8> to vector<32x128xi8>
    %12 = arith.sitofp %11 : vector<32x128xi8> to vector<32x128xf32>
    %cst_8 = arith.constant 1.280000e+02 : f32
    %13 = vector.broadcast %cst_8 : f32 to vector<32x128xf32>
    %14 = arith.addf %12, %13 : vector<32x128xf32>
    %cst_9 = arith.constant 1.000000e+00 : f32
    %15 = vector.broadcast %cst_9 : f32 to vector<32x128xf32>
    %16 = arith.maximumf %14, %15 : vector<32x128xf32>
    %17 = math.log %16 : vector<32x128xf32>
    %cst_10 = arith.constant 5.48063898 : f32
    %18 = vector.broadcast %cst_10 : f32 to vector<32x128xf32>
    %19 = arith.subf %18, %17 : vector<32x128xf32>
    %c0_11 = arith.constant 0 : index
    %c2 = arith.constant 2 : index
    %c0_12 = arith.constant 0 : index
    %c0_13 = arith.constant 0 : index
    %20 = vector.load %arg3[%c0_11, %c2, %c0_12, %c0_13] : memref<1x3x32x128xi8, #tpu.memory_space<vmem>>, vector<1x1x32x128xi8>
    %21 = vector.shape_cast %20 : vector<1x1x32x128xi8> to vector<32x128xi8>
    %22 = arith.sitofp %21 : vector<32x128xi8> to vector<32x128xf32>
    %cst_14 = arith.constant 1.280000e+02 : f32
    %23 = vector.broadcast %cst_14 : f32 to vector<32x128xf32>
    %24 = arith.addf %22, %23 : vector<32x128xf32>
    %cst_15 = arith.constant 1.000000e+00 : f32
    %25 = vector.broadcast %cst_15 : f32 to vector<32x128xf32>
    %26 = arith.maximumf %24, %25 : vector<32x128xf32>
    %27 = math.log %26 : vector<32x128xf32>
    %cst_16 = arith.constant 5.48063898 : f32
    %28 = vector.broadcast %cst_16 : f32 to vector<32x128xf32>
    %29 = arith.subf %28, %27 : vector<32x128xf32>
    %30 = arith.index_cast %arg0 : i32 to index
    %c0_17 = arith.constant 0 : index
    %31 = memref.load %arg2[%30, %c0_17] : memref<2x6xf32, #tpu.memory_space<smem>>
    %32 = vector.broadcast %31 : f32 to vector<32x128xf32>
    %33 = arith.mulf %32, %9 : vector<32x128xf32>
    %34 = arith.index_cast %arg0 : i32 to index
    %c1_18 = arith.constant 1 : index
    %35 = memref.load %arg2[%34, %c1_18] : memref<2x6xf32, #tpu.memory_space<smem>>
    %36 = vector.broadcast %35 : f32 to vector<32x128xf32>
    %37 = arith.mulf %36, %19 : vector<32x128xf32>
    %38 = arith.addf %33, %37 : vector<32x128xf32>
    %39 = arith.index_cast %arg0 : i32 to index
    %c2_19 = arith.constant 2 : index
    %40 = memref.load %arg2[%39, %c2_19] : memref<2x6xf32, #tpu.memory_space<smem>>
    %41 = vector.broadcast %40 : f32 to vector<32x128xf32>
    %42 = arith.mulf %41, %29 : vector<32x128xf32>
    %43 = arith.addf %38, %42 : vector<32x128xf32>
    %44 = arith.index_cast %arg0 : i32 to index
    %c3 = arith.constant 3 : index
    %45 = memref.load %arg2[%44, %c3] : memref<2x6xf32, #tpu.memory_space<smem>>
    %46 = vector.broadcast %45 : f32 to vector<32x128xf32>
    %47 = arith.mulf %46, %9 : vector<32x128xf32>
    %48 = arith.index_cast %arg0 : i32 to index
    %c4 = arith.constant 4 : index
    %49 = memref.load %arg2[%48, %c4] : memref<2x6xf32, #tpu.memory_space<smem>>
    %50 = vector.broadcast %49 : f32 to vector<32x128xf32>
    %51 = arith.mulf %50, %19 : vector<32x128xf32>
    %52 = arith.addf %47, %51 : vector<32x128xf32>
    %53 = arith.index_cast %arg0 : i32 to index
    %c5 = arith.constant 5 : index
    %54 = memref.load %arg2[%53, %c5] : memref<2x6xf32, #tpu.memory_space<smem>>
    %55 = vector.broadcast %54 : f32 to vector<32x128xf32>
    %56 = arith.mulf %55, %29 : vector<32x128xf32>
    %57 = arith.addf %52, %56 : vector<32x128xf32>
    %58 = arith.minimumf %9, %19 : vector<32x128xf32>
    %59 = arith.minimumf %58, %29 : vector<32x128xf32>
    %cst_20 = arith.constant 1.500000e-01 : f32
    %60 = vector.broadcast %cst_20 : f32 to vector<32x128xf32>
    %61 = arith.cmpf oge, %59, %60 : vector<32x128xf32>
    %cst_21 = arith.constant -1.000000e+00 : f32
    %62 = vector.broadcast %cst_21 : f32 to vector<32x128xf32>
    %63 = arith.select %61, %43, %62 : vector<32x128xi1>, vector<32x128xf32>
    %cst_22 = arith.constant 0.000000e+00 : f32
    %64 = vector.broadcast %cst_22 : f32 to vector<32x128xf32>
    %65 = arith.select %61, %57, %64 : vector<32x128xi1>, vector<32x128xf32>
    %c0_23 = arith.constant 0 : index
    %c0_24 = arith.constant 0 : index
    %c0_25 = arith.constant 0 : index
    %c0_26 = arith.constant 0 : index
    %66 = vector.load %arg4[%c0_23, %c0_24, %c0_25, %c0_26] : memref<1x2x32x128xf32, #tpu.memory_space<vmem>>, vector<1x1x32x128xf32>
    %67 = vector.shape_cast %66 : vector<1x1x32x128xf32> to vector<32x128xf32>
    %68 = vector.shape_cast %63 : vector<32x128xf32> to vector<1x1x32x128xf32>
    tpu.vector_store %arg4[%c0_23, %c0_24, %c0_25, %c0_26], %68 {strides = array<i32>} : memref<1x2x32x128xf32, #tpu.memory_space<vmem>>, vector<1x1x32x128xf32>,
    %c0_27 = arith.constant 0 : index
    %c1_28 = arith.constant 1 : index
    %c0_29 = arith.constant 0 : index
    %c0_30 = arith.constant 0 : index
    %69 = vector.load %arg4[%c0_27, %c1_28, %c0_29, %c0_30] : memref<1x2x32x128xf32, #tpu.memory_space<vmem>>, vector<1x1x32x128xf32>
    %70 = vector.shape_cast %69 : vector<1x1x32x128xf32> to vector<32x128xf32>
    %71 = vector.shape_cast %65 : vector<32x128xf32> to vector<1x1x32x128xf32>
    tpu.vector_store %arg4[%c0_27, %c1_28, %c0_29, %c0_30], %71 {strides = array<i32>} : memref<1x2x32x128xf32, #tpu.memory_space<vmem>>, vector<1x1x32x128xf32>,
    return
  }
  func.func @transform_0(%arg0: i32, %arg1: i32, %arg2: memref<2x6xf32, #tpu.memory_space<smem>>) -> (i32, i32, i32, i32) {
    %c0_i32 = arith.constant 0 : i32
    %c0_i32_0 = arith.constant 0 : i32
    %c0_i32_1 = arith.constant 0 : i32
    return %arg0, %c0_i32, %arg1, %c0_i32_0 : i32, i32, i32, i32
  }
  func.func @transform_1(%arg0: i32, %arg1: i32, %arg2: memref<2x6xf32, #tpu.memory_space<smem>>) -> (i32, i32, i32, i32) {
    %c0_i32 = arith.constant 0 : i32
    %c0_i32_0 = arith.constant 0 : i32
    %c0_i32_1 = arith.constant 0 : i32
    return %arg0, %c0_i32, %arg1, %c0_i32_0 : i32, i32, i32, i32
  }
}

module attributes {stable_mosaic.version = 11 : i64} {
  func.func @_proj2_kernel(%arg0: i32, %arg1: i32, %arg2: memref<2x6xf32, #tpu.memory_space<smem>>, %arg3: memref<1x3x32x128xi8, #tpu.memory_space<vmem>>, %arg4: memref<1x2x32x128xf32, #tpu.memory_space<vmem>>) attributes {dimension_semantics = [#tpu.dimension_semantics<parallel>, #tpu.dimension_semantics<parallel>], iteration_bounds = array<i64: 2, 2>, scalar_prefetch = 1 : i64, scratch_operands = 0 : i64, tpu.core_type = #tpu.core_type<tc>, window_params = [{transform_indices = @transform_0, window_bounds = array<i64: 1, 3, 32, 128>}, {transform_indices = @transform_1, window_bounds = array<i64: 1, 2, 32, 128>}]} {
    %c0 = arith.constant 0 : index
    %c0_0 = arith.constant 0 : index
    %c0_1 = arith.constant 0 : index
    %c0_2 = arith.constant 0 : index
    %0 = vector.load %arg3[%c0, %c0_0, %c0_1, %c0_2] : memref<1x3x32x128xi8, #tpu.memory_space<vmem>>, vector<1x1x32x128xi8>
    %1 = vector.shape_cast %0 : vector<1x1x32x128xi8> to vector<32x128xi8>
    %2 = arith.sitofp %1 : vector<32x128xi8> to vector<32x128xf32>
    %cst = arith.constant 1.280000e+02 : f32
    %3 = vector.broadcast %cst : f32 to vector<32x128xf32>
    %4 = arith.addf %2, %3 : vector<32x128xf32>
    %cst_3 = arith.constant 1.000000e+00 : f32
    %5 = vector.broadcast %cst_3 : f32 to vector<32x128xf32>
    %6 = arith.maximumf %4, %5 : vector<32x128xf32>
    %7 = math.log %6 : vector<32x128xf32>
    %cst_4 = arith.constant 5.48063898 : f32
    %8 = vector.broadcast %cst_4 : f32 to vector<32x128xf32>
    %9 = arith.subf %8, %7 : vector<32x128xf32>
    %c0_5 = arith.constant 0 : index
    %c1 = arith.constant 1 : index
    %c0_6 = arith.constant 0 : index
    %c0_7 = arith.constant 0 : index
    %10 = vector.load %arg3[%c0_5, %c1, %c0_6, %c0_7] : memref<1x3x32x128xi8, #tpu.memory_space<vmem>>, vector<1x1x32x128xi8>
    %11 = vector.shape_cast %10 : vector<1x1x32x128xi8> to vector<32x128xi8>
    %12 = arith.sitofp %11 : vector<32x128xi8> to vector<32x128xf32>
    %cst_8 = arith.constant 1.280000e+02 : f32
    %13 = vector.broadcast %cst_8 : f32 to vector<32x128xf32>
    %14 = arith.addf %12, %13 : vector<32x128xf32>
    %cst_9 = arith.constant 1.000000e+00 : f32
    %15 = vector.broadcast %cst_9 : f32 to vector<32x128xf32>
    %16 = arith.maximumf %14, %15 : vector<32x128xf32>
    %17 = math.log %16 : vector<32x128xf32>
    %cst_10 = arith.constant 5.48063898 : f32
    %18 = vector.broadcast %cst_10 : f32 to vector<32x128xf32>
    %19 = arith.subf %18, %17 : vector<32x128xf32>
    %c0_11 = arith.constant 0 : index
    %c2 = arith.constant 2 : index
    %c0_12 = arith.constant 0 : index
    %c0_13 = arith.constant 0 : index
    %20 = vector.load %arg3[%c0_11, %c2, %c0_12, %c0_13] : memref<1x3x32x128xi8, #tpu.memory_space<vmem>>, vector<1x1x32x128xi8>
    %21 = vector.shape_cast %20 : vector<1x1x32x128xi8> to vector<32x128xi8>
    %22 = arith.sitofp %21 : vector<32x128xi8> to vector<32x128xf32>
    %cst_14 = arith.constant 1.280000e+02 : f32
    %23 = vector.broadcast %cst_14 : f32 to vector<32x128xf32>
    %24 = arith.addf %22, %23 : vector<32x128xf32>
    %cst_15 = arith.constant 1.000000e+00 : f32
    %25 = vector.broadcast %cst_15 : f32 to vector<32x128xf32>
    %26 = arith.maximumf %24, %25 : vector<32x128xf32>
    %27 = math.log %26 : vector<32x128xf32>
    %cst_16 = arith.constant 5.48063898 : f32
    %28 = vector.broadcast %cst_16 : f32 to vector<32x128xf32>
    %29 = arith.subf %28, %27 : vector<32x128xf32>
    %30 = arith.index_cast %arg0 : i32 to index
    %c0_17 = arith.constant 0 : index
    %31 = memref.load %arg2[%30, %c0_17] : memref<2x6xf32, #tpu.memory_space<smem>>
    %32 = vector.broadcast %31 : f32 to vector<32x128xf32>
    %33 = arith.mulf %32, %9 : vector<32x128xf32>
    %34 = arith.index_cast %arg0 : i32 to index
    %c1_18 = arith.constant 1 : index
    %35 = memref.load %arg2[%34, %c1_18] : memref<2x6xf32, #tpu.memory_space<smem>>
    %36 = vector.broadcast %35 : f32 to vector<32x128xf32>
    %37 = arith.mulf %36, %19 : vector<32x128xf32>
    %38 = arith.addf %33, %37 : vector<32x128xf32>
    %39 = arith.index_cast %arg0 : i32 to index
    %c2_19 = arith.constant 2 : index
    %40 = memref.load %arg2[%39, %c2_19] : memref<2x6xf32, #tpu.memory_space<smem>>
    %41 = vector.broadcast %40 : f32 to vector<32x128xf32>
    %42 = arith.mulf %41, %29 : vector<32x128xf32>
    %43 = arith.addf %38, %42 : vector<32x128xf32>
    %44 = arith.index_cast %arg0 : i32 to index
    %c3 = arith.constant 3 : index
    %45 = memref.load %arg2[%44, %c3] : memref<2x6xf32, #tpu.memory_space<smem>>
    %46 = vector.broadcast %45 : f32 to vector<32x128xf32>
    %47 = arith.mulf %46, %9 : vector<32x128xf32>
    %48 = arith.index_cast %arg0 : i32 to index
    %c4 = arith.constant 4 : index
    %49 = memref.load %arg2[%48, %c4] : memref<2x6xf32, #tpu.memory_space<smem>>
    %50 = vector.broadcast %49 : f32 to vector<32x128xf32>
    %51 = arith.mulf %50, %19 : vector<32x128xf32>
    %52 = arith.addf %47, %51 : vector<32x128xf32>
    %53 = arith.index_cast %arg0 : i32 to index
    %c5 = arith.constant 5 : index
    %54 = memref.load %arg2[%53, %c5] : memref<2x6xf32, #tpu.memory_space<smem>>
    %55 = vector.broadcast %54 : f32 to vector<32x128xf32>
    %56 = arith.mulf %55, %29 : vector<32x128xf32>
    %57 = arith.addf %52, %56 : vector<32x128xf32>
    %c0_20 = arith.constant 0 : index
    %c0_21 = arith.constant 0 : index
    %c0_22 = arith.constant 0 : index
    %c0_23 = arith.constant 0 : index
    %58 = vector.load %arg4[%c0_20, %c0_21, %c0_22, %c0_23] : memref<1x2x32x128xf32, #tpu.memory_space<vmem>>, vector<1x1x32x128xf32>
    %59 = vector.shape_cast %58 : vector<1x1x32x128xf32> to vector<32x128xf32>
    %60 = vector.shape_cast %43 : vector<32x128xf32> to vector<1x1x32x128xf32>
    tpu.vector_store %arg4[%c0_20, %c0_21, %c0_22, %c0_23], %60 {strides = array<i32>} : memref<1x2x32x128xf32, #tpu.memory_space<vmem>>, vector<1x1x32x128xf32>,
    %c0_24 = arith.constant 0 : index
    %c1_25 = arith.constant 1 : index
    %c0_26 = arith.constant 0 : index
    %c0_27 = arith.constant 0 : index
    %61 = vector.load %arg4[%c0_24, %c1_25, %c0_26, %c0_27] : memref<1x2x32x128xf32, #tpu.memory_space<vmem>>, vector<1x1x32x128xf32>
    %62 = vector.shape_cast %61 : vector<1x1x32x128xf32> to vector<32x128xf32>
    %63 = vector.shape_cast %57 : vector<32x128xf32> to vector<1x1x32x128xf32>
    tpu.vector_store %arg4[%c0_24, %c1_25, %c0_26, %c0_27], %63 {strides = array<i32>} : memref<1x2x32x128xf32, #tpu.memory_space<vmem>>, vector<1x1x32x128xf32>,
    return
  }
  func.func @transform_0(%arg0: i32, %arg1: i32, %arg2: memref<2x6xf32, #tpu.memory_space<smem>>) -> (i32, i32, i32, i32) {
    %c0_i32 = arith.constant 0 : i32
    %c0_i32_0 = arith.constant 0 : i32
    %c0_i32_1 = arith.constant 0 : i32
    return %arg0, %c0_i32, %arg1, %c0_i32_0 : i32, i32, i32, i32
  }
  func.func @transform_1(%arg0: i32, %arg1: i32, %arg2: memref<2x6xf32, #tpu.memory_space<smem>>) -> (i32, i32, i32, i32) {
    %c0_i32 = arith.constant 0 : i32
    %c0_i32_0 = arith.constant 0 : i32
    %c0_i32_1 = arith.constant 0 : i32
    return %arg0, %c0_i32, %arg1, %c0_i32_0 : i32, i32, i32, i32
  }
}

module attributes {stable_mosaic.version = 11 : i64} {
  func.func @_finalize_kernel(%arg0: i32, %arg1: i32, %arg2: memref<2x9xf32, #tpu.memory_space<smem>>, %arg3: memref<1x3x32x128xi8, #tpu.memory_space<vmem>>, %arg4: memref<1x3x32x128xi8, #tpu.memory_space<vmem>>) attributes {dimension_semantics = [#tpu.dimension_semantics<parallel>, #tpu.dimension_semantics<parallel>], iteration_bounds = array<i64: 2, 2>, scalar_prefetch = 1 : i64, scratch_operands = 0 : i64, tpu.core_type = #tpu.core_type<tc>, window_params = [{transform_indices = @transform_0, window_bounds = array<i64: 1, 3, 32, 128>}, {transform_indices = @transform_1, window_bounds = array<i64: 1, 3, 32, 128>}]} {
    %c0 = arith.constant 0 : index
    %c0_0 = arith.constant 0 : index
    %c0_1 = arith.constant 0 : index
    %c0_2 = arith.constant 0 : index
    %0 = vector.load %arg3[%c0, %c0_0, %c0_1, %c0_2] : memref<1x3x32x128xi8, #tpu.memory_space<vmem>>, vector<1x1x32x128xi8>
    %1 = vector.shape_cast %0 : vector<1x1x32x128xi8> to vector<32x128xi8>
    %2 = arith.sitofp %1 : vector<32x128xi8> to vector<32x128xf32>
    %cst = arith.constant 1.280000e+02 : f32
    %3 = vector.broadcast %cst : f32 to vector<32x128xf32>
    %4 = arith.addf %2, %3 : vector<32x128xf32>
    %cst_3 = arith.constant 1.000000e+00 : f32
    %5 = vector.broadcast %cst_3 : f32 to vector<32x128xf32>
    %6 = arith.maximumf %4, %5 : vector<32x128xf32>
    %7 = math.log %6 : vector<32x128xf32>
    %cst_4 = arith.constant 5.48063898 : f32
    %8 = vector.broadcast %cst_4 : f32 to vector<32x128xf32>
    %9 = arith.subf %8, %7 : vector<32x128xf32>
    %c0_5 = arith.constant 0 : index
    %c1 = arith.constant 1 : index
    %c0_6 = arith.constant 0 : index
    %c0_7 = arith.constant 0 : index
    %10 = vector.load %arg3[%c0_5, %c1, %c0_6, %c0_7] : memref<1x3x32x128xi8, #tpu.memory_space<vmem>>, vector<1x1x32x128xi8>
    %11 = vector.shape_cast %10 : vector<1x1x32x128xi8> to vector<32x128xi8>
    %12 = arith.sitofp %11 : vector<32x128xi8> to vector<32x128xf32>
    %cst_8 = arith.constant 1.280000e+02 : f32
    %13 = vector.broadcast %cst_8 : f32 to vector<32x128xf32>
    %14 = arith.addf %12, %13 : vector<32x128xf32>
    %cst_9 = arith.constant 1.000000e+00 : f32
    %15 = vector.broadcast %cst_9 : f32 to vector<32x128xf32>
    %16 = arith.maximumf %14, %15 : vector<32x128xf32>
    %17 = math.log %16 : vector<32x128xf32>
    %cst_10 = arith.constant 5.48063898 : f32
    %18 = vector.broadcast %cst_10 : f32 to vector<32x128xf32>
    %19 = arith.subf %18, %17 : vector<32x128xf32>
    %c0_11 = arith.constant 0 : index
    %c2 = arith.constant 2 : index
    %c0_12 = arith.constant 0 : index
    %c0_13 = arith.constant 0 : index
    %20 = vector.load %arg3[%c0_11, %c2, %c0_12, %c0_13] : memref<1x3x32x128xi8, #tpu.memory_space<vmem>>, vector<1x1x32x128xi8>
    %21 = vector.shape_cast %20 : vector<1x1x32x128xi8> to vector<32x128xi8>
    %22 = arith.sitofp %21 : vector<32x128xi8> to vector<32x128xf32>
    %cst_14 = arith.constant 1.280000e+02 : f32
    %23 = vector.broadcast %cst_14 : f32 to vector<32x128xf32>
    %24 = arith.addf %22, %23 : vector<32x128xf32>
    %cst_15 = arith.constant 1.000000e+00 : f32
    %25 = vector.broadcast %cst_15 : f32 to vector<32x128xf32>
    %26 = arith.maximumf %24, %25 : vector<32x128xf32>
    %27 = math.log %26 : vector<32x128xf32>
    %cst_16 = arith.constant 5.48063898 : f32
    %28 = vector.broadcast %cst_16 : f32 to vector<32x128xf32>
    %29 = arith.subf %28, %27 : vector<32x128xf32>
    %30 = arith.index_cast %arg0 : i32 to index
    %c0_17 = arith.constant 0 : index
    %31 = memref.load %arg2[%30, %c0_17] : memref<2x9xf32, #tpu.memory_space<smem>>
    %32 = vector.broadcast %31 : f32 to vector<32x128xf32>
    %33 = arith.mulf %32, %9 : vector<32x128xf32>
    %34 = arith.index_cast %arg0 : i32 to index
    %c1_18 = arith.constant 1 : index
    %35 = memref.load %arg2[%34, %c1_18] : memref<2x9xf32, #tpu.memory_space<smem>>
    %36 = vector.broadcast %35 : f32 to vector<32x128xf32>
    %37 = arith.mulf %36, %19 : vector<32x128xf32>
    %38 = arith.addf %33, %37 : vector<32x128xf32>
    %39 = arith.index_cast %arg0 : i32 to index
    %c2_19 = arith.constant 2 : index
    %40 = memref.load %arg2[%39, %c2_19] : memref<2x9xf32, #tpu.memory_space<smem>>
    %41 = vector.broadcast %40 : f32 to vector<32x128xf32>
    %42 = arith.mulf %41, %29 : vector<32x128xf32>
    %43 = arith.addf %38, %42 : vector<32x128xf32>
    %cst_20 = arith.constant 5.48063898 : f32
    %44 = vector.broadcast %cst_20 : f32 to vector<32x128xf32>
    %45 = arith.subf %44, %43 : vector<32x128xf32>
    %46 = math.exp %45 : vector<32x128xf32>
    %cst_21 = arith.constant 2.550000e+02 : f32
    %47 = vector.broadcast %cst_21 : f32 to vector<32x128xf32>
    %48 = arith.cmpf ogt, %46, %47 : vector<32x128xf32>
    %cst_22 = arith.constant 2.540000e+02 : f32
    %49 = vector.broadcast %cst_22 : f32 to vector<32x128xf32>
    %50 = arith.select %48, %49, %46 : vector<32x128xi1>, vector<32x128xf32>
    %51 = arith.fptosi %50 : vector<32x128xf32> to vector<32x128xi32>
    %52 = arith.trunci %51 : vector<32x128xi32> to vector<32x128xi8>
    %c0_23 = arith.constant 0 : index
    %c0_24 = arith.constant 0 : index
    %c0_25 = arith.constant 0 : index
    %c0_26 = arith.constant 0 : index
    %53 = vector.load %arg4[%c0_23, %c0_24, %c0_25, %c0_26] : memref<1x3x32x128xi8, #tpu.memory_space<vmem>>, vector<1x1x32x128xi8>
    %54 = vector.shape_cast %53 : vector<1x1x32x128xi8> to vector<32x128xi8>
    %55 = vector.shape_cast %52 : vector<32x128xi8> to vector<1x1x32x128xi8>
    tpu.vector_store %arg4[%c0_23, %c0_24, %c0_25, %c0_26], %55 {strides = array<i32>} : memref<1x3x32x128xi8, #tpu.memory_space<vmem>>, vector<1x1x32x128xi8>,
    %56 = arith.index_cast %arg0 : i32 to index
    %c3 = arith.constant 3 : index
    %57 = memref.load %arg2[%56, %c3] : memref<2x9xf32, #tpu.memory_space<smem>>
    %58 = vector.broadcast %57 : f32 to vector<32x128xf32>
    %59 = arith.mulf %58, %9 : vector<32x128xf32>
    %60 = arith.index_cast %arg0 : i32 to index
    %c4 = arith.constant 4 : index
    %61 = memref.load %arg2[%60, %c4] : memref<2x9xf32, #tpu.memory_space<smem>>
    %62 = vector.broadcast %61 : f32 to vector<32x128xf32>
    %63 = arith.mulf %62, %19 : vector<32x128xf32>
    %64 = arith.addf %59, %63 : vector<32x128xf32>
    %65 = arith.index_cast %arg0 : i32 to index
    %c5 = arith.constant 5 : index
    %66 = memref.load %arg2[%65, %c5] : memref<2x9xf32, #tpu.memory_space<smem>>
    %67 = vector.broadcast %66 : f32 to vector<32x128xf32>
    %68 = arith.mulf %67, %29 : vector<32x128xf32>
    %69 = arith.addf %64, %68 : vector<32x128xf32>
    %cst_27 = arith.constant 5.48063898 : f32
    %70 = vector.broadcast %cst_27 : f32 to vector<32x128xf32>
    %71 = arith.subf %70, %69 : vector<32x128xf32>
    %72 = math.exp %71 : vector<32x128xf32>
    %cst_28 = arith.constant 2.550000e+02 : f32
    %73 = vector.broadcast %cst_28 : f32 to vector<32x128xf32>
    %74 = arith.cmpf ogt, %72, %73 : vector<32x128xf32>
    %cst_29 = arith.constant 2.540000e+02 : f32
    %75 = vector.broadcast %cst_29 : f32 to vector<32x128xf32>
    %76 = arith.select %74, %75, %72 : vector<32x128xi1>, vector<32x128xf32>
    %77 = arith.fptosi %76 : vector<32x128xf32> to vector<32x128xi32>
    %78 = arith.trunci %77 : vector<32x128xi32> to vector<32x128xi8>
    %c0_30 = arith.constant 0 : index
    %c1_31 = arith.constant 1 : index
    %c0_32 = arith.constant 0 : index
    %c0_33 = arith.constant 0 : index
    %79 = vector.load %arg4[%c0_30, %c1_31, %c0_32, %c0_33] : memref<1x3x32x128xi8, #tpu.memory_space<vmem>>, vector<1x1x32x128xi8>
    %80 = vector.shape_cast %79 : vector<1x1x32x128xi8> to vector<32x128xi8>
    %81 = vector.shape_cast %78 : vector<32x128xi8> to vector<1x1x32x128xi8>
    tpu.vector_store %arg4[%c0_30, %c1_31, %c0_32, %c0_33], %81 {strides = array<i32>} : memref<1x3x32x128xi8, #tpu.memory_space<vmem>>, vector<1x1x32x128xi8>,
    %82 = arith.index_cast %arg0 : i32 to index
    %c6 = arith.constant 6 : index
    %83 = memref.load %arg2[%82, %c6] : memref<2x9xf32, #tpu.memory_space<smem>>
    %84 = vector.broadcast %83 : f32 to vector<32x128xf32>
    %85 = arith.mulf %84, %9 : vector<32x128xf32>
    %86 = arith.index_cast %arg0 : i32 to index
    %c7 = arith.constant 7 : index
    %87 = memref.load %arg2[%86, %c7] : memref<2x9xf32, #tpu.memory_space<smem>>
    %88 = vector.broadcast %87 : f32 to vector<32x128xf32>
    %89 = arith.mulf %88, %19 : vector<32x128xf32>
    %90 = arith.addf %85, %89 : vector<32x128xf32>
    %91 = arith.index_cast %arg0 : i32 to index
    %c8 = arith.constant 8 : index
    %92 = memref.load %arg2[%91, %c8] : memref<2x9xf32, #tpu.memory_space<smem>>
    %93 = vector.broadcast %92 : f32 to vector<32x128xf32>
    %94 = arith.mulf %93, %29 : vector<32x128xf32>
    %95 = arith.addf %90, %94 : vector<32x128xf32>
    %cst_34 = arith.constant 5.48063898 : f32
    %96 = vector.broadcast %cst_34 : f32 to vector<32x128xf32>
    %97 = arith.subf %96, %95 : vector<32x128xf32>
    %98 = math.exp %97 : vector<32x128xf32>
    %cst_35 = arith.constant 2.550000e+02 : f32
    %99 = vector.broadcast %cst_35 : f32 to vector<32x128xf32>
    %100 = arith.cmpf ogt, %98, %99 : vector<32x128xf32>
    %cst_36 = arith.constant 2.540000e+02 : f32
    %101 = vector.broadcast %cst_36 : f32 to vector<32x128xf32>
    %102 = arith.select %100, %101, %98 : vector<32x128xi1>, vector<32x128xf32>
    %103 = arith.fptosi %102 : vector<32x128xf32> to vector<32x128xi32>
    %104 = arith.trunci %103 : vector<32x128xi32> to vector<32x128xi8>
    %c0_37 = arith.constant 0 : index
    %c2_38 = arith.constant 2 : index
    %c0_39 = arith.constant 0 : index
    %c0_40 = arith.constant 0 : index
    %105 = vector.load %arg4[%c0_37, %c2_38, %c0_39, %c0_40] : memref<1x3x32x128xi8, #tpu.memory_space<vmem>>, vector<1x1x32x128xi8>
    %106 = vector.shape_cast %105 : vector<1x1x32x128xi8> to vector<32x128xi8>
    %107 = vector.shape_cast %104 : vector<32x128xi8> to vector<1x1x32x128xi8>
    tpu.vector_store %arg4[%c0_37, %c2_38, %c0_39, %c0_40], %107 {strides = array<i32>} : memref<1x3x32x128xi8, #tpu.memory_space<vmem>>, vector<1x1x32x128xi8>,
    return
  }
  func.func @transform_0(%arg0: i32, %arg1: i32, %arg2: memref<2x9xf32, #tpu.memory_space<smem>>) -> (i32, i32, i32, i32) {
    %c0_i32 = arith.constant 0 : i32
    %c0_i32_0 = arith.constant 0 : i32
    %c0_i32_1 = arith.constant 0 : i32
    return %arg0, %c0_i32, %arg1, %c0_i32_0 : i32, i32, i32, i32
  }
  func.func @transform_1(%arg0: i32, %arg1: i32, %arg2: memref<2x9xf32, #tpu.memory_space<smem>>) -> (i32, i32, i32, i32) {
    %c0_i32 = arith.constant 0 : i32
    %c0_i32_0 = arith.constant 0 : i32
    %c0_i32_1 = arith.constant 0 : i32
    return %arg0, %c0_i32, %arg1, %c0_i32_0 : i32, i32, i32, i32
  }
}

</mosaic_0001>

<bundles_post_ra>
// kernel: custom-call.32
= control target key start
LH: loop header
LB: loop body
LE: loop exit
PB: predicated region body
PF: predicated region fallthrough
CT: control target
= control target key end

     0   :  { %s1764_s30 = smov 0   ;;  %s1766_s10 = smov 0   ;;  %s2097_s0 = inlined_call_operand.vmem [shape: f32[2,2,2], index: 0, kind: input, shape index: {}]   ;;  %s2098_s1 = inlined_call_operand.vmem [shape: f32[2,2,2], index: 1, kind: input, shape index: {}]   ;;  %s2099_s2 = inlined_call_operand.vmem [shape: f32[2,2,2], index: 2, kind: input, shape index: {}]   ;;  %s2100_s3 = inlined_call_operand.vmem [shape: f32[2,2,2], index: 3, kind: input, shape index: {}]   ;;  %s2101_s4 = inlined_call_operand.vmem [shape: f32[2,2], index: 4, kind: output, shape index: {0}]   ;;  %s2102_s5 = inlined_call_operand.vmem [shape: f32[2,2], index: 5, kind: output, shape index: {1}]   ;;  %s2103_s6 = inlined_call_operand.vmem [shape: f32[2,2,2], index: 6, kind: output, shape index: {2}]   ;;  %s2104_s7 = inlined_call_operand.vmem [shape: f32[2,2,2], index: 7, kind: output, shape index: {3}]   ;;  %s2105_s8 = inlined_call_operand.vmem [shape: f32[2,2,2], index: 8, kind: output, shape index: {4}]   ;;  %s2106_s9 = inlined_call_operand.vmem [shape: f32[2,2,2], index: 9, kind: output, shape index: {5}]  }
   0x1   :  { %s1768_s11 = smov 0  }
   0x2 LB: > { %s1780_s12 = sadd.s32 4294967295, %s1701_s11   ;;  %s1783_s13 = sadd.s32 1, %s1701_s11   ;;  %s1701_s11 = sphi %s1768_s11, %s2123_s11   ;;  %s1697_s10 = sphi %s1766_s10, %s2122_s10   ;;  %s1693_s30 = sphi %s1764_s30, %s2121_s30  }
   0x3   : > { %s20_s14 = sshrl.u32 %s1701_s11, 3  ;;  %s21_s15 = sshrl.u32 %s1783_s13, 3 }
   0x4   : > { %s22_s16 = ssub.s32 %s20_s14, %s21_s15  ;;  %s25_s17 = sadd.s32 1, %s1697_s10 }
   0x5   : > { %p23_p0 = scmp.eq.s32.totalorder %s22_s16, 0  ;;  %p35_p1 = scmp.ne.s32.totalorder %s1697_s10, %s1693_s30 }
   0x6   : > { %p36_p2 = scmp.eq.s32.totalorder %s1780_s12, 1  ;;  %p1562_p4 = scmp.ge.s32.totalorder %s1701_s11, 2 }
   0x7   : > { %s1792_s18 = scalar_select %p23_p0, %s1697_s10, %s25_s17  }
   0x8   : > { %p1794_p3 = por %p36_p2, %p35_p1  ;;  %86 = sbr.rel (%p1562_p4) target bundleno = 18 (0x12), region = 16 }
   0x9   : > { %2107 = sst [smem:[#allocation33_spill]] %s1792_s18  ;;  %s88_s20 = sand.u32 (!%p1562_p4), 1, %s1701_s11  }
   0xa   : > { %s1564_s21 = sshll.u32 (!%p1562_p4), %s1701_s11, 1  ;;  %s1563_s22 = sshll.u32 (!%p1562_p4), %s88_s20, 1 }
   0xb   : > { %s92_s25 = scalar_lea.vmem (!%p1562_p4), %s2097_s0, %s1564_s21  ;;  %s90_s26 = scalar_lea.vmem (!%p1562_p4), [#allocation1], %s1563_s22 }
   0xc   : > { %s131_s29 = scalar_lea.vmem (!%p1562_p4), %s2098_s1, %s1564_s21  ;;  %s170_s16 = scalar_lea.vmem (!%p1562_p4), %s2099_s2, %s1564_s21 }
   0xd   : > { %v109_v0 = vld [vmem:[%s92_s25] sm:$0x3]  ;;  %s129_s17 = scalar_lea.vmem [#allocation3], %s1563_s22  ;;  %s209_s23 = scalar_lea.vmem %s2100_s3, %s1564_s21 }
   0xe   : > { %110 = vst [vmem:[%s90_s26] sm:$0x3] %v109_v0  ;;  %v148_v1 = vld [vmem:[%s131_s29] sm:$0x3]  ;;  %s168_s24 = scalar_lea.vmem [#allocation5], %s1563_s22  ;;  %s207_s25 = scalar_lea.vmem [#allocation7], %s1563_s22 }
   0xf   : > { %149 = vst [vmem:[%s129_s17] sm:$0x3] %v148_v1  ;;  %v187_v2 = vld [vmem:[%s170_s16] sm:$0x3] }
  0x10   : > { %188 = vst [vmem:[%s168_s24] sm:$0x3] %v187_v2  ;;  %v226_v3 = vld [vmem:[%s209_s23] sm:$0x3] }
  0x11   : > { %227 = vst [vmem:[%s207_s25] sm:$0x3] %v226_v3 }
  0x12 PF: > { %p1571_p5 = scmp.ge.s32.totalorder %s1701_s11, 1  ;;  %p244_p6 = scmp.lt.s32.totalorder %s1701_s11, 3 }
  0x14   : > { %p245_p7 = pnand %p1571_p5, %p244_p6 }
  0x16   : > { %248 = sbr.rel (%p245_p7) target bundleno = 952 (0x3b8), region = 140 }
  0x1b   : > { %s267_s26 = sand.u32 1, %s1780_s12   ;;  %s285_s27 = sand.u32 1, %s1693_s30   ;;  %v345_v4 = vlaneseq  ;;  %v1711_v5 = vmov 0.0  }
  0x1c   : > { %s1817_s28 = sshll.u32 %s267_s26, 1  ;;  %s1819_s18 = sshll.u32 %s285_s27, 1  ;;  %340 = vst [vmem:[#allocation12] sm:$0xff] %v1711_v5 }
  0x1d   : > { %341 = vst [vmem:[#allocation14] sm:$0xff] %v1711_v5  ;;  %v1821_v6 = vand.u32 127, %v345_v4  ;;  %v1823_v7 = vshrl.u32 %v345_v4, 7  ;;  %s269_s11 = scalar_lea.vmem [#allocation1], %s1817_s28  ;;  %s273_s21 = scalar_lea.vmem [#allocation3], %s1817_s28 }
  0x1e   : > { %v312_v8 = vld [vmem:[%s269_s11] sm:$0x3]  ;;  %v316_v9 = vld [vmem:[%s273_s21] sm:$0x3]  ;;  %s277_s30 = scalar_lea.vmem [#allocation5], %s1817_s28  ;;  %s281_s22 = scalar_lea.vmem [#allocation7], %s1817_s28 }
  0x1f   : > { %313 = vst [vmem:[#allocation0] sm:$0x3] %v312_v8  ;;  %v320_v10 = vld [vmem:[%s277_s30] sm:$0x3]  ;;  %v324_v11 = vld [vmem:[%s281_s22] sm:$0x3]  ;;  %v347_v6 = vmov %v1821_v6  ;;  %v350_v7 = vmov %v1823_v7 }
  0x20   : > { %317 = vst [vmem:[#allocation2] sm:$0x3] %v316_v9  ;;  %s328_s29 = smov [#allocation20]  ;;  %s344_s14 = smov [#allocation12]  ;;  %vm354_vm0 = vcmp.eq.s32.totalorder %v350_v7, %v347_v6  ;;  %v360_v6 = vmov %v1821_v6  ;;  %v363_v7 = vmov %v1823_v7  ;;  %vm1451_vm2 = vcmp.lt.s32.totalorder %v1821_v6, 2 }
  0x21   : > { %321 = vst [vmem:[#allocation4] sm:$0x3] %v320_v10  ;;  %s331_s15 = smov [#allocation21]  ;;  %s334_s16 = smov [#allocation22]  ;;  %vm367_vm1 = vcmp.eq.s32.totalorder %v363_v7, %v360_v6  ;;  %v1443_v6 = vmov %v1821_v6  ;;  %v1446_v7 = vmov %v1823_v7 }
  0x22   : > { %325 = vst [vmem:[#allocation6] sm:$0x3] %v324_v11  ;;  %s337_s17 = smov [#allocation23]  ;;  %s357_s20 = smov [#allocation18]  ;;  %v1460_v6 = vmov %v1821_v6  ;;  %v1463_v7 = vmov %v1823_v7  ;;  %vm1456_vm3 = vcmp.eq.s32.totalorder %v1446_v7, %v1443_v6 }
  0x23   : > { %342 = vst [vmem:[#allocation16] sm:$0xff] %v1711_v5  ;;  %v351_v12 = vld [vmem:[%s344_s14] sm:$0x3]  ;;  %s297_s25 = scalar_lea.vmem [#allocation13], %s1817_s28  ;;  %s1447_s21 = smov [#allocation20]  ;;  %v1477_v6 = vmov %v1821_v6  ;;  %v1480_v7 = vmov %v1823_v7 }
  0x24   : > { %343 = vst [vmem:[#allocation18] sm:$0xff] %v1711_v5  ;;  %v355_v16 = vsel %vm354_vm0, 1.0, %v351_v12  ;;  %s1464_s30 = smov [#allocation21]  ;;  %s1481_s22 = smov [#allocation22]  ;;  %v1494_v6 = vmov %v1821_v6  ;;  %v1497_v7 = vmov %v1823_v7 }
  0x25   : > { %356 = vst [vmem:[%s344_s14] sm:$0x3] %v355_v16  ;;  %vm1507_vm4 = vcmp.eq.s32.totalorder %v1497_v7, %v1494_v6 }
  0x26   : > { %v329_v13 = vld [vmem:[#allocation0] sm:$0xff] }
  0x27   : > { %330 = vst [vmem:[%s328_s29] sm:$0xff] %v329_v13  ;;  %v332_v14 = vld [vmem:[#allocation2] sm:$0xff]  ;;  %s1498_s29 = smov [#allocation23] }
  0x28   : > { %333 = vst [vmem:[%s331_s15] sm:$0xff] %v332_v14  ;;  %v335_v15 = vld [vmem:[#allocation4] sm:$0xff] }
  0x29   : > { %336 = vst [vmem:[%s334_s16] sm:$0xff] %v335_v15  ;;  %v338_v17 = vld [vmem:[#allocation6] sm:$0xff] }
  0x2a   : > { %339 = vst [vmem:[%s337_s17] sm:$0xff] %v338_v17 }
  0x2b   : > { %v364_v18 = vld [vmem:[%s357_s20] sm:$0x3] }
  0x2c   : > { %v368_v19 = vsel %vm367_vm1, 1.0, %v364_v18 }
  0x2d   : > { %369 = vst [vmem:[%s357_s20] sm:$0x3] %v368_v19 }
  0x2e   : > { %v1453_v20 = vld [vmem:[%s1447_s21] sm:$0x3] }
  0x2f   : > { %v1470_v21 = vld [vmem:[%s1464_s30] sm:$0x3]  ;;  %v1454_v22 = vsel %vm1451_vm2, %v1453_v20, 0.0 }
  0x30   : > { %v1471_v23 = vsel %vm1451_vm2, %v1470_v21, 0.0  ;;  %v1487_v24 = vld [vmem:[%s1481_s22] sm:$0x3]  ;;  %v1455_v26 = vmul.f32 %v1454_v22, %v1454_v22 }
  0x31   : > { %v1504_v25 = vld [vmem:[%s1498_s29] sm:$0x3]  ;;  %v1472_v27 = vmul.f32 %v1471_v23, %v1471_v23  ;;  %v1488_v28 = vsel %vm1451_vm2, %v1487_v24, 0.0 }
  0x32   : > { %v1505_v29 = vsel %vm1451_vm2, %v1504_v25, 0.0  ;;  %v1489_v30 = vmul.f32 %v1488_v28, %v1488_v28  ;;  %v1457_v33 = vsel %vm1456_vm3, 0.0, %v1455_v26 }
  0x33   : > { %v1474_v31 = vadd.f32 %v1472_v27, %v1455_v26  ;;  %v1506_v32 = vmul.f32 %v1505_v29, %v1505_v29  ;;  %v1473_v35 = vadd.f32 %v1472_v27, %v1457_v33 }
  0x35   : > { %v1491_v34 = vadd.f32 %v1489_v30, %v1474_v31  ;;  %v1490_v37 = vadd.f32 %v1489_v30, %v1473_v35  ;;  %v1508_v38 = vsel %vm1507_vm4, 0.0, %v1506_v32 }
  0x37   : > { %v1510_v36 = vadd.f32 %v1506_v32, %v1491_v34  ;;  %v1509_v39 = vadd.f32 %v1508_v38, %v1490_v37 }
  0x39   : > { %1511 = vadd.xlane.f32.xlu0 %v1510_v36 }
  0x41   : > { %1519 = vadd.xlane.f32.xlu0 %v1509_v39 }
  0xac   : > { %v1512_v40 = vpop.xlane.xlu0 %1511 }
  0xad   : > { %v1513_v41 = vrot.slane %v1512_v40, 4 }
  0xaf   : > { %v1514_v42 = vadd.f32 %v1513_v41, %v1512_v40 }
  0xb1   : > { %v1515_v43 = vrot.slane %v1514_v42, 2 }
  0xb3   : > { %v1516_v47 = vadd.f32 %v1515_v43, %v1514_v42 }
  0xb4   : > { %v1520_v44 = vpop.xlane.xlu0 %1519 }
  0xb5   : > { %v1521_v45 = vrot.slane %v1520_v44, 4  ;;  %v1517_v50 = vrot.slane %v1516_v47, 1 }
  0xb7   : > { %v1522_v46 = vadd.f32 %v1521_v45, %v1520_v44  ;;  %v1518_v53 = vadd.f32 %v1517_v50, %v1516_v47 }
  0xb9   : > { %v1523_v48 = vrot.slane %v1522_v46, 2 }
  0xbb   : > { %v1524_v49 = vadd.f32 %v1523_v48, %v1522_v46 }
  0xbd   : > { %v1525_v51 = vrot.slane %v1524_v49, 1 }
  0xbf   : > { %v1526_v52 = vadd.f32 %v1525_v51, %v1524_v49 }
  0xc1   : > { %1612 = vpush %v1526_v52 }
  0xc2   : > { %1614 = vpush %v1518_v53 }
  0xf2   : > { %s1613_s14 = spop %1612 }
  0xf3   : > { %s1615_s15 = spop %1614 }
  0xf4   : > { %s1529_s16 = smul.f32 1e-10, %s1615_s15 }
  0xf6   : > { %p1530_p8 = scmp.le.f32.partialorder %s1613_s14, %s1529_s16 }
  0xf7   : > { %s1856_s17 = smov (!%p1530_p8), 0  }
  0xf8   : > { %1533 = sbr.rel (%p1530_p8) target bundleno = 906 (0x38a), region = 467 }
  0xfd LB: >> { %s1861_s20 = smov 0   ;;  %s1705_s17 = sphi %s1856_s17, %s2109_s17  }
  0xfe LB: >>> { %s474_s21 = smov [#allocation20]  ;;  %v478_v6 = vmov %v1821_v6  ;;  %v481_v7 = vmov %v1823_v7  ;;  %s494_s30 = smov [#allocation21]  ;;  %s1709_s20 = sphi %s1861_s20, %s473_s20  }
  0xff   : >>> { %v498_v6 = vmov %v1821_v6  ;;  %v501_v7 = vmov %v1823_v7  ;;  %v482_v54 = vld [vmem:[%s474_s21] sm:$0x3]  ;;  %vm485_vm5 = vcmp.eq.s32.totalorder %v481_v7, %v478_v6  ;;  %s514_s22 = smov [#allocation23]  ;;  %s475_s29 = smov [#allocation24] }
 0x100   : >>> { %vm505_vm6 = vcmp.eq.s32.totalorder %v501_v7, %v498_v6  ;;  %v518_v6 = vmov %v1821_v6  ;;  %v521_v7 = vmov %v1823_v7  ;;  %v486_v55 = vsel %vm485_vm5, %v482_v54, 0.0  ;;  %v502_v56 = vld [vmem:[%s494_s30] sm:$0x3]  ;;  %s495_s14 = smov [#allocation25]  ;;  %s515_s15 = smov [#allocation26] }
 0x101   : >>> { %vm525_vm7 = vcmp.eq.s32.totalorder %v521_v7, %v518_v6  ;;  %v487_v57 = vrot.slane %v486_v55, 4  ;;  %v506_v58 = vsel %vm505_vm6, %v502_v56, 0.0  ;;  %v522_v59 = vld [vmem:[%s514_s22] sm:$0x3]  ;;  %s538_s16 = smov [#allocation25]  ;;  %s536_s21 = smov [#allocation24]  ;;  %v627_v6 = vmov %v1821_v6 }
 0x102   : >>> { %v507_v60 = vrot.slane %v506_v58, 4  ;;  %v526_v61 = vsel %vm525_vm7, %v522_v59, 0.0  ;;  %s540_s30 = smov [#allocation26]  ;;  %s615_s22 = smov [#allocation27]  ;;  %v630_v7 = vmov %v1823_v7 }
 0x103   : >>> { %v488_v62 = vadd.f32 %v487_v57, %v486_v55  ;;  %v527_v63 = vrot.slane %v526_v61, 4  ;;  %s1887_s24 = smov [#allocation12]  ;;  %s1889_s23 = smov [#allocation14] }
 0x104   : >>> { %v508_v0 = vadd.f32 %v507_v60, %v506_v58  ;;  %s1894_s11 = smov [#allocation16]  ;;  %s879_s27 = smov [#allocation32] }
 0x105   : >>> { %v489_v1 = vrot.slane %v488_v62, 2  ;;  %v528_v2 = vadd.f32 %v527_v63, %v526_v61  ;;  %s1897_s26 = smov [#allocation18]  ;;  %s473_s20 = sadd.s32 1, %s1709_s20  }
 0x106   : >>> { %v509_v3 = vrot.slane %v508_v0, 2  ;;  %p470_p9 = scmp.ge.s32.totalorder %s473_s20, 3  }
 0x107   : >>> { %v490_v4 = vadd.f32 %v489_v1, %v488_v62  ;;  %v529_v5 = vrot.slane %v528_v2, 2 }
 0x108   : >>> { %v510_v8 = vadd.f32 %v509_v3, %v508_v0 }
 0x109   : >>> { %v491_v9 = vrot.slane %v490_v4, 1  ;;  %v530_v10 = vadd.f32 %v529_v5, %v528_v2 }
 0x10a   : >>> { %v511_v11 = vrot.slane %v510_v8, 1 }
 0x10b   : >>> { %v492_v12 = vadd.f32 %v491_v9, %v490_v4  ;;  %v531_v13 = vrot.slane %v530_v10, 1 }
 0x10c   : >>> { %v512_v14 = vadd.f32 %v511_v11, %v510_v8 }
 0x10d   : >>> { %493 = vst [vmem:[%s475_s29] sm:$0x1] %v492_v12  ;;  %v532_v15 = vadd.f32 %v531_v13, %v530_v10  ;;  %s617_s29 = smov [#allocation28] }
 0x10e   : >>> { %513 = vst [vmem:[%s495_s14] sm:$0x1] %v512_v14  ;;  %s534_s14 = smov [#allocation29] }
 0x10f   : >>> { %533 = vst [vmem:[%s515_s15] sm:$0x1] %v532_v15  ;;  %s535_s15 = smov [#allocation30]  ;;  %s619_s14 = smov %s534_s14 }
 0x110   : >>> { %s621_s15 = smov %s535_s15 }
 0x114   : >>> { %v537_v23 = vld [vmem:[%s536_s21] sm:$0xff]  ;;  %s638_s21 = smov [#allocation30] }
 0x115   : >>> { %v1872_v16 = vld [vmem:[%s538_s16] sm:$0xff]  ;;  %v591_v47 = vand.u32 2147483647, %v537_v23  ;;  %s623_s16 = smov [#allocation29] }
 0x116   : >>> { %v543_v17 = vmul.f32 2.0, %v1872_v16  ;;  %v541_v24 = vld [vmem:[%s540_s30] sm:$0xff]  ;;  %v592_v55 = vand.u32 2147483647, %v1872_v16  ;;  %s636_s30 = smov [#allocation31] }
 0x117   : >>> { %v542_v27 = vsub.f32 %v541_v24, %v537_v23  ;;  %v593_v48 = vand.u32 2147483647, %v541_v24 }
 0x118   : >>> { %1663 = vrcp.f32 %v543_v17  ;;  %v555_v20 = vand.u32 2147483648, %v543_v17  ;;  %vm549_vm8 = vweird.f32 %v543_v17  ;;  %v553_v22 = vand.u32 2147483647, %v543_v17 }
 0x119   : >>> { %v594_v50 = vmin.f32 %v591_v47, %v593_v48 }
 0x11a   : >>> { %v556_v26 = vor.u32 1.1754944e-38, %v555_v20  ;;  %vm554_vm11 = vcmp.eq.f32.partialorder %v553_v22, 8.507059e+37 }
 0x11b   : >>> { %v595_v56 = vmul.f32 1.1920929e-08, %v594_v50 }
 0x11d   : >>> { %vm596_vm4 = vcmp.le.f32.partialorder %v592_v55, %v595_v56 }
 0x11e   : >>> { %v1664_v18 = vpop.eup %1663 }
 0x11f   : >>> { %v545_v19 = vmul.f32 %v1664_v18, %v543_v17  ;;  %vm550_vm9 = vweird.f32 %v1664_v18 }
 0x120   : >>> { %vm551_vm10 = vmor %vm549_vm8, %vm550_vm9  ;;  %vm632_vm8 = vcmp.eq.s32.totalorder %v630_v7, %v627_v6  ;;  %v642_v6 = vmov %v1821_v6  ;;  %v645_v7 = vmov %v1823_v7 }
 0x121   : >>> { %v546_v21 = vsub.f32 1.0, %v545_v19  ;;  %vm647_vm9 = vcmp.eq.s32.totalorder %v645_v7, %v642_v6  ;;  %v713_v6 = vmov %v1821_v6 }
 0x122   : >>> { %v754_v6 = vmov %v1821_v6 }
 0x123   : >>> { %v547_v25 = vmul.f32 %v1664_v18, %v546_v21  ;;  %v740_v6 = vmov %v1821_v6 }
 0x125   : >>> { %v548_v28 = vadd.f32 %v1664_v18, %v547_v25 }
 0x127   : >>> { %v552_v29 = vsel %vm551_vm10, %v1664_v18, %v548_v28  ;;  %v887_v28 = vld [vmem:[%s1894_s11] sm:$0x3]  ;;  %vm837_vm10 = vcmp.eq.s32.totalorder %v1823_v7, 0 }
 0x128   : >>> { %v557_v30 = vsel %vm554_vm11, %v556_v26, %v552_v29  ;;  %vm849_vm11 = vcmp.eq.s32.totalorder %v1823_v7, 1  ;;  %v716_v7 = vmov %v1823_v7 }
 0x129   : >>> { %v558_v31 = vmul.f32 %v557_v30, %v542_v27  ;;  %v757_v7 = vmov %v1823_v7 }
 0x12a   : >>> { %v743_v7 = vmov %v1823_v7 }
 0x12b   : >>> { %v560_v32 = vmul.f32 %v558_v31, %v558_v31  ;;  %vm559_vm14 = vcmp.ge.f32.partialorder %v558_v31, 0.0 }
 0x12d   : >>> { %v561_v33 = vadd.f32 1.0, %v560_v32 }
 0x12f   : >>> { %1665 = vrsqrt.f32 %v561_v33  ;;  %vm569_vm12 = vcmp.eq.f32.partialorder %v561_v33, inf  ;;  %v572_v40 = vand.u32 2147483648, %v561_v33  ;;  %vm571_vm13 = vcmp.eq.f32.partialorder %v561_v33, 0.0 }
 0x135   : >>> { %v1666_v34 = vpop.eup %1665 }
 0x136   : >>> { %v563_v35 = vmul.f32 %v1666_v34, %v561_v33 }
 0x138   : >>> { %v564_v36 = vmul.f32 %v1666_v34, %v563_v35 }
 0x13a   : >>> { %v565_v37 = vmul.f32 0.5, %v564_v36 }
 0x13c   : >>> { %v566_v38 = vsub.f32 1.5, %v565_v37 }
 0x13e   : >>> { %v567_v39 = vmul.f32 %v1666_v34, %v566_v38 }
 0x140   : >>> { %v568_v41 = vmul.f32 %v567_v39, %v561_v33 }
 0x142   : >>> { %v570_v42 = vsel %vm569_vm12, %v561_v33, %v568_v41  ;;  %v888_v33 = vld [vmem:[%s1897_s26] sm:$0x3]  ;;  %vm721_vm12 = vcmp.eq.s32.totalorder %v716_v7, %v713_v6  ;;  %v727_v6 = vmov %v1821_v6  ;;  %v730_v7 = vmov %v1823_v7 }
 0x143   : >>> { %v573_v43 = vsel %vm571_vm13, %v572_v40, %v570_v42  ;;  %vm762_vm13 = vcmp.eq.s32.totalorder %v757_v7, %v754_v6 }
 0x144   : >>> { %v574_v44 = vxor.u32 2147483648, %v573_v43 }
 0x146   : >>> { %v575_v45 = vsel %vm559_vm14, %v573_v43, %v574_v44  ;;  %vm747_vm14 = vcmp.eq.s32.totalorder %v743_v7, %v740_v6 }
 0x147   : >>> { %v576_v46 = vadd.f32 %v575_v45, %v558_v31 }
 0x149   : >>> { %1667 = vrcp.f32 %v576_v46  ;;  %v588_v52 = vand.u32 2147483648, %v576_v46  ;;  %vm582_vm15 = vweird.f32 %v576_v46  ;;  %v586_v54 = vand.u32 2147483647, %v576_v46 }
 0x14b   : >>> { %v589_v58 = vor.u32 1.1754944e-38, %v588_v52  ;;  %vm587_vm3 = vcmp.eq.f32.partialorder %v586_v54, 8.507059e+37 }
 0x14f   : >>> { %v1668_v49 = vpop.eup %1667 }
 0x150   : >>> { %v578_v51 = vmul.f32 %v1668_v49, %v576_v46  ;;  %vm583_vm0 = vweird.f32 %v1668_v49 }
 0x151   : >>> { %vm584_vm1 = vmor %vm582_vm15, %vm583_vm0  ;;  %vm734_vm15 = vcmp.eq.s32.totalorder %v730_v7, %v727_v6  ;;  %vm780_vm0 = vcmp.eq.s32.totalorder %v1821_v6, 1  ;;  %v377_v7 = vmov (%p470_p9), %v1823_v7 }
 0x152   : >>> { %v579_v53 = vsub.f32 1.0, %v578_v51 }
 0x154   : >>> { %v580_v57 = vmul.f32 %v1668_v49, %v579_v53 }
 0x156   : >>> { %v581_v59 = vadd.f32 %v1668_v49, %v580_v57 }
 0x158   : >>> { %v585_v60 = vsel %vm584_vm1, %v1668_v49, %v581_v59  ;;  %vm776_vm1 = vcmp.eq.s32.totalorder %v1821_v6, 0  ;;  %v374_v6 = vmov (%p470_p9), %v1821_v6 }
 0x159   : >>> { %v590_v61 = vsel %vm587_vm3, %v589_v58, %v585_v60  ;;  %vm389_vm3 = vcmp.eq.s32.totalorder (%p470_p9), %v377_v7, %v374_v6  ;;  %v393_v6 = vmov (%p470_p9), %v1821_v6  ;;  %v396_v7 = vmov (%p470_p9), %v1823_v7 }
 0x15a   : >>> { %v597_v62 = vsel %vm596_vm4, 0.0, %v590_v61  ;;  %v410_v6 = vmov (%p470_p9), %v1821_v6  ;;  %v413_v7 = vmov (%p470_p9), %v1823_v7 }
 0x15b   : >>> { %v598_v63 = vmul.f32 %v597_v62, %v597_v62  ;;  %v611_v0 = vmul.f32 %v597_v62, %v1872_v16  ;;  %v427_v6 = vmov (%p470_p9), %v1821_v6  ;;  %v430_v7 = vmov (%p470_p9), %v1823_v7 }
 0x15c   : >> { %vm442_vm4 = vcmp.eq.s32.totalorder (%p470_p9), %v430_v7, %v427_v6 }
 0x15d   : >>> { %v599_v1 = vadd.f32 1.0, %v598_v63  ;;  %v612_v2 = vsub.f32 %v537_v23, %v611_v0  ;;  %v614_v3 = vadd.f32 %v611_v0, %v541_v24  ;;  %v885_v23 = vld [vmem:[%s1887_s24] sm:$0x3] }
 0x15e   : >>> { %v886_v24 = vld [vmem:[%s1889_s23] sm:$0x3] }
 0x15f   : >>> { %1669 = vrsqrt.f32 %v599_v1  ;;  %616 = vst [vmem:[%s615_s22] sm:$0xff] %v612_v2  ;;  %vm606_vm5 = vweird.f32 %v599_v1  ;;  %s651_s22 = smov [#allocation32] }
 0x160   : >>> { %618 = vst [vmem:[%s617_s29] sm:$0xff] %v614_v3  ;;  %s653_s29 = smov [#allocation31] }
 0x165   : >>> { %v1670_v4 = vpop.eup %1669 }
 0x166   : >>> { %v601_v5 = vmul.f32 %v1670_v4, %v599_v1  ;;  %vm607_vm6 = vweird.f32 %v1670_v4 }
 0x167   : >>> { %vm608_vm7 = vmor %vm606_vm5, %vm607_vm6 }
 0x168   : >>> { %v602_v8 = vmul.f32 %v1670_v4, %v601_v5 }
 0x16a   : >>> { %v603_v9 = vmul.f32 0.5, %v602_v8 }
 0x16c   : >>> { %v604_v10 = vsub.f32 1.5, %v603_v9 }
 0x16e   : >>> { %v605_v11 = vmul.f32 %v1670_v4, %v604_v10 }
 0x170   : >>> { %v609_v12 = vsel %vm608_vm7, %v1670_v4, %v605_v11 }
 0x171   : >>> { %620 = vst [vmem:[%s619_s14] sm:$0xff] %v609_v12  ;;  %v610_v13 = vmul.f32 %v609_v12, %v597_v62  ;;  %s1881_s14 = smov [#allocation20] }
 0x172   : >>> { %v661_v26 = vld [vmem:[%s1881_s14] sm:$0x3] }
 0x173   : >>> { %622 = vst [vmem:[%s621_s15] sm:$0xff] %v610_v13  ;;  %s1883_s15 = smov [#allocation21] }
 0x174   : >>> { %v662_v20 = vld [vmem:[%s1883_s15] sm:$0x3] }
 0x178   : >>> { %v624_v14 = vld [vmem:[%s623_s16] ss:$0 sm:$0xff]  ;;  %s1885_s16 = smov [#allocation22] }
 0x179   : >>> { %v633_v15 = vsel %vm632_vm8, %v624_v14, 0.0  ;;  %v663_v21 = vld [vmem:[%s1885_s16] sm:$0x3] }
 0x17a   : >>> { %634 = vadd.xlane.f32.xlu0 %v633_v15  ;;  %v639_v16 = vld [vmem:[%s638_s21] ss:$0 sm:$0xff]  ;;  %s877_s21 = smov [#allocation31] }
 0x17b   : >>> { %v648_v17 = vsel %vm647_vm9, %v639_v16, 0.0 }
 0x182   : >>> { %649 = vadd.xlane.f32.xlu0 %v648_v17 }
 0x1ed   : >>> { %v635_v18 = vpop.xlane.xlu0 %634 }
 0x1ee   : >>> { %637 = vst [vmem:[%s636_s30] sm:$0xff] %v635_v18  ;;  %s1891_s30 = smov [#allocation23] }
 0x1ef   : >>> { %v664_v27 = vld [vmem:[%s1891_s30] sm:$0x3] }
 0x1f5   : >>> { %v650_v19 = vpop.xlane.xlu0 %649  ;;  %v654_v22 = vld [vmem:[%s653_s29] sm:$0xff]  ;;  %s681_s29 = smov [#allocation29] }
 0x1f6   : >>> { %652 = vst [vmem:[%s651_s22] sm:$0xff] %v650_v19  ;;  %s655_s22 = smov [#allocation32]  ;;  %v878_v25 = vld [vmem:[%s877_s21] sm:$0xff]  ;;  %v668_v29 = vmul.f32 %v662_v20, %v654_v22  ;;  %v672_v30 = vmul.f32 %v663_v21, %v654_v22  ;;  %v665_v50 = vmul.f32 %v661_v26, %v654_v22  ;;  %v675_v52 = vmul.f32 %v664_v27, %v654_v22  ;;  %s683_s21 = smov [#allocation30] }
 0x1f7   : >>> { %v889_v34 = vmul.f32 %v885_v23, %v878_v25  ;;  %v892_v35 = vmul.f32 %v886_v24, %v878_v25  ;;  %v896_v42 = vmul.f32 %v887_v28, %v878_v25  ;;  %v899_v46 = vmul.f32 %v888_v33, %v878_v25  ;;  %v682_v56 = vld [vmem:[%s681_s29] ss:$0 sm:$0xff]  ;;  %s750_s29 = smov [#allocation23] }
 0x1f8   : >>> { %v684_v57 = vld [vmem:[%s683_s21] ss:$0 sm:$0xff]  ;;  %s737_s21 = smov [#allocation22] }
 0x1fd   : >>> { %v656_v31 = vld [vmem:[%s655_s22] sm:$0xff]  ;;  %s1913_s22 = smov [#allocation22] }
 0x1fe   : >>> { %v880_v32 = vld [vmem:[%s879_s27] sm:$0xff]  ;;  %v669_v36 = vmul.f32 %v664_v27, %v656_v31  ;;  %v671_v37 = vmul.f32 %v661_v26, %v656_v31  ;;  %v666_v43 = vmul.f32 %v663_v21, %v656_v31  ;;  %v674_v47 = vmul.f32 %v662_v20, %v656_v31  ;;  %s1908_s27 = smov [#allocation12] }
 0x1ff   : >>> { %v890_v38 = vmul.f32 %v887_v28, %v880_v32  ;;  %v893_v39 = vmul.f32 %v888_v33, %v880_v32  ;;  %v895_v40 = vmul.f32 %v885_v23, %v880_v32  ;;  %v898_v41 = vmul.f32 %v886_v24, %v880_v32 }
 0x200   : >>> { %v670_v44 = vsub.f32 %v668_v29, %v669_v36  ;;  %v673_v45 = vadd.f32 %v672_v30, %v671_v37  ;;  %v667_v54 = vsub.f32 %v665_v50, %v666_v43  ;;  %v676_v55 = vadd.f32 %v675_v52, %v674_v47 }
 0x201   : >>> { %v891_v48 = vsub.f32 %v889_v34, %v890_v38  ;;  %v894_v49 = vsub.f32 %v892_v35, %v893_v39  ;;  %v897_v51 = vadd.f32 %v896_v42, %v895_v40  ;;  %v900_v53 = vadd.f32 %v899_v46, %v898_v41 }
 0x202   : >>> { %678 = vst [vmem:[%s1883_s15] sm:$0x3] %v670_v44  ;;  %s1915_s15 = smov [#allocation21] }
 0x203   : >>> { %679 = vst [vmem:[%s1885_s16] sm:$0x3] %v673_v45  ;;  %s906_s16 = smov [#allocation16] }
 0x204   : >>> { %901 = vst [vmem:[%s1887_s24] sm:$0x3] %v891_v48  ;;  %s1917_s24 = smov [#allocation14] }
 0x205   : >>> { %902 = vst [vmem:[%s1889_s23] sm:$0x3] %v894_v49  ;;  %s1922_s23 = smov [#allocation18] }
 0x206   : >>> { %903 = vst [vmem:[%s1894_s11] sm:$0x3] %v897_v51  ;;  %s688_s11 = smov [#allocation23] }
 0x207   : >>> { %904 = vst [vmem:[%s1897_s26] sm:$0x3] %v900_v53  ;;  %s1925_s26 = smov [#allocation20] }
 0x208   : >>> { %677 = vst [vmem:[%s1881_s14] sm:$0x3] %v667_v54  ;;  %s710_s14 = smov [#allocation27] }
 0x209   : >>> { %680 = vst [vmem:[%s1891_s30] sm:$0x3] %v676_v55  ;;  %v690_v59 = vld [vmem:[%s1915_s15] sm:$0x3]  ;;  %s751_s30 = smov [#allocation28] }
 0x20a   : >>> { %v691_v58 = vld [vmem:[%s1913_s22] sm:$0x3]  ;;  %v694_v10 = vmul.f32 %v690_v59, %v684_v57  ;;  %v697_v16 = vmul.f32 %v690_v59, %v682_v56 }
 0x20b   : >>> { %v907_v60 = vld [vmem:[%s1908_s27] ss:$0 sm:$0xff]  ;;  %v1591_v62 = vld [vmem:[%s1908_s27 + $0x1] ss:$0 sm:$0xff]  ;;  %v702_v13 = vmul.f32 %v691_v58, %v684_v57  ;;  %v699_v14 = vmul.f32 %v691_v58, %v682_v56 }
 0x20c   : >>> { %v1590_v61 = vld [vmem:[%s1908_s27 - $0x1] sm:$0x2]  ;;  %v1595_v2 = vld [vmem:[%s1917_s24 + $0x1] ss:$0 sm:$0xff] }
 0x20d   : >>> { %v914_v63 = vsel %vm837_vm10, %v907_v60, %v1590_v61  ;;  %v931_v0 = vld [vmem:[%s1917_s24] ss:$0 sm:$0xff]  ;;  %v1593_v4 = vld [vmem:[%s906_s16 + $0x1] sm:$0x1] }
 0x20e   : >>> { %v1594_v1 = vld [vmem:[%s1917_s24 - $0x1] sm:$0x2]  ;;  %917 = vst [vmem:[%s1908_s27] sm:$0x3] %v914_v63  ;;  %v926_v8 = vsel %vm849_vm11, %v1591_v62, %v1593_v4  ;;  %v1597_v9 = vld [vmem:[%s1922_s23 + $0x1] sm:$0x1] }
 0x20f   : >>> { %v918_v3 = vld [vmem:[%s906_s16] ss:$0 sm:$0xff]  ;;  %v938_v5 = vsel %vm837_vm10, %v931_v0, %v1594_v1  ;;  %v950_v12 = vsel %vm849_vm11, %v1595_v2, %v1597_v9 }
 0x210   : >>> { %1592 = vst [vmem:[%s1908_s27 + $0x1] sm:$0x1] %v918_v3  ;;  %v942_v11 = vld [vmem:[%s1922_s23] ss:$0 sm:$0xff]  ;;  %s709_s27 = smov [#allocation20] }
 0x211   : >>> { %928 = vst [vmem:[%s906_s16] sm:$0x3] %v926_v8  ;;  %v689_v15 = vld [vmem:[%s1925_s26] sm:$0x3]  ;;  %s1964_s16 = smov [#allocation23] }
 0x212   : >>> { %941 = vst [vmem:[%s1917_s24] sm:$0x3] %v938_v5  ;;  %v692_v17 = vld [vmem:[%s688_s11] sm:$0x3]  ;;  %v693_v18 = vmul.f32 %v689_v15, %v682_v56  ;;  %v696_v19 = vmul.f32 %v689_v15, %v684_v57 }
 0x213   : >>> { %1596 = vst [vmem:[%s1917_s24 + $0x1] sm:$0x1] %v942_v11  ;;  %v703_v20 = vmul.f32 %v692_v17, %v682_v56  ;;  %v700_v21 = vmul.f32 %v692_v17, %v684_v57  ;;  %v717_v26 = vld [vmem:[%s710_s14] ss:$0 sm:$0xff]  ;;  %s1966_s24 = smov [#allocation22]  ;;  %s1976_s14 = smov [#allocation21] }
 0x214   : >>> { %952 = vst [vmem:[%s1922_s23] sm:$0x3] %v950_v12  ;;  %v695_v22 = vsub.f32 %v693_v18, %v694_v10  ;;  %v698_v25 = vadd.f32 %v697_v16, %v696_v19  ;;  %v758_v27 = vld [vmem:[%s751_s30] ss:$0 sm:$0xff]  ;;  %s1712_s23 = smov 1   ;;  %s830_s30 = smov [#allocation22] }
 0x215   : >>> { %v704_v23 = vadd.f32 %v703_v20, %v702_v13  ;;  %v701_v24 = vsub.f32 %v699_v14, %v700_v21 }
 0x216   : >>> { %705 = vst [vmem:[%s1925_s26] sm:$0x3] %v695_v22  ;;  %s766_s26 = smov [#allocation21] }
 0x217   : >>> { %708 = vst [vmem:[%s688_s11] sm:$0x3] %v704_v23  ;;  %s1713_s11 = smov 127  }
 0x218   : >>> { %707 = vst [vmem:[%s1913_s22] sm:$0x3] %v701_v24  ;;  %s724_s22 = smov [#allocation21] }
 0x219   : >>> { %706 = vst [vmem:[%s1915_s15] sm:$0x3] %v698_v25  ;;  %s1962_s15 = smov [#allocation20] }
 0x21d   : >>> { %v718_v28 = vld [vmem:[%s709_s27] sm:$0x3] }
 0x21e   : >>> { %v759_v29 = vld [vmem:[%s750_s29] sm:$0x3]  ;;  %v722_v30 = vsel %vm721_vm12, %v717_v26, %v718_v28 }
 0x21f   : >>> { %v763_v31 = vsel %vm762_vm13, %v758_v27, %v759_v29  ;;  %v744_v32 = vld [vmem:[%s737_s21] sm:$0x3]  ;;  %723 = vst [vmem:[%s709_s27] sm:$0x3] %v722_v30  ;;  %s829_s27 = smov [#allocation20] }
 0x220   : >>> { %764 = vst [vmem:[%s750_s29] sm:$0x3] %v763_v31  ;;  %v748_v33 = vsel %vm747_vm14, 0.0, %v744_v32  ;;  %v731_v34 = vld [vmem:[%s724_s22] sm:$0x3]  ;;  %s854_s29 = smov [#allocation23] }
 0x221   : >>> { %749 = vst [vmem:[%s737_s21] sm:$0x3] %v748_v33  ;;  %v735_v35 = vsel %vm734_vm15, 0.0, %v731_v34  ;;  %s953_s21 = sadd.s32 (%p470_p9), 1, %s1705_s17  }
 0x222   : >>> { %736 = vst [vmem:[%s724_s22] sm:$0x3] %v735_v35  ;;  %s378_s22 = smov (%p470_p9), [#allocation20]  ;;  %p466_p10 = scmp.ge.s32.totalorder (%p470_p9), %s953_s21, 15 }
 0x223   : >> { %s2109_s17 = smov (%p470_p9), %s953_s21 }
 0x226   : >>> { %v771_v36 = vld [vmem:[%s1962_s15] sm:$0x3] }
 0x227   : >>> { %v799_v37 = vld [vmem:[%s1964_s16] sm:$0x3]  ;;  %772 = vrot.lane.b32.xlu1 %v771_v36, %s1712_s23 }
 0x228   : >>> { %800 = vrot.lane.b32.xlu0 %v799_v37, %s1712_s23  ;;  %v803_v38 = vld [vmem:[%s1966_s24] sm:$0x3] }
 0x229   : >>> { %804 = vrot.lane.b32.xlu2 %v803_v38, %s1712_s23  ;;  %v767_v39 = vld [vmem:[%s766_s26] sm:$0x3] }
 0x22a   : >>> { %v788_v40 = vld [vmem:[%s766_s26] sm:$0x3] }
 0x22b   : >>> { %v820_v41 = vld [vmem:[%s1964_s16] sm:$0x3] }
 0x22c   : >>> { %v770_v44 = vld [vmem:[%s1962_s15] sm:$0x3] }
 0x22d   : >>> { %v802_v55 = vld [vmem:[%s1966_s24] sm:$0x3] }
 0x22f   : >>> { %768 = vrot.lane.b32.xlu1 %v767_v39, %s1712_s23 }
 0x231   : >>> { %789 = vrot.lane.b32.xlu2 %v788_v40, %s1713_s11 }
 0x237   : >>> { %821 = vrot.lane.b32.xlu1 %v820_v41, %s1713_s11 }
 0x283   : >>> { %v805_v42 = vpop.permute.xlu2 %804 }
 0x284   : >>> { %v809_v51 = vsel %vm776_vm1, %v803_v38, %v805_v42 }
 0x28b   : >>> { %v790_v43 = vpop.permute.xlu2 %789 }
 0x28c   : >>> { %v794_v45 = vsel %vm780_vm0, %v770_v44, %v790_v43 }
 0x28d   : >>> { %796 = vst [vmem:[%s766_s26] sm:$0x3] %v794_v45 }
 0x294   : >>> { %v855_v46 = vld [vmem:[%s1976_s14] ss:$0 sm:$0xff]  ;;  %v1587_v48 = vld [vmem:[%s1976_s14 + $0x1] ss:$0 sm:$0xff] }
 0x295   : >>> { %v1586_v47 = vld [vmem:[%s1976_s14 - $0x1] sm:$0x2] }
 0x296   : >>> { %v862_v49 = vsel %vm837_vm10, %v855_v46, %v1586_v47 }
 0x297   : >>> { %865 = vst [vmem:[%s1976_s14] sm:$0x3] %v862_v49 }
 0x299   : >>> { %v773_v50 = vpop.permute.xlu1 %772 }
 0x29a   : >>> { %v801_v52 = vpop.permute.xlu0 %800  ;;  %v777_v56 = vsel %vm776_vm1, %v771_v36, %v773_v50 }
 0x29b   : >>> { %v813_v53 = vsel %vm780_vm0, %v801_v52, %v809_v51 }
 0x29c   : >>> { %v819_v54 = vsel %vm1451_vm2, %v813_v53, 0.0 }
 0x29d   : >>> { %827 = vst [vmem:[%s1966_s24] sm:$0x3] %v819_v54  ;;  %s431_s24 = smov (%p470_p9), [#allocation23] }
 0x2a1   : >>> { %v769_v57 = vpop.permute.xlu1 %768 }
 0x2a2   : >>> { %v781_v58 = vsel %vm780_vm0, %v769_v57, %v777_v56 }
 0x2a3   : >>> { %v787_v59 = vsel %vm1451_vm2, %v781_v58, 0.0 }
 0x2a4   : >>> { %795 = vst [vmem:[%s1962_s15] sm:$0x3] %v787_v59  ;;  %v1585_v61 = vld [vmem:[%s830_s30 + $0x1] sm:$0x1]  ;;  %v842_v4 = vld [vmem:[%s830_s30] ss:$0 sm:$0xff]  ;;  %s397_s15 = smov (%p470_p9), [#allocation21] }
 0x2a9   : >>> { %v822_v60 = vpop.permute.xlu1 %821 }
 0x2aa   : >>> { %v826_v62 = vsel %vm780_vm0, %v802_v55, %v822_v60 }
 0x2ab   : >>> { %v831_v63 = vld [vmem:[%s829_s27] ss:$0 sm:$0xff]  ;;  %v1583_v1 = vld [vmem:[%s829_s27 + $0x1] ss:$0 sm:$0xff]  ;;  %828 = vst [vmem:[%s1964_s16] sm:$0x3] %v826_v62  ;;  %s414_s16 = smov (%p470_p9), [#allocation22] }
 0x2ac   : >>> { %v1582_v0 = vld [vmem:[%s829_s27 - $0x1] sm:$0x2]  ;;  %v850_v3 = vsel %vm849_vm11, %v1583_v1, %v1585_v61 }
 0x2ad   : >>> { %v838_v2 = vsel %vm837_vm10, %v831_v63, %v1582_v0  ;;  %852 = vst [vmem:[%s830_s30] sm:$0x3] %v850_v3 }
 0x2ae   : >>> { %841 = vst [vmem:[%s829_s27] sm:$0x3] %v838_v2 }
 0x2af   : >>> { %1584 = vst [vmem:[%s829_s27 + $0x1] sm:$0x1] %v842_v4 }
 0x2b2   : >>> { %v866_v5 = vld [vmem:[%s854_s29] ss:$0 sm:$0xff]  ;;  %v1589_v8 = vld [vmem:[%s854_s29 + $0x1] sm:$0x1] }
 0x2b3   : >>> { %1588 = vst [vmem:[%s1976_s14 + $0x1] sm:$0x1] %v866_v5  ;;  %v874_v9 = vsel %vm849_vm11, %v1587_v48, %v1589_v8  ;;  %472 = sbr.rel (!%p470_p9) target bundleno = 254 (0xfe), region = 462 }
 0x2b4   : >>> { %876 = vst [vmem:[%s854_s29] sm:$0x3] %v874_v9  ;;  %v420_v14 = vld [vmem:[%s414_s16] sm:$0x3] (%p470_p9) }
 0x2b5   : >> { %v421_v18 = vsel (%p470_p9), %vm1451_vm2, %v420_v14, 0.0 }
 0x2b6   : >> { %v384_v10 = vld [vmem:[%s378_s22] sm:$0x3] (%p470_p9)  ;;  %v422_v20 = vmul.f32 (%p470_p9), %v421_v18, %v421_v18 }
 0x2b7   : >> { %v385_v12 = vsel (%p470_p9), %vm1451_vm2, %v384_v10, 0.0 }
 0x2b8   : >> { %v386_v16 = vmul.f32 %v385_v12, %v385_v12 }
 0x2ba   : >> { %v403_v11 = vld [vmem:[%s397_s15] sm:$0x3]  ;;  %v390_v23 = vsel %vm389_vm3, 0.0, %v386_v16 }
 0x2bb   : >> { %v404_v13 = vsel %vm1451_vm2, %v403_v11, 0.0  ;;  %v437_v15 = vld [vmem:[%s431_s24] sm:$0x3] }
 0x2bc   : >> { %v405_v17 = vmul.f32 %v404_v13, %v404_v13  ;;  %v438_v19 = vsel %vm1451_vm2, %v437_v15, 0.0 }
 0x2bd   : >> { %v439_v22 = vmul.f32 %v438_v19, %v438_v19 }
 0x2be   : >> { %v407_v21 = vadd.f32 %v405_v17, %v386_v16  ;;  %v406_v25 = vadd.f32 %v405_v17, %v390_v23 }
 0x2bf   : >> { %v443_v28 = vsel %vm442_vm4, 0.0, %v439_v22 }
 0x2c0   : >> { %v424_v24 = vadd.f32 %v422_v20, %v407_v21  ;;  %v423_v27 = vadd.f32 %v422_v20, %v406_v25 }
 0x2c2   : >> { %v445_v26 = vadd.f32 %v439_v22, %v424_v24  ;;  %v444_v29 = vadd.f32 %v443_v28, %v423_v27 }
 0x2c4   : >> { %446 = vadd.xlane.f32.xlu0 %v445_v26 }
 0x2cc   : >> { %454 = vadd.xlane.f32.xlu0 %v444_v29 }
 0x337   : >> { %v447_v30 = vpop.xlane.xlu0 %446 }
 0x338   : >> { %v448_v31 = vrot.slane %v447_v30, 4 }
 0x33a   : >> { %v449_v32 = vadd.f32 %v448_v31, %v447_v30 }
 0x33c   : >> { %v450_v33 = vrot.slane %v449_v32, 2 }
 0x33e   : >> { %v451_v37 = vadd.f32 %v450_v33, %v449_v32 }
 0x33f   : >> { %v455_v34 = vpop.xlane.xlu0 %454 }
 0x340   : >> { %v456_v35 = vrot.slane %v455_v34, 4  ;;  %v452_v40 = vrot.slane %v451_v37, 1 }
 0x342   : >> { %v457_v36 = vadd.f32 %v456_v35, %v455_v34  ;;  %v453_v43 = vadd.f32 %v452_v40, %v451_v37 }
 0x344   : >> { %v458_v38 = vrot.slane %v457_v36, 2 }
 0x346   : >> { %v459_v39 = vadd.f32 %v458_v38, %v457_v36 }
 0x348   : >> { %v460_v41 = vrot.slane %v459_v39, 1 }
 0x34a   : >> { %v461_v42 = vadd.f32 %v460_v41, %v459_v39 }
 0x34c   : >> { %1616 = vpush %v461_v42 }
 0x34d   : >> { %1618 = vpush %v453_v43 }
 0x37d   : >> { %s1617_s20 = spop %1616 }
 0x37e   : >> { %s1619_s23 = spop %1618 }
 0x37f   : >> { %s464_s26 = smul.f32 1e-10, %s1619_s23 }
 0x381   : >> { %p465_p11 = scmp.le.f32.partialorder %s1617_s20, %s464_s26 }
 0x383   : >> { %p467_p12 = por %p466_p10, %p465_p11 }
 0x385   : > { %955 = sbr.rel (!%p467_p12) target bundleno = 253 (0xfd), region = 473 }
 0x38a PF: > { %s960_s11 = smov [#allocation20]  ;;  %v964_v6 = vmov %v1821_v6  ;;  %v967_v7 = vmov %v1823_v7  ;;  %v1014_v44 = vld [vmem:[#allocation12] sm:$0x3]  ;;  %v1020_v45 = vld [vmem:[#allocation14] sm:$0x3]  ;;  %s980_s17 = smov [#allocation23] }
 0x38b   : > { %v984_v6 = vmov %v1821_v6  ;;  %v987_v7 = vmov %v1823_v7  ;;  %v968_v46 = vld [vmem:[%s960_s11] sm:$0x3]  ;;  %vm971_vm5 = vcmp.eq.s32.totalorder %v967_v7, %v964_v6  ;;  %1017 = vst [vmem:[%s297_s25] sm:$0x3] %v1014_v44  ;;  %s2110_s14 = scalar_lea.vmem [#allocation15], %s1817_s28  ;;  %s2111_s30 = scalar_lea.vmem [#allocation17], %s1817_s28 }
 0x38c   : > { %vm991_vm6 = vcmp.eq.s32.totalorder %v987_v7, %v984_v6  ;;  %v972_v47 = vsel %vm971_vm5, %v968_v46, 0.0  ;;  %1023 = vst [vmem:[%s2110_s14] sm:$0x3] %v1020_v45  ;;  %v1026_v48 = vld [vmem:[#allocation16] sm:$0x3]  ;;  %v1032_v51 = vld [vmem:[#allocation18] sm:$0x3] }
 0x38d   : > { %v973_v49 = vrot.slane %v972_v47, 4  ;;  %v988_v50 = vld [vmem:[%s980_s17] sm:$0x3]  ;;  %1029 = vst [vmem:[%s2111_s30] sm:$0x3] %v1026_v48  ;;  %s2112_s27 = scalar_lea.vmem [#allocation19], %s1817_s28  ;;  %s956_s29 = sand.u32 7, %s1780_s12  }
 0x38e   : > { %v992_v52 = vsel %vm991_vm6, %v988_v50, 0.0  ;;  %1035 = vst [vmem:[%s2112_s27] sm:$0x3] %v1032_v51  ;;  %s957_s21 = scalar_lea.vmem [#allocation8], %s956_s29  ;;  %s959_s22 = scalar_lea.vmem [#allocation10], %s956_s29 }
 0x38f   : > { %v974_v53 = vadd.f32 %v973_v49, %v972_v47  ;;  %v993_v54 = vrot.slane %v992_v52, 4  ;;  %s961_s21 = smov %s957_s21  ;;  %s981_s22 = smov %s959_s22 }
 0x390   : > { %s2113_s15 = scalar_lea.vmem [#allocation9], %s1819_s18  ;;  %s2114_s16 = scalar_lea.vmem [#allocation11], %s1819_s18 }
 0x391   : > { %v975_v55 = vrot.slane %v974_v53, 2  ;;  %v994_v6 = vadd.f32 %v993_v54, %v992_v52  ;;  %s1063_s24 = sshrl.u32 (%p1794_p3), %s1780_s12, 3  ;;  %s2115_s20 = scalar_lea.vmem (%p1794_p3), [#allocation9], %s1819_s18 }
 0x392   : > { %s1604_s23 = sshll.u32 (%p1794_p3), %s1063_s24, 1 }
 0x393   : > { %v976_v7 = vadd.f32 %v975_v55, %v974_v53  ;;  %v995_v56 = vrot.slane %v994_v6, 2  ;;  %s1065_s17 = scalar_lea.vmem (%p1794_p3), %s2101_s4, %s1604_s23 }
 0x395   : > { %v977_v57 = vrot.slane %v976_v7, 1  ;;  %v996_v58 = vadd.f32 %v995_v56, %v994_v6 }
 0x397   : > { %v978_v59 = vadd.f32 %v977_v57, %v976_v7  ;;  %v997_v60 = vrot.slane %v996_v58, 1 }
 0x399   : > { %979 = vst [vmem:[%s961_s21] sm:$0x1] %v978_v59  ;;  %v998_v61 = vadd.f32 %v997_v60, %v996_v58 }
 0x39b   : > { %999 = vst [vmem:[%s981_s22] sm:$0x1] %v998_v61 }
 0x39f   : > { %1062 = sbr.rel (!%p1794_p3) target bundleno = 938 (0x3aa), region = 158 }
 0x3a0   : > { %v1002_v62 = vld [vmem:[#allocation8] sm:$0x3] }
 0x3a1   : > { %1005 = vst [vmem:[%s2113_s15] sm:$0x3] %v1002_v62 }
 0x3a2   : > { %v1008_v63 = vld [vmem:[#allocation10] sm:$0x3] }
 0x3a3   : > { %1011 = vst [vmem:[%s2114_s16] sm:$0x3] %v1008_v63 }
 0x3a8   : > { %v1082_v0 = vld [vmem:[%s2115_s20] sm:$0x3] }
 0x3a9   : > { %1083 = vst [vmem:[%s1065_s17] sm:$0x3] %v1082_v0 }
 0x3aa PF: > { %1101 = sbr.rel (!%p1794_p3) target bundleno = 946 (0x3b2), region = 192  ;;  %s1102_s14 = sshrl.u32 (%p1794_p3), %s1780_s12, 3 }
 0x3ab   : > { %s2116_s30 = scalar_lea.vmem (%p1794_p3), [#allocation11], %s1819_s18  ;;  %s1605_s27 = sshll.u32 (%p1794_p3), %s1102_s14, 1 }
 0x3ac   : > { %s1104_s22 = scalar_lea.vmem (%p1794_p3), %s2102_s5, %s1605_s27 }
 0x3b0   : > { %v1121_v1 = vld [vmem:[%s2116_s30] sm:$0x3] }
 0x3b1   : > { %1122 = vst [vmem:[%s1104_s22] sm:$0x3] %v1121_v1 }
 0x3b2 PF: > { %s1606_s15 = sshll.u32 %s1780_s12, 1  ;;  %v1156_v2 = vld [vmem:[%s297_s25] sm:$0x3]  ;;  %s2117_s19 = scalar_lea.vmem [#allocation15], %s1817_s28 }
 0x3b3   : > { %v1191_v3 = vld [vmem:[%s2117_s19] sm:$0x3]  ;;  %s1139_s24 = scalar_lea.vmem %s2103_s6, %s1606_s15  ;;  %s1174_s26 = scalar_lea.vmem %s2104_s7, %s1606_s15 }
 0x3b4   : > { %s2118_s11 = scalar_lea.vmem [#allocation17], %s1817_s28  ;;  %1157 = vst [vmem:[%s1139_s24] sm:$0x3] %v1156_v2  ;;  %s1209_s30 = scalar_lea.vmem %s2105_s8, %s1606_s15 }
 0x3b5   : > { %v1226_v4 = vld [vmem:[%s2118_s11] sm:$0x3]  ;;  %s1244_s25 = scalar_lea.vmem %s2106_s9, %s1606_s15  ;;  %s2119_s29 = scalar_lea.vmem [#allocation19], %s1817_s28  ;;  %1192 = vst [vmem:[%s1174_s26] sm:$0x3] %v1191_v3 }
 0x3b6   : > { %v1261_v5 = vld [vmem:[%s2119_s29] sm:$0x3]  ;;  %1227 = vst [vmem:[%s1209_s30] sm:$0x3] %v1226_v4 }
 0x3b7   : > { %1262 = vst [vmem:[%s1244_s25] sm:$0x3] %v1261_v5 }
 0x3b8 PF: > { %s2120_s21 = sld [smem:[#allocation33_spill]]  ;;  %p13_p13 = scmp.ge.s32.totalorder %s1783_s13, 4  }
 0x3b9   : > { %s2121_s30 = smov %s1697_s10  ;;  %s2123_s11 = smov %s1783_s13 }
 0x3ba   :  { %15 = sbr.rel (!%p13_p13) target bundleno = 2 (0x2), region = 484 }
 0x3be   : > { %s2122_s10 = smov %s2120_s21 }

// kernel: _macenko_forward.4
= control target key start
LH: loop header
LB: loop body
LE: loop exit
PB: predicated region body
PF: predicated region fallthrough
CT: control target
= control target key end

     0   :  { %s736_s6 = smov 0   ;;  %s738_s7 = smov 0   ;;  %s913_s0 = inlined_call_operand.vmem [shape: s8[2,3,64,128], index: 0, kind: input, shape index: {}]   ;;  %s914_s1 = inlined_call_operand.vmem [shape: f32[2,2,16,128], index: 1, kind: output, shape index: {}]  }
   0x1   :  { %s740_s8 = smov 0   ;;  %s742_s9 = smov 0  }
   0x2   :  { %s744_s10 = smov 0   ;;  %s746_s11 = smov 0  }
   0x3   :  { %s748_s12 = smov 0  }
   0x4 LB: > { %s26_s13 = sadd.s32 1, %s715_s10  ;;  %s30_s14 = sadd.s32 1, %s719_s11  ;;  %s723_s12 = sphi %s748_s12, %s11_s12   ;;  %s719_s11 = sphi %s746_s11, %s920_s11   ;;  %s715_s10 = sphi %s744_s10, %s919_s10   ;;  %s711_s9 = sphi %s742_s9, %s918_s9   ;;  %s707_s8 = sphi %s740_s8, %s917_s8   ;;  %s703_s7 = sphi %s738_s7, %s916_s7   ;;  %s699_s6 = sphi %s736_s6, %s915_s6  }
   0x5   : > { %p28_p0 = scmp.ge.s32.totalorder %s26_s13, 2  ;;  %p48_p1 = scmp.ne.s32.totalorder %s703_s7, %s699_s6 }
   0x6   : > { %p49_p2 = scmp.eq.s32.totalorder %s723_s12, 0  ;;  %s41_s18 = sadd.s32 1, %s703_s7 }
   0x7   : > { %s922_s13 = smov (%p28_p0, %s26_s13), 0  ;;  %s924_s14 = smov (!%p28_p0, %s30_s14), %s719_s11 }
   0x8   : > { %p50_p3 = por %p49_p2, %p48_p1  ;;  %p32_p4 = scmp.ge.s32.totalorder %s924_s14, 2 }
   0x9   : > { %s37_s15 = ssub.s32 %s715_s10, %s922_s13  ;;  %p571_p6 = scmp.ge.s32.totalorder %s723_s12, 4 }
   0xa   : > { %s926_s14 = smov (%p32_p4, %s924_s14), 0 }
   0xb   : > { %s36_s16 = ssub.s32 %s719_s11, %s926_s14  ;;  %102 = sbr.rel (%p571_p6) target bundleno = 26 (0x1a), region = 16 }
   0xc   : > { %s38_s17 = sor.u32 %s37_s15, %s36_s16 }
   0xd   : > { %p39_p5 = scmp.eq.s32.totalorder %s38_s17, 0 }
   0xf   : > { %s787_s19 = scalar_select %p39_p5, %s703_s7, %s41_s18  }
  0x10   : > { %105 = sbr.rel (!%p50_p3) target bundleno = 26 (0x1a), region = 20  ;;  %s107_s20 = sand.u32 (%p50_p3), 1, %s703_s7  }
  0x11   : > { %s586_s21 = smul.u32 (%p50_p3), 6, %s719_s11 }
  0x12   : > { %s585_s22 = smul.u32 (%p50_p3), 24, %s107_s20 }
  0x13   : > { %s112_s23 = sadd.s32 (%p50_p3), %s715_s10, %s586_s21 }
  0x14   : > { %s572_s24 = sshll.u32 (%p50_p3), %s112_s23, 3  ;;  %s109_s28 = scalar_lea.vmem (%p50_p3), [#allocation2], %s585_s22 }
  0x15   : > { %s114_s27 = scalar_lea.vmem %s913_s0, %s572_s24 }
  0x16   : > { %v147_v0 = vld [vmem:[%s114_s27] sm:$0xff]  ;;  %v149_v1 = vld [vmem:[%s114_s27 + $0x10] sm:$0xff] }
  0x17   : > { %v151_v2 = vld [vmem:[%s114_s27 + $0x20] sm:$0xff]  ;;  %148 = vst [vmem:[%s109_s28] sm:$0xff] %v147_v0 }
  0x18   : > { %150 = vst [vmem:[%s109_s28 + $0x8] sm:$0xff] %v149_v1 }
  0x19   : > { %152 = vst [vmem:[%s109_s28 + $0x10] sm:$0xff] %v151_v2 }
  0x1a PF: > { %p573_p7 = scmp.ge.s32.totalorder %s723_s12, 1  ;;  %p157_p8 = scmp.lt.s32.totalorder %s723_s12, 5 }
  0x1c   : > { %p158_p9 = pnand %p573_p7, %p157_p8 }
  0x1d   : > { %s164_s29 = sand.u32 (!%p158_p9), 1, %s699_s6   ;;  %p188_p10 = scmp.lt.s32.totalorder (!%p158_p9), %s711_s9, 1 }
  0x1e   : > { %161 = sbr.rel (%p158_p9) target bundleno = 113 (0x71), region = 58  ;;  %p190_p11 = scmp.lt.s32.totalorder (!%p158_p9), %s707_s8, 1 }
  0x1f   : > { %s587_s30 = smul.u32 (!%p158_p9), 24, %s164_s29 }
  0x21   : > { %s166_s2 = scalar_lea.vmem (!%p158_p9), [#allocation2], %s587_s30 }
  0x23   : > { %v203_v3 = vld [vmem:[%s166_s2] sm:$0xff]  ;;  %v577_v4 = vld [vmem:[%s166_s2 + $0x8] sm:$0xff]  ;;  %v578_v28 = vld [vmem:[%s166_s2 + $0x10] sm:$0xff]  ;;  %s928_s9 = smov (!%p188_p10, %s711_s9), 1  ;;  %s930_s8 = smov (!%p190_p11, %s707_s8), 1  ;;  %vm450_vm4 = vcmask 1040384  }
  0x24   : > { %v204_v5 = vunpack.c.0.s8 %v203_v3  ;;  %v205_v6 = vunpack.c.1.s8 %v203_v3  ;;  %v206_v7 = vunpack.c.2.s8 %v203_v3  ;;  %v207_v8 = vunpack.c.3.s8 %v203_v3  ;;  %s574_s3 = sshll.u32 %s930_s8, 1  ;;  %s575_s4 = sshll.u32 %s928_s9, 2 }
  0x25   : > { %v234_v9 = vunpack.c.0.s8 %v577_v4  ;;  %v235_v10 = vunpack.c.1.s8 %v577_v4  ;;  %v236_v11 = vunpack.c.2.s8 %v577_v4  ;;  %v237_v12 = vunpack.c.3.s8 %v577_v4  ;;  %s194_s5 = sadd.s32 %s575_s4, %s574_s3 }
  0x26   : > { %v208_v13 = vcvt.s32.f32 %v204_v5  ;;  %v209_v14 = vcvt.s32.f32 %v205_v6  ;;  %v210_v15 = vcvt.s32.f32 %v206_v7  ;;  %v211_v16 = vcvt.s32.f32 %v207_v8  ;;  %s576_s6 = sshll.u32 %s194_s5, 3 }
  0x27   : > { %v238_v17 = vcvt.s32.f32 %v234_v9  ;;  %v239_v18 = vcvt.s32.f32 %v235_v10  ;;  %v240_v19 = vcvt.s32.f32 %v236_v11  ;;  %v241_v20 = vcvt.s32.f32 %v237_v12  ;;  %s196_s15 = scalar_lea.vmem %s914_s1, %s576_s6 }
  0x28   : > { %v212_v21 = vadd.f32 128.0, %v208_v13  ;;  %v213_v22 = vadd.f32 128.0, %v209_v14  ;;  %v214_v23 = vadd.f32 128.0, %v210_v15  ;;  %v215_v24 = vadd.f32 128.0, %v211_v16 }
  0x29   : > { %v242_v25 = vadd.f32 128.0, %v238_v17  ;;  %v243_v26 = vadd.f32 128.0, %v239_v18  ;;  %v244_v27 = vadd.f32 128.0, %v240_v19  ;;  %v245_v33 = vadd.f32 128.0, %v241_v20 }
  0x2a   : > { %v216_v29 = vmax.f32 %v212_v21, 1.0  ;;  %v217_v30 = vmax.f32 %v213_v22, 1.0  ;;  %v218_v31 = vmax.f32 %v214_v23, 1.0  ;;  %v219_v32 = vmax.f32 %v215_v24, 1.0 }
  0x2b   : > { %v246_v34 = vmax.f32 %v242_v25, 1.0  ;;  %v264_v35 = vunpack.c.0.s8 %v578_v28  ;;  %v265_v36 = vunpack.c.1.s8 %v578_v28  ;;  %v266_v37 = vunpack.c.2.s8 %v578_v28 }
  0x2c   : > { %645 = vlog2.f32 %v216_v29  ;;  %v247_v38 = vmax.f32 %v243_v26, 1.0  ;;  %v248_v39 = vmax.f32 %v244_v27, 1.0  ;;  %v267_v40 = vunpack.c.3.s8 %v578_v28 }
  0x2d   : > { %647 = vlog2.f32 %v217_v30  ;;  %v268_v41 = vcvt.s32.f32 %v264_v35  ;;  %v269_v42 = vcvt.s32.f32 %v265_v36  ;;  %v270_v43 = vcvt.s32.f32 %v266_v37 }
  0x2e   : > { %649 = vlog2.f32 %v218_v31  ;;  %v249_v44 = vmax.f32 %v245_v33, 1.0  ;;  %v271_v45 = vcvt.s32.f32 %v267_v40  ;;  %vm452_vm5 = vcmask 1041408  }
  0x2f   : > { %651 = vlog2.f32 %v219_v32  ;;  %v272_v46 = vadd.f32 128.0, %v268_v41  ;;  %v273_v47 = vadd.f32 128.0, %v269_v42  ;;  %v274_v48 = vadd.f32 128.0, %v270_v43 }
  0x30   : > { %653 = vlog2.f32 %v246_v34  ;;  %v275_v49 = vadd.f32 128.0, %v271_v45  ;;  %v725_v34 = vmov 0.0   ;;  %vm454_vm6 = vcmask 1042432  }
  0x31   : > { %655 = vlog2.f32 %v247_v38  ;;  %v276_v51 = vmax.f32 %v272_v46, 1.0  ;;  %v277_v52 = vmax.f32 %v273_v47, 1.0  ;;  %v278_v53 = vmax.f32 %v274_v48, 1.0 }
  0x32   : > { %v646_v50 = vpop.eup %645  ;;  %657 = vlog2.f32 %v248_v39  ;;  %v279_v56 = vmax.f32 %v275_v49, 1.0  ;;  %vm456_vm7 = vcmask 1043456   ;;  %vm458_vm8 = vcmask 1044480  }
  0x33   : > { %v648_v54 = vpop.eup %647  ;;  %v221_v55 = vmul.f32 0.6931472, %v646_v50  ;;  %659 = vlog2.f32 %v249_v44  ;;  %vm460_vm9 = vcmask 1045504   ;;  %vm462_vm10 = vcmask 1046528  }
  0x34   : > { %v650_v57 = vpop.eup %649  ;;  %v223_v58 = vmul.f32 0.6931472, %v648_v54  ;;  %661 = vlog2.f32 %v276_v51 }
  0x35   : > { %v652_v59 = vpop.eup %651  ;;  %v225_v60 = vmul.f32 0.6931472, %v650_v57  ;;  %663 = vlog2.f32 %v277_v52  ;;  %v228_v0 = vsub.f32 5.480639, %v221_v55 }
  0x36   : > { %v654_v61 = vpop.eup %653  ;;  %v227_v62 = vmul.f32 0.6931472, %v652_v59  ;;  %665 = vlog2.f32 %v278_v53  ;;  %v229_v3 = vsub.f32 5.480639, %v223_v58 }
  0x37   : > { %v656_v63 = vpop.eup %655  ;;  %v251_v1 = vmul.f32 0.6931472, %v654_v61  ;;  %667 = vlog2.f32 %v279_v56  ;;  %v230_v6 = vsub.f32 5.480639, %v225_v60 }
  0x38   : > { %v658_v2 = vpop.eup %657  ;;  %v253_v4 = vmul.f32 0.6931472, %v656_v63  ;;  %v231_v10 = vsub.f32 5.480639, %v227_v62 }
  0x39   : > { %v660_v5 = vpop.eup %659  ;;  %v255_v7 = vmul.f32 0.6931472, %v658_v2  ;;  %v258_v8 = vsub.f32 5.480639, %v251_v1 }
  0x3a   : > { %v662_v9 = vpop.eup %661  ;;  %v257_v11 = vmul.f32 0.6931472, %v660_v5  ;;  %v259_v12 = vsub.f32 5.480639, %v253_v4 }
  0x3b   : > { %v664_v13 = vpop.eup %663  ;;  %v260_v14 = vsub.f32 5.480639, %v255_v7  ;;  %v281_v15 = vmul.f32 0.6931472, %v662_v9  ;;  %v292_v16 = vmin.f32 %v228_v0, %v258_v8 }
  0x3c   : > { %v666_v17 = vpop.eup %665  ;;  %v261_v18 = vsub.f32 5.480639, %v257_v11  ;;  %v283_v19 = vmul.f32 0.6931472, %v664_v13  ;;  %v293_v20 = vmin.f32 %v229_v3, %v259_v12 }
  0x3d   : > { %v668_v21 = vpop.eup %667  ;;  %v285_v22 = vmul.f32 0.6931472, %v666_v17  ;;  %v288_v23 = vsub.f32 5.480639, %v281_v15  ;;  %v294_v24 = vmin.f32 %v230_v6, %v260_v14 }
  0x3e   : > { %v287_v25 = vmul.f32 0.6931472, %v668_v21  ;;  %v799_v26 = vsub.f32 5.480639, %v283_v19  ;;  %v295_v27 = vmin.f32 %v231_v10, %v261_v18 }
  0x3f   : > { %v801_v28 = vsub.f32 5.480639, %v285_v22  ;;  %v296_v29 = vmin.f32 %v292_v16, %v288_v23 }
  0x40   : > { %v803_v30 = vsub.f32 5.480639, %v287_v25  ;;  %v297_v31 = vmin.f32 %v293_v20, %v799_v26 }
  0x41   : > { %v298_v32 = vmin.f32 %v294_v24, %v801_v28  ;;  %vm300_vm0 = vcmp.ge.f32.partialorder %v296_v29, 0.15 }
  0x42   : > { %v299_v33 = vmin.f32 %v295_v27, %v803_v30  ;;  %vm301_vm1 = vcmp.ge.f32.partialorder %v297_v31, 0.15  ;;  %v808_v35 = vsel %vm300_vm0, 1.0, %v725_v34 }
  0x43   : > { %vm302_vm2 = vcmp.ge.f32.partialorder %v298_v32, 0.15  ;;  %v810_v36 = vsel %vm301_vm1, 1.0, %v725_v34  ;;  %v312_v37 = vmul.f32 %v808_v35, %v228_v0  ;;  %v316_v38 = vmul.f32 %v808_v35, %v258_v8 }
  0x44   : > { %vm303_vm3 = vcmp.ge.f32.partialorder %v299_v33, 0.15  ;;  %v814_v39 = vsel %vm302_vm2, 1.0, %v725_v34  ;;  %v313_v40 = vmul.f32 %v810_v36, %v229_v3  ;;  %v317_v41 = vmul.f32 %v810_v36, %v259_v12 }
  0x45   : > { %v818_v42 = vsel %vm303_vm3, 1.0, %v725_v34  ;;  %v314_v43 = vmul.f32 %v814_v39, %v230_v6  ;;  %v318_v44 = vmul.f32 %v814_v39, %v260_v14  ;;  %v823_v45 = vmul.f32 %v808_v35, %v288_v23 }
  0x46   : > { %v826_v46 = vmul.f32 %v818_v42, %v231_v10  ;;  %v829_v47 = vmul.f32 %v818_v42, %v261_v18  ;;  %v833_v48 = vmul.f32 %v810_v36, %v799_v26  ;;  %v837_v49 = vmul.f32 %v814_v39, %v801_v28 }
  0x47   : > { %v841_v50 = vmul.f32 %v818_v42, %v803_v30  ;;  %v324_v51 = vmul.f32 %v312_v37, %v228_v0  ;;  %v325_v52 = vmul.f32 %v313_v40, %v229_v3  ;;  %v326_v53 = vmul.f32 %v314_v43, %v230_v6 }
  0x48   : > { %v327_v54 = vmul.f32 %v826_v46, %v231_v10  ;;  %v337_v55 = vmul.f32 %v312_v37, %v258_v8  ;;  %v338_v56 = vmul.f32 %v313_v40, %v259_v12  ;;  %v339_v57 = vmul.f32 %v314_v43, %v260_v14 }
  0x49   : > { %v328_v58 = vadd.f32 %v325_v52, %v324_v51  ;;  %v340_v59 = vmul.f32 %v826_v46, %v261_v18  ;;  %v350_v60 = vmul.f32 %v312_v37, %v288_v23  ;;  %v351_v61 = vmul.f32 %v313_v40, %v799_v26 }
  0x4a   : > { %v341_v62 = vadd.f32 %v338_v56, %v337_v55  ;;  %v352_v63 = vmul.f32 %v314_v43, %v801_v28  ;;  %v353_v1 = vmul.f32 %v826_v46, %v803_v30  ;;  %v363_v0 = vmul.f32 %v316_v38, %v258_v8 }
  0x4b   : > { %v329_v2 = vadd.f32 %v328_v58, %v326_v53  ;;  %v354_v3 = vadd.f32 %v351_v61, %v350_v60  ;;  %v364_v4 = vmul.f32 %v317_v41, %v259_v12  ;;  %v365_v5 = vmul.f32 %v318_v44, %v260_v14 }
  0x4c   : > { %v342_v6 = vadd.f32 %v341_v62, %v339_v57  ;;  %v366_v7 = vmul.f32 %v829_v47, %v261_v18  ;;  %v376_v9 = vmul.f32 %v316_v38, %v288_v23  ;;  %v377_v10 = vmul.f32 %v317_v41, %v799_v26 }
  0x4d   : > { %v330_v11 = vadd.f32 %v329_v2, %v327_v54  ;;  %v355_v13 = vadd.f32 %v354_v3, %v352_v63  ;;  %v367_v15 = vadd.f32 %v364_v4, %v363_v0  ;;  %v378_v16 = vmul.f32 %v318_v44, %v801_v28 }
  0x4e   : > { %v343_v17 = vadd.f32 %v342_v6, %v340_v59  ;;  %v379_v19 = vmul.f32 %v829_v47, %v803_v30  ;;  %v380_v8 = vadd.f32 %v377_v10, %v376_v9  ;;  %v389_v20 = vmul.f32 %v823_v45, %v288_v23 }
  0x4f   : > { %v331_v12 = vrot.slane %v330_v11, 4  ;;  %v356_v14 = vadd.f32 %v355_v13, %v353_v1  ;;  %v368_v21 = vadd.f32 %v367_v15, %v365_v5  ;;  %v390_v18 = vmul.f32 %v833_v48, %v799_v26 }
  0x50   : > { %v344_v22 = vrot.slane %v343_v17, 4  ;;  %v381_v24 = vadd.f32 %v380_v8, %v378_v16  ;;  %v391_v25 = vmul.f32 %v837_v49, %v801_v28  ;;  %v392_v27 = vmul.f32 %v841_v50, %v803_v30 }
  0x51   : > { %v332_v29 = vadd.f32 %v331_v12, %v330_v11  ;;  %v357_v31 = vrot.slane %v356_v14, 4  ;;  %v369_v32 = vadd.f32 %v368_v21, %v366_v7  ;;  %v393_v23 = vadd.f32 %v390_v18, %v389_v20 }
  0x52   : > { %v345_v33 = vadd.f32 %v344_v22, %v343_v17  ;;  %v382_v34 = vadd.f32 %v381_v24, %v379_v19  ;;  %v402_v51 = vadd.f32 %v313_v40, %v312_v37  ;;  %v411_v52 = vadd.f32 %v317_v41, %v316_v38 }
  0x53   : > { %v333_v53 = vrot.slane %v332_v29, 2  ;;  %v358_v26 = vadd.f32 %v357_v31, %v356_v14  ;;  %v370_v54 = vrot.slane %v369_v32, 4  ;;  %v394_v55 = vadd.f32 %v393_v23, %v391_v25 }
  0x54   : > { %v346_v56 = vrot.slane %v345_v33, 2  ;;  %v383_v57 = vrot.slane %v382_v34, 4  ;;  %v403_v28 = vadd.f32 %v402_v51, %v314_v43  ;;  %v412_v30 = vadd.f32 %v411_v52, %v318_v44 }
  0x55   : > { %v334_v58 = vadd.f32 %v333_v53, %v332_v29  ;;  %v359_v59 = vrot.slane %v358_v26, 2  ;;  %v371_v60 = vadd.f32 %v370_v54, %v369_v32  ;;  %v395_v61 = vadd.f32 %v394_v55, %v392_v27 }
  0x56   : > { %v347_v37 = vadd.f32 %v346_v56, %v345_v33  ;;  %v384_v38 = vadd.f32 %v383_v57, %v382_v34  ;;  %v404_v40 = vadd.f32 %v403_v28, %v826_v46  ;;  %v413_v41 = vadd.f32 %v412_v30, %v829_v47 }
  0x57   : > { %v335_v62 = vrot.slane %v334_v58, 1  ;;  %v360_v63 = vadd.f32 %v359_v59, %v358_v26  ;;  %v372_v1 = vrot.slane %v371_v60, 2  ;;  %v396_v0 = vrot.slane %v395_v61, 4 }
  0x58   : > { %v348_v43 = vrot.slane %v347_v37, 1  ;;  %v385_v44 = vrot.slane %v384_v38, 2  ;;  %v405_v2 = vrot.slane %v404_v40, 4  ;;  %v414_v3 = vrot.slane %v413_v41, 4 }
  0x59   : > { %v336_v4 = vadd.f32 %v335_v62, %v334_v58  ;;  %v361_v5 = vrot.slane %v360_v63, 1  ;;  %v373_v46 = vadd.f32 %v372_v1, %v371_v60  ;;  %v397_v47 = vadd.f32 %v396_v0, %v395_v61 }
  0x5a   : > { %v349_v6 = vadd.f32 %v348_v43, %v347_v37  ;;  %v386_v7 = vadd.f32 %v385_v44, %v384_v38  ;;  %v406_v9 = vadd.f32 %v405_v2, %v404_v40  ;;  %v415_v10 = vadd.f32 %v414_v3, %v413_v41 }
  0x5b   : > { %v362_v11 = vadd.f32 %v361_v5, %v360_v63  ;;  %v374_v13 = vrot.slane %v373_v46, 1  ;;  %v398_v15 = vrot.slane %v397_v47, 2  ;;  %v420_v16 = vadd.f32 %v833_v48, %v823_v45 }
  0x5c   : > { %v387_v17 = vrot.slane %v386_v7, 1  ;;  %v407_v19 = vrot.slane %v406_v9, 2  ;;  %v416_v8 = vrot.slane %v415_v10, 2  ;;  %v429_v20 = vadd.f32 %v810_v36, %v808_v35 }
  0x5d   : > { %v375_v12 = vadd.f32 %v374_v13, %v373_v46  ;;  %v399_v14 = vadd.f32 %v398_v15, %v397_v47  ;;  %v421_v21 = vadd.f32 %v420_v16, %v837_v49  ;;  %v451_v48 = vsel %vm450_vm4, %v336_v4, %v349_v6 }
  0x5e   : > { %v388_v18 = vadd.f32 %v387_v17, %v386_v7  ;;  %v408_v22 = vadd.f32 %v407_v19, %v406_v9  ;;  %v417_v24 = vadd.f32 %v416_v8, %v415_v10  ;;  %v430_v25 = vadd.f32 %v814_v39, %v429_v20 }
  0x5f   : > { %v400_v27 = vrot.slane %v399_v14, 1  ;;  %v422_v45 = vadd.f32 %v421_v21, %v841_v50  ;;  %v453_v31 = vsel %vm452_vm5, %v451_v48, %v362_v11 }
  0x60   : > { %v409_v35 = vrot.slane %v408_v22, 1  ;;  %v418_v36 = vrot.slane %v417_v24, 1  ;;  %v431_v29 = vadd.f32 %v818_v42, %v430_v25  ;;  %v455_v34 = vsel %vm454_vm6, %v453_v31, %v375_v12 }
  0x61   : > { %v401_v49 = vadd.f32 %v400_v27, %v399_v14  ;;  %v423_v32 = vrot.slane %v422_v45, 4  ;;  %v457_v51 = vsel %vm456_vm7, %v455_v34, %v388_v18 }
  0x62   : > { %v410_v23 = vadd.f32 %v409_v35, %v408_v22  ;;  %v419_v33 = vadd.f32 %v418_v36, %v417_v24  ;;  %v432_v39 = vrot.slane %v431_v29, 4 }
  0x63   : > { %v424_v50 = vadd.f32 %v423_v32, %v422_v45  ;;  %v459_v53 = vsel %vm458_vm8, %v457_v51, %v401_v49 }
  0x64   : > { %v433_v52 = vadd.f32 %v432_v39, %v431_v29  ;;  %v461_v42 = vsel %vm460_vm9, %v459_v53, %v410_v23 }
  0x65   : > { %v425_v26 = vrot.slane %v424_v50, 2  ;;  %v463_v55 = vsel %vm462_vm10, %v461_v42, %v419_v33 }
  0x66   : > { %v434_v54 = vrot.slane %v433_v52, 2  ;;  %468 = vst [vmem:[%s196_s15] sm:$0xff] %v463_v55 }
  0x67   : > { %v426_v56 = vadd.f32 %v425_v26, %v424_v50 }
  0x68   : > { %v435_v57 = vadd.f32 %v434_v54, %v433_v52 }
  0x69   : > { %v427_v28 = vrot.slane %v426_v56, 1 }
  0x6a   : > { %v436_v30 = vrot.slane %v435_v57, 1 }
  0x6b   : > { %v428_v58 = vadd.f32 %v427_v28, %v426_v56 }
  0x6c   : > { %v437_v59 = vadd.f32 %v436_v30, %v435_v57 }
  0x6e   : > { %v464_v60 = vsel %vm450_vm4, %v428_v58, %v437_v59 }
  0x6f   : > { %v465_v61 = vsel %vm452_vm5, %v464_v60, 0.0 }
  0x70   : > { %469 = vst [vmem:[%s196_s15 + $0x8] sm:$0xff] %v465_v61 }
  0x71 PF: > { %s11_s12 = sadd.s32 1, %s723_s12   ;;  %s915_s6 = smov %s703_s7 }
  0x72   : > { %p8_p12 = scmp.ge.s32.totalorder %s11_s12, 6   ;;  %s916_s7 = smov %s787_s19 }
  0x73   : > { %s917_s8 = smov %s715_s10  ;;  %s918_s9 = smov %s719_s11 }
  0x74   : > { %s919_s10 = smov %s922_s13  ;;  %s920_s11 = smov %s926_s14 }
  0x75   :  { %10 = sbr.rel (!%p8_p12) target bundleno = 4 (0x4), region = 103 }

// kernel: custom-call.33
= control target key start
LH: loop header
LB: loop body
LE: loop exit
PB: predicated region body
PF: predicated region fallthrough
CT: control target
= control target key end

     0   :  { %s734_s9 = smov 0   ;;  %s736_s10 = smov 0   ;;  %s909_s0 = inlined_call_operand.vmem [shape: f32[2,3,2], index: 0, kind: input, shape index: {}]   ;;  %s910_s1 = inlined_call_operand.vmem [shape: f32[2,3,2], index: 1, kind: output, shape index: {0}]   ;;  %s911_s2 = inlined_call_operand.vmem [shape: f32[2,2], index: 2, kind: output, shape index: {1}]  }
   0x1   :  { %s738_s11 = smov 0   ;;  %s740_s12 = smov 0  }
   0x2   :  { %s742_s13 = smov 0  }
   0x3 LB: > { %s28_s14 = sadd.s32 1, %s707_s12  ;;  %s589_s15 = sadd.s32 4294967295, %s711_s13   ;;  %s711_s13 = sphi %s742_s13, %s9_s13   ;;  %s707_s12 = sphi %s740_s12, %s920_s12   ;;  %s703_s11 = sphi %s738_s11, %s919_s11   ;;  %s699_s10 = sphi %s736_s10, %s918_s10   ;;  %s695_s9 = sphi %s734_s9, %s917_s9  }
   0x4   : > { %p30_p0 = scmp.ge.s32.totalorder %s28_s14, 2  ;;  %s33_s16 = ssub.s32 0, %s707_s12 }
   0x5   : > { %s591_s17 = smin.u32 %s707_s12, %s33_s16  ;;  %p57_p1 = scmp.ne.s32.totalorder %s699_s10, %s695_s9 }
   0x6   : > { %s922_s14 = smov (%p30_p0, %s28_s14), 0  ;;  %s35_s18 = sshrl.u32 %s591_s17, 3 }
   0x7   : > { %s39_s19 = ssub.s32 0, %s922_s14  ;;  %p58_p2 = scmp.eq.s32.totalorder %s589_s15, 1 }
   0x8   : > { %s592_s20 = smin.u32 %s39_s19, %s922_s14  ;;  %s47_s24 = sadd.s32 1, %s699_s10 }
   0x9   : > { %s41_s21 = sshrl.u32 %s592_s20, 3  ;;  %p769_p3 = por %p58_p2, %p57_p1 }
   0xa   : > { %s44_s23 = ssub.s32 %s35_s18, %s41_s21  ;;  %p594_p5 = scmp.ge.s32.totalorder %s711_s13, 2 }
   0xb   : > { %p45_p4 = scmp.eq.s32.totalorder %s44_s23, 0  ;;  %s82_s26 = sand.u32 (!%p594_p5), 1, %s711_s13  }
   0xc   : > { %80 = sbr.rel (%p594_p5) target bundleno = 19 (0x13), region = 16  ;;  %s596_s27 = sshll.u32 (!%p594_p5), %s707_s12, 2 }
   0xd   : > { %s775_s25 = scalar_select %p45_p4, %s699_s10, %s47_s24  }
   0xe   : > { %s595_s28 = sshll.u32 (!%p594_p5), %s82_s26, 2  ;;  %s88_s3 = scalar_lea.vmem (!%p594_p5), %s909_s0, %s596_s27 }
   0xf   : > { %s84_s4 = scalar_lea.vmem (!%p594_p5), [#allocation1], %s595_s28 }
  0x11   : > { %v105_v0 = vld [vmem:[%s88_s3] sm:$0xf] }
  0x12   : > { %106 = vst [vmem:[%s84_s4] sm:$0xf] %v105_v0 }
  0x13 PF: > { %p597_p6 = scmp.ge.s32.totalorder %s711_s13, 1  ;;  %p123_p7 = scmp.lt.s32.totalorder %s711_s13, 3 }
  0x15   : > { %p124_p8 = pnand %p597_p6, %p123_p7 }
  0x17   : > { %127 = sbr.rel (%p124_p8) target bundleno = 342 (0x156), region = 50 }
  0x1c   : > { %s134_s5 = sand.u32 1, %s589_s15   ;;  %s144_s6 = sand.u32 1, %s695_s9   ;;  %v717_v2 = vmov 0.0  }
  0x1d   : > { %s598_s7 = sshll.u32 %s134_s5, 2  ;;  %s786_s8 = sshll.u32 %s144_s6, 1 }
  0x1e   : > { %s136_s16 = scalar_lea.vmem [#allocation1], %s598_s7  ;;  %s157_s17 = sand.u32 7, %s703_s11  }
  0x1f   : > { %v149_v1 = vld [vmem:[%s136_s16] sm:$0xf]  ;;  %s789_s18 = scalar_lea.vmem [#allocation4], %s157_s17  ;;  %s792_s19 = scalar_lea.vmem [#allocation3], %s598_s7 }
  0x20   : > { %150 = vst [vmem:[#allocation0] sm:$0xf] %v149_v1  ;;  %s146_s15 = scalar_lea.vmem [#allocation5], %s786_s8  ;;  %s795_s20 = smov 0  }
  0x21   : > { %161 = vst [vmem:[%s789_s18] sm:$0x1] %v717_v2 }
  0x27   : > { %v159_v3 = vld [vmem:[#allocation0] sm:$0xff] }
  0x28   : > { %160 = vst [vmem:[#allocation2] sm:$0xff] %v159_v3 }
  0x29 LB: >> { %v169_v4 = vlaneseq  ;;  %v804_v6 = vstv %s715_s20  ;;  %s201_s9 = scalar_lea.vmem [#allocation2], %s715_s20  ;;  %s294_s21 = smov [#allocation2]  ;;  %s715_s20 = sphi %s795_s20, %s167_s20  }
  0x2a   : >> { %s329_s23 = scalar_lea.vmem [#allocation6], %s715_s20  ;;  %s345_s24 = smov [#allocation2] }
  0x2b   : >> { %v801_v5 = vshrl.u32 %v169_v4, 7  ;;  %s346_s26 = smov [#allocation6] }
  0x2d   : >> { %vm173_vm0 = vcmp.gt.s32.totalorder %v801_v5, %v804_v6  ;;  %vm174_vm1 = vcmp.lt.s32.totalorder %v801_v5, 3  ;;  %v297_v5 = vmov %v801_v5 }
  0x2e   : >> { %vm175_vm2 = vmand %vm173_vm0, %vm174_vm1  ;;  %vm301_vm13 = vcmp.gt.s32.totalorder %v297_v5, %v804_v6  ;;  %vm302_vm14 = vcmp.lt.s32.totalorder %v297_v5, 3  ;;  %v349_v5 = vmov %v801_v5 }
  0x2f   : >> { %v168_v7 = vld [vmem:[#allocation2] sm:$0xff]  ;;  %v814_v20 = vld [vmem:[%s201_s9] ss:$0 sm:$0xff] }
  0x30   : >> { %v176_v8 = vsel %vm175_vm2, %v168_v7, 0.0  ;;  %v203_v23 = vand.u32 2147483647, %v814_v20  ;;  %vm272_vm12 = vcmp.lt.f32.partialorder %v814_v20, 0.0 }
  0x31   : >> { %v177_v9 = vmul.f32 %v176_v8, %v176_v8 }
  0x32   : >> { %v204_v27 = vmax.f32 %v203_v23, 0.0 }
  0x33   : >> { %v178_v10 = vrot.slane %v177_v9, 4 }
  0x35   : >> { %v179_v11 = vadd.f32 %v178_v10, %v177_v9 }
  0x37   : >> { %v180_v12 = vrot.slane %v179_v11, 2 }
  0x39   : >> { %v181_v13 = vadd.f32 %v180_v12, %v179_v11 }
  0x3b   : >> { %v182_v14 = vrot.slane %v181_v13, 1 }
  0x3d   : >> { %v809_v15 = vadd.f32 %v182_v14, %v181_v13 }
  0x3f   : >> { %659 = vrsqrt.f32 %v809_v15  ;;  %vm191_vm3 = vcmp.eq.f32.partialorder %v809_v15, inf  ;;  %v194_v24 = vand.u32 2147483648, %v809_v15  ;;  %vm193_vm4 = vcmp.eq.f32.partialorder %v809_v15, 0.0 }
  0x45   : >> { %v660_v16 = vpop.eup %659 }
  0x46   : >> { %v185_v17 = vmul.f32 %v660_v16, %v809_v15 }
  0x48   : >> { %v186_v18 = vmul.f32 %v660_v16, %v185_v17 }
  0x4a   : >> { %v187_v19 = vmul.f32 0.5, %v186_v18  ;;  %v298_v18 = vld [vmem:[%s294_s21] sm:$0xff] }
  0x4c   : >> { %v188_v21 = vsub.f32 1.5, %v187_v19 }
  0x4e   : >> { %v189_v22 = vmul.f32 %v660_v16, %v188_v21 }
  0x50   : >> { %v190_v25 = vmul.f32 %v189_v22, %v809_v15  ;;  %v323_v22 = vand.u32 127, %v169_v4 }
  0x52   : >> { %v192_v26 = vsel %vm191_vm3, %v809_v15, %v190_v25 }
  0x53   : >> { %v195_v28 = vsel %vm193_vm4, %v194_v24, %v192_v26 }
  0x54   : >> { %v205_v29 = vand.u32 2147483647, %v195_v28 }
  0x56   : >> { %v206_v30 = vmax.f32 %v204_v27, %v205_v29 }
  0x58   : >> { %661 = vrcp.f32 %v206_v30  ;;  %v218_v33 = vand.u32 2147483648, %v206_v30  ;;  %vm212_vm5 = vweird.f32 %v206_v30  ;;  %v216_v35 = vand.u32 2147483647, %v206_v30 }
  0x59   : >> { %vm257_vm11 = vcmp.eq.f32.partialorder %v206_v30, 0.0 }
  0x5a   : >> { %v219_v37 = vor.u32 1.1754944e-38, %v218_v33  ;;  %vm217_vm8 = vcmp.eq.f32.partialorder %v216_v35, 8.507059e+37 }
  0x5e   : >> { %v662_v31 = vpop.eup %661 }
  0x5f   : >> { %v208_v32 = vmul.f32 %v662_v31, %v206_v30  ;;  %vm213_vm6 = vweird.f32 %v662_v31 }
  0x60   : >> { %vm214_vm7 = vmor %vm212_vm5, %vm213_vm6 }
  0x61   : >> { %v209_v34 = vsub.f32 1.0, %v208_v32  ;;  %vm303_vm5 = vmand %vm301_vm13, %vm302_vm14 }
  0x62   : >> { %v304_v26 = vsel %vm303_vm5, %v298_v18, 0.0 }
  0x63   : >> { %v210_v36 = vmul.f32 %v662_v31, %v209_v34 }
  0x65   : >> { %v211_v38 = vadd.f32 %v662_v31, %v210_v36 }
  0x67   : >> { %v215_v39 = vsel %vm214_vm7, %v662_v31, %v211_v38  ;;  %v342_v38 = vld [vmem:[%s789_s18] ss:$0 sm:$0xff] }
  0x68   : >> { %v220_v40 = vsel %vm217_vm8, %v219_v37, %v215_v39  ;;  %v718_v37 = vmov 1.0   ;;  %v352_v39 = vld [vmem:[%s345_s24] sm:$0xff]  ;;  %s362_s24 = smov %s345_s24 }
  0x69   : >> { %v221_v41 = vmul.f32 %v220_v40, %v203_v23  ;;  %v237_v42 = vmul.f32 0.0, %v220_v40  ;;  %v254_v43 = vmul.f32 %v220_v40, %v205_v29  ;;  %s387_s27 = scalar_lea.vmem %s362_s24, %s715_s20  ;;  %s167_s20 = sadd.s32 1, %s715_s20  }
  0x6a   : >> { %p164_p9 = scmp.ge.s32.totalorder %s167_s20, 2  }
  0x6b   : >> { %v222_v44 = vmul.f32 %v221_v41, %v221_v41  ;;  %v238_v45 = vmul.f32 %v237_v42, %v237_v42  ;;  %v255_v46 = vmul.f32 %v254_v43, %v254_v43  ;;  %s604_s28 = sshll.u32 (%p164_p9), %s703_s11, 2 }
  0x6c   : > { %s418_s3 = scalar_lea.vmem (%p164_p9), %s910_s1, %s604_s28 }
  0x6d   : >> { %v239_v47 = vadd.f32 %v238_v45, %v222_v44 }
  0x6f   : >> { %v256_v48 = vadd.f32 %v255_v46, %v239_v47 }
  0x71   : >> { %663 = vrsqrt.f32 %v256_v48  ;;  %vm265_vm9 = vcmp.eq.f32.partialorder %v256_v48, inf  ;;  %v268_v55 = vand.u32 2147483648, %v256_v48  ;;  %vm267_vm10 = vcmp.eq.f32.partialorder %v256_v48, 0.0 }
  0x77   : >> { %v664_v49 = vpop.eup %663 }
  0x78   : >> { %v259_v50 = vmul.f32 %v664_v49, %v256_v48 }
  0x7a   : >> { %v260_v51 = vmul.f32 %v664_v49, %v259_v50 }
  0x7c   : >> { %v261_v52 = vmul.f32 0.5, %v260_v51 }
  0x7e   : >> { %v262_v53 = vsub.f32 1.5, %v261_v52  ;;  %v373_v52 = vld [vmem:[%s362_s24] sm:$0xff] }
  0x80   : >> { %v263_v54 = vmul.f32 %v664_v49, %v262_v53 }
  0x82   : >> { %v264_v56 = vmul.f32 %v263_v54, %v256_v48 }
  0x84   : >> { %v266_v57 = vsel %vm265_vm9, %v256_v48, %v264_v56  ;;  %vm846_vm9 = vcmp.eq.s32.totalorder %v323_v22, %v804_v6 }
  0x85   : >> { %v269_v58 = vsel %vm267_vm10, %v268_v55, %v266_v57  ;;  %vm354_vm10 = vcmp.lt.s32.totalorder %v349_v5, 3  ;;  %v366_v5 = vmov %v801_v5 }
  0x86   : >> { %v270_v59 = vmul.f32 %v269_v58, %v206_v30 }
  0x88   : >> { %v271_v60 = vsel %vm257_vm11, 0.0, %v270_v59  ;;  %vm375_vm11 = vcmp.gt.s32.totalorder %v323_v22, %v804_v6 }
  0x89   : >> { %v273_v61 = vxor.u32 2147483648, %v271_v60 }
  0x8b   : >> { %v274_v62 = vsel %vm272_vm12, %v271_v60, %v273_v61 }
  0x8c   : >> { %v828_v63 = vsel %vm193_vm4, %v814_v20, %v274_v62  ;;  %665 = vrcp.f32 %v274_v62  ;;  %vm281_vm15 = vweird.f32 %v274_v62  ;;  %v285_v11 = vand.u32 2147483647, %v274_v62 }
  0x8d   : >> { %v293_v0 = vsub.f32 %v814_v20, %v828_v63  ;;  %v287_v12 = vand.u32 2147483648, %v274_v62  ;;  %v275_v28 = vsub.f32 %v274_v62, %v814_v20 }
  0x8e   : >> { %vm286_vm8 = vcmp.eq.f32.partialorder %v285_v11, 8.507059e+37 }
  0x8f   : >> { %667 = vrcp.f32 %v293_v0  ;;  %v316_v9 = vand.u32 2147483648, %v293_v0  ;;  %vm310_vm1 = vweird.f32 %v293_v0  ;;  %v314_v14 = vand.u32 2147483647, %v293_v0 }
  0x90   : >> { %v288_v23 = vor.u32 1.1754944e-38, %v287_v12 }
  0x91   : >> { %v317_v21 = vor.u32 1.1754944e-38, %v316_v9  ;;  %vm315_vm7 = vcmp.eq.f32.partialorder %v314_v14, 8.507059e+37 }
  0x92   : >> { %v666_v1 = vpop.eup %665 }
  0x93   : >> { %v277_v2 = vmul.f32 %v666_v1, %v274_v62  ;;  %vm282_vm0 = vweird.f32 %v666_v1 }
  0x94   : >> { %vm834_vm3 = vmor %vm281_vm15, %vm282_vm0 }
  0x95   : >> { %v668_v3 = vpop.eup %667  ;;  %v278_v7 = vsub.f32 1.0, %v277_v2 }
  0x96   : >> { %v306_v8 = vmul.f32 %v668_v3, %v293_v0  ;;  %vm311_vm2 = vweird.f32 %v668_v3 }
  0x97   : >> { %v279_v10 = vmul.f32 %v666_v1, %v278_v7  ;;  %vm312_vm6 = vmor %vm310_vm1, %vm311_vm2 }
  0x98   : >> { %v307_v13 = vsub.f32 1.0, %v306_v8 }
  0x99   : >> { %v280_v16 = vadd.f32 %v666_v1, %v279_v10 }
  0x9a   : >> { %v308_v19 = vmul.f32 %v668_v3, %v307_v13 }
  0x9b   : >> { %v284_v25 = vsel %vm834_vm3, %v666_v1, %v280_v16 }
  0x9c   : >> { %v309_v24 = vadd.f32 %v668_v3, %v308_v19  ;;  %v289_v30 = vsel %vm286_vm8, %v288_v23, %v284_v25 }
  0x9d   : >> { %v290_v33 = vmul.f32 %v289_v30, %v275_v28 }
  0x9e   : >> { %v313_v27 = vsel %vm312_vm6, %v668_v3, %v309_v24 }
  0x9f   : >> { %v318_v29 = vsel %vm315_vm7, %v317_v21, %v313_v27  ;;  %v292_v20 = vsel %vm193_vm4, 0.0, %v290_v33 }
  0xa0   : >> { %v319_v31 = vmul.f32 %v318_v29, %v304_v26  ;;  %v335_v35 = vsel %vm846_vm9, %v292_v20, 0.0 }
  0xa2   : >> { %v320_v4 = vsel %vm193_vm4, 0.0, %v319_v31  ;;  %vm383_vm4 = vcmp.ge.s32.totalorder %v366_v5, %v804_v6 }
  0xa3   : >> { %v325_v34 = vsel %vm846_vm9, %v320_v4, 0.0  ;;  %vm384_vm12 = vmand %vm846_vm9, %vm383_vm4 }
  0xa4   : >> { %326 = vadd.xlane.f32.xlu0 %v325_v34 }
  0xac   : >> { %336 = vadd.xlane.f32.xlu0 %v335_v35 }
 0x117   : >> { %v327_v36 = vpop.xlane.xlu0 %326 }
 0x118   : >> { %328 = vst [vmem:[#allocation6] sm:$0xff] %v327_v36 }
 0x119   : >> { %330 = vst [vmem:[%s329_s23] sm:$0x1] %v718_v37 }
 0x11f   : >> { %v337_v40 = vpop.xlane.xlu0 %336 }
 0x120   : >> { %v351_v41 = vld [vmem:[%s346_s26] sm:$0xff]  ;;  %v343_v15 = vsel %vm846_vm9, %v337_v40, %v342_v38  ;;  %s363_s26 = smov %s346_s26 }
 0x121   : >> { %v353_v42 = vmul.f32 %v352_v39, %v351_v41  ;;  %344 = vst [vmem:[%s789_s18] sm:$0x1] %v343_v15  ;;  %v371_v51 = vld [vmem:[%s363_s26] sm:$0xff] }
 0x123   : >> { %v355_v43 = vsel %vm354_vm10, %v353_v42, 0.0 }
 0x124   : >> { %v356_v44 = vrot.slane %v355_v43, 4 }
 0x126   : >> { %v357_v45 = vadd.f32 %v356_v44, %v355_v43 }
 0x128   : >> { %v358_v46 = vrot.slane %v357_v45, 2  ;;  %v403_v6 = vld [vmem:[#allocation4] sm:$0x3] (%p164_p9) }
 0x129   : > { %406 = vst [vmem:[%s146_s15] sm:$0x3] (%p164_p9), %v403_v6 }
 0x12a   : >> { %v359_v47 = vadd.f32 %v358_v46, %v357_v45 }
 0x12c   : >> { %v360_v48 = vrot.slane %v359_v47, 1 }
 0x12e   : >> { %v361_v49 = vadd.f32 %v360_v48, %v359_v47 }
 0x130   : >> { %v367_v50 = vmul.f32 %v361_v49, %v337_v40 }
 0x132   : >> { %v372_v53 = vmul.f32 %v371_v51, %v367_v50 }
 0x134   : >> { %v376_v54 = vsub.f32 %v373_v52, %v372_v53 }
 0x136   : >> { %v377_v55 = vsel %vm375_vm11, %v376_v54, %v373_v52 }
 0x137   : >> { %v385_v56 = vsel %vm384_vm12, %v371_v51, %v377_v55 }
 0x138   : >> { %386 = vst [vmem:[%s362_s24] sm:$0xff] %v385_v56 }
 0x13d   : > { %166 = sbr.rel (!%p164_p9) target bundleno = 41 (0x29), region = 167 }
 0x13f   : >> { %v388_v57 = vld [vmem:[%s387_s27] ss:$0 sm:$0xff] }
 0x140   : >> { %v393_v58 = vsel %vm846_vm9, %v828_v63, %v388_v57 }
 0x141   : >> { %394 = vst [vmem:[%s387_s27] sm:$0x1] %v393_v58 }
 0x142   : > { %p455_p10 = scmp.lt.s32.totalorder (%p769_p3), %s703_s11, 0  ;;  %s456_s4 = ssub.s32 (%p769_p3), 0, %s703_s11  ;;  %v479_v60 = vld [vmem:[%s146_s15] sm:$0x3] (%p769_p3) }
 0x143   : > { %s605_s5 = smin.u32 (%p769_p3), %s703_s11, %s456_s4 }
 0x144   : > { %s458_s6 = sshrl.u32 (%p769_p3), %s605_s5, 3 }
 0x145   : > { %s459_s7 = ssub.s32 (%p769_p3), 0, %s458_s6 }
 0x148   : > { %v397_v5 = vld [vmem:[#allocation2] sm:$0xf] }
 0x149   : > { %400 = vst [vmem:[%s792_s19] sm:$0xf] %v397_v5 }
 0x14d   : > { %454 = sbr.rel (!%p769_p3) target bundleno = 342 (0x156), region = 91 }
 0x150   : > { %v435_v59 = vld [vmem:[%s792_s19] sm:$0xf] }
 0x151   : > { %436 = vst [vmem:[%s418_s3] sm:$0xf] %v435_v59 }
 0x152   : > { %s924_s7 = smov (!%p455_p10, %s459_s7), %s458_s6 }
 0x153   : > { %s606_s16 = sshll.u32 %s924_s7, 1 }
 0x154   : > { %s462_s19 = scalar_lea.vmem %s911_s2, %s606_s16 }
 0x155   : > { %480 = vst [vmem:[%s462_s19] sm:$0x3] %v479_v60 }
 0x156 PF: > { %s9_s13 = sadd.s32 1, %s711_s13   ;;  %s917_s9 = smov %s699_s10 }
 0x157   : > { %p6_p11 = scmp.ge.s32.totalorder %s9_s13, 4   ;;  %s918_s10 = smov %s775_s25 }
 0x158   : > { %s919_s11 = smov %s707_s12  ;;  %s920_s12 = smov %s922_s14 }
 0x159   :  { %8 = sbr.rel (!%p6_p11) target bundleno = 3 (0x3), region = 178 }

// kernel: _macenko_forward.5
= control target key start
LH: loop header
LB: loop body
LE: loop exit
PB: predicated region body
PF: predicated region fallthrough
CT: control target
= control target key end

     0   :  { %s678_s12 = smov [#allocation3]   ;;  %s884_s0 = inlined_call_operand.vmem [shape: f32[2,6], index: 0, kind: input, shape index: {}]   ;;  %s885_s1 = inlined_call_operand.vmem [shape: s8[2,3,64,128], index: 1, kind: input, shape index: {}]   ;;  %s886_s2 = inlined_call_operand.vmem [shape: f32[2,2,64,128], index: 2, kind: output, shape index: {}]  }
   0x1   :  { %s8_s11 = sshll.u32 %s884_s0, 4  ;;  %s9_s11 = int_to_ptr.vmem [resolvable:$true] %s8_s11 }
   0x2   :  { %11 = dma.vmem_to_smem %s9_s11, 32, %s678_s12, [#allocation2] }
   0x3   :  { %648 = dma.done.wait [#allocation2], 32 }
   0x4   :  { %649 = vsyncadd [#allocation2], 4294967264 }
   0x5   :  { %14 = sfence }
   0x6   :  { %s697_s13 = smov 0   ;;  %s699_s14 = smov 0  }
   0x7   :  { %s701_s15 = smov 0   ;;  %s703_s16 = smov 0  }
   0x8   :  { %s705_s17 = smov 0   ;;  %s707_s18 = smov 0  }
   0x9   :  { %s709_s19 = smov 0  }
   0xa LB: > { %s29_s0 = sadd.s32 1, %s668_s17  ;;  %s32_s20 = sadd.s32 1, %s672_s18  ;;  %s676_s19 = sphi %s709_s19, %s20_s19   ;;  %s672_s18 = sphi %s707_s18, %s893_s18   ;;  %s668_s17 = sphi %s705_s17, %s892_s17   ;;  %s664_s16 = sphi %s703_s16, %s891_s16   ;;  %s660_s15 = sphi %s701_s15, %s890_s15   ;;  %s656_s14 = sphi %s699_s14, %s889_s14   ;;  %s652_s13 = sphi %s697_s13, %s888_s13  }
   0xb   : > { %p30_p0 = scmp.ge.s32.totalorder %s29_s0, 2  ;;  %s504_s21 = sadd.s32 4294967295, %s676_s19  }
   0xc   : > { %p48_p1 = scmp.ne.s32.totalorder %s656_s14, %s652_s13  ;;  %p49_p2 = scmp.eq.s32.totalorder %s676_s19, 0 }
   0xd   : > { %s895_s0 = smov (%p30_p0, %s29_s0), 0  ;;  %s897_s20 = smov (!%p30_p0, %s32_s20), %s672_s18 }
   0xe   : > { %p34_p3 = scmp.ge.s32.totalorder %s897_s20, 2  ;;  %p80_p4 = scmp.eq.s32.totalorder %s504_s21, 3 }
   0xf   : > { %s37_s22 = ssub.s32 %s668_s17, %s895_s0  ;;  %p50_p5 = por %p49_p2, %p48_p1 }
  0x10   : > { %s899_s20 = smov (%p34_p3, %s897_s20), 0  ;;  %p745_p6 = por %p80_p4, %p48_p1 }
  0x11   : > { %s36_s24 = ssub.s32 %s672_s18, %s899_s20  ;;  %s41_s26 = sadd.s32 1, %s656_s14 }
  0x12   : > { %s38_s25 = sor.u32 %s37_s22, %s36_s24  ;;  %p507_p8 = scmp.ge.s32.totalorder %s676_s19, 4 }
  0x13   : > { %p39_p7 = scmp.eq.s32.totalorder %s38_s25, 0 }
  0x14   : > { %102 = sbr.rel (%p507_p8) target bundleno = 35 (0x23), region = 16 }
  0x15   : > { %s753_s27 = scalar_select %p39_p7, %s656_s14, %s41_s26  }
  0x19   : > { %105 = sbr.rel (!%p50_p5) target bundleno = 35 (0x23), region = 20  ;;  %s107_s28 = sand.u32 (%p50_p5), 1, %s656_s14  }
  0x1a   : > { %s525_s29 = smul.u32 (%p50_p5), 6, %s672_s18 }
  0x1b   : > { %s524_s30 = smul.u32 (%p50_p5), 24, %s107_s28 }
  0x1c   : > { %s111_s3 = sadd.s32 (%p50_p5), %s668_s17, %s525_s29 }
  0x1d   : > { %s508_s4 = sshll.u32 (%p50_p5), %s111_s3, 3  ;;  %s109_s8 = scalar_lea.vmem (%p50_p5), [#allocation4], %s524_s30 }
  0x1e   : > { %s113_s7 = scalar_lea.vmem %s885_s1, %s508_s4 }
  0x1f   : > { %v146_v0 = vld [vmem:[%s113_s7] sm:$0xff]  ;;  %v148_v1 = vld [vmem:[%s113_s7 + $0x10] sm:$0xff] }
  0x20   : > { %v150_v2 = vld [vmem:[%s113_s7 + $0x20] sm:$0xff]  ;;  %147 = vst [vmem:[%s109_s8] sm:$0xff] %v146_v0 }
  0x21   : > { %149 = vst [vmem:[%s109_s8 + $0x8] sm:$0xff] %v148_v1 }
  0x22   : > { %151 = vst [vmem:[%s109_s8 + $0x10] sm:$0xff] %v150_v2 }
  0x23 PF: > { %p509_p9 = scmp.ge.s32.totalorder %s676_s19, 1  ;;  %p156_p10 = scmp.lt.s32.totalorder %s676_s19, 5 }
  0x25   : > { %p157_p11 = pnand %p509_p9, %p156_p10 }
  0x26   : > { %s163_s9 = sand.u32 (!%p157_p11), 1, %s652_s13   ;;  %s768_s12 = sshll.u32 (!%p157_p11), %s664_s16, 7 }
  0x27   : > { %160 = sbr.rel (%p157_p11) target bundleno = 96 (0x60), region = 58  ;;  %s278_s21 = sadd.s32 (!%p157_p11), 1, %s768_s12 }
  0x28   : > { %s526_s10 = smul.u32 (!%p157_p11), 24, %s163_s9  ;;  %s289_s22 = sadd.s32 (!%p157_p11), 2, %s768_s12 }
  0x29   : > { %s773_s24 = sld [smem:[#allocation3 + %s768_s12]] (!%p157_p11)  ;;  %s300_s25 = sadd.s32 (!%p157_p11), 3, %s768_s12 }
  0x2a   : > { %s165_s11 = scalar_lea.vmem (!%p157_p11), [#allocation4], %s526_s10  ;;  %s776_s26 = sld [smem:[#allocation3 + %s278_s21]] (!%p157_p11) }
  0x2b   : > { %s307_s28 = sadd.s32 (!%p157_p11), 4, %s768_s12  ;;  %s779_s29 = sld [smem:[#allocation3 + %s289_s22]] (!%p157_p11) }
  0x2c   : > { %v182_v3 = vld [vmem:[%s165_s11] sm:$0xff]  ;;  %v511_v4 = vld [vmem:[%s165_s11 + $0x8] sm:$0xff]  ;;  %v512_v5 = vld [vmem:[%s165_s11 + $0x10] sm:$0xff]  ;;  %s318_s30 = sadd.s32 5, %s768_s12  ;;  %s782_s3 = sld [smem:[#allocation3 + %s300_s25]] }
  0x2d   : > { %v183_v6 = vunpack.c.0.s8 %v182_v3  ;;  %v213_v7 = vunpack.c.0.s8 %v511_v4  ;;  %v243_v8 = vunpack.c.0.s8 %v512_v5  ;;  %v184_v9 = vunpack.c.1.s8 %v182_v3  ;;  %s784_s4 = sld [smem:[#allocation3 + %s307_s28]]  ;;  %s510_s6 = sshll.u32 %s163_s9, 6 }
  0x2e   : > { %v214_v10 = vunpack.c.1.s8 %v511_v4  ;;  %v244_v11 = vunpack.c.1.s8 %v512_v5  ;;  %v185_v12 = vunpack.c.2.s8 %v182_v3  ;;  %v215_v20 = vunpack.c.2.s8 %v511_v4  ;;  %s786_s5 = sld [smem:[#allocation3 + %s318_s30]]  ;;  %s818_s13 = scalar_lea.vmem [#allocation5], %s510_s6 }
  0x2f   : > { %v187_v13 = vcvt.s32.f32 %v183_v6  ;;  %v217_v14 = vcvt.s32.f32 %v213_v7  ;;  %v247_v15 = vcvt.s32.f32 %v243_v8  ;;  %v188_v16 = vcvt.s32.f32 %v184_v9  ;;  %s519_s7 = sshll.u32 (%p745_p6), %s660_s15, 2  ;;  %s520_s8 = sshll.u32 (%p745_p6), %s664_s16, 4 }
  0x30   : > { %v218_v17 = vcvt.s32.f32 %v214_v10  ;;  %v248_v18 = vcvt.s32.f32 %v244_v11  ;;  %v189_v19 = vcvt.s32.f32 %v185_v12  ;;  %v219_v34 = vcvt.s32.f32 %v215_v20  ;;  %s367_s9 = sadd.s32 (%p745_p6), %s520_s8, %s519_s7 }
  0x31   : > { %v191_v21 = vadd.f32 128.0, %v187_v13  ;;  %v221_v22 = vadd.f32 128.0, %v217_v14  ;;  %v251_v23 = vadd.f32 128.0, %v247_v15  ;;  %v192_v24 = vadd.f32 128.0, %v188_v16  ;;  %s521_s10 = sshll.u32 (%p745_p6), %s367_s9, 3 }
  0x32   : > { %v222_v25 = vadd.f32 128.0, %v218_v17  ;;  %v252_v26 = vadd.f32 128.0, %v248_v18  ;;  %v193_v27 = vadd.f32 128.0, %v189_v19  ;;  %v245_v35 = vunpack.c.2.s8 %v512_v5  ;;  %s369_s23 = scalar_lea.vmem (%p745_p6), %s886_s2, %s521_s10 }
  0x33   : > { %v195_v28 = vmax.f32 %v191_v21, 1.0  ;;  %v225_v29 = vmax.f32 %v221_v22, 1.0  ;;  %v255_v30 = vmax.f32 %v251_v23, 1.0  ;;  %v196_v31 = vmax.f32 %v192_v24, 1.0 }
  0x34   : > { %v226_v32 = vmax.f32 %v222_v25, 1.0  ;;  %v256_v33 = vmax.f32 %v252_v26, 1.0  ;;  %v186_v36 = vunpack.c.3.s8 %v182_v3  ;;  %v197_v37 = vmax.f32 %v193_v27, 1.0 }
  0x35   : > { %584 = vlog2.f32 %v195_v28  ;;  %v216_v38 = vunpack.c.3.s8 %v511_v4  ;;  %v246_v39 = vunpack.c.3.s8 %v512_v5  ;;  %v223_v40 = vadd.f32 128.0, %v219_v34 }
  0x36   : > { %586 = vlog2.f32 %v225_v29  ;;  %v249_v41 = vcvt.s32.f32 %v245_v35  ;;  %v190_v42 = vcvt.s32.f32 %v186_v36  ;;  %v789_v48 = vstv %s773_s24 }
  0x37   : > { %588 = vlog2.f32 %v255_v30  ;;  %v220_v43 = vcvt.s32.f32 %v216_v38  ;;  %v250_v44 = vcvt.s32.f32 %v246_v39  ;;  %v227_v45 = vmax.f32 %v223_v40, 1.0 }
  0x38   : > { %590 = vlog2.f32 %v196_v31  ;;  %v253_v46 = vadd.f32 128.0, %v249_v41  ;;  %v194_v47 = vadd.f32 128.0, %v190_v42  ;;  %v792_v52 = vstv %s776_s26 }
  0x39   : > { %592 = vlog2.f32 %v226_v32  ;;  %v224_v49 = vadd.f32 128.0, %v220_v43  ;;  %v254_v50 = vadd.f32 128.0, %v250_v44  ;;  %v795_v61 = vstv %s779_s29 }
  0x3a   : > { %594 = vlog2.f32 %v256_v33  ;;  %v257_v53 = vmax.f32 %v253_v46, 1.0  ;;  %v198_v54 = vmax.f32 %v194_v47, 1.0  ;;  %v798_v62 = vstv %s782_s3 }
  0x3b   : > { %v585_v51 = vpop.eup %584  ;;  %596 = vlog2.f32 %v197_v37  ;;  %v228_v57 = vmax.f32 %v224_v49, 1.0  ;;  %v258_v58 = vmax.f32 %v254_v50, 1.0  ;;  %v801_v2 = vstv %s784_s4 }
  0x3c   : > { %v587_v55 = vpop.eup %586  ;;  %v200_v56 = vmul.f32 0.6931472, %v585_v51  ;;  %598 = vlog2.f32 %v227_v45  ;;  %v804_v6 = vstv %s786_s5 }
  0x3d   : > { %v589_v59 = vpop.eup %588  ;;  %v230_v60 = vmul.f32 0.6931472, %v587_v55  ;;  %600 = vlog2.f32 %v257_v53 }
  0x3e   : > { %v591_v63 = vpop.eup %590  ;;  %v207_v0 = vsub.f32 5.480639, %v200_v56  ;;  %v260_v1 = vmul.f32 0.6931472, %v589_v59  ;;  %602 = vlog2.f32 %v198_v54 }
  0x3f   : > { %v593_v3 = vpop.eup %592  ;;  %v237_v4 = vsub.f32 5.480639, %v230_v60  ;;  %v202_v5 = vmul.f32 0.6931472, %v591_v63  ;;  %604 = vlog2.f32 %v228_v57 }
  0x40   : > { %v595_v7 = vpop.eup %594  ;;  %v267_v8 = vsub.f32 5.480639, %v260_v1  ;;  %v274_v9 = vmul.f32 %v789_v48, %v207_v0  ;;  %v232_v10 = vmul.f32 0.6931472, %v593_v3  ;;  %606 = vlog2.f32 %v258_v58 }
  0x41   : > { %v597_v11 = vpop.eup %596  ;;  %v281_v12 = vmul.f32 %v792_v52, %v237_v4  ;;  %v329_v13 = vmin.f32 %v207_v0, %v237_v4  ;;  %v208_v14 = vsub.f32 5.480639, %v202_v5  ;;  %v262_v15 = vmul.f32 0.6931472, %v595_v7 }
  0x42   : > { %v599_v16 = vpop.eup %598  ;;  %v292_v17 = vmul.f32 %v795_v61, %v267_v8  ;;  %v238_v18 = vsub.f32 5.480639, %v232_v10  ;;  %v204_v19 = vmul.f32 0.6931472, %v597_v11  ;;  %v303_v20 = vmul.f32 %v798_v62, %v207_v0 }
  0x43   : > { %v601_v21 = vpop.eup %600  ;;  %v285_v22 = vadd.f32 %v281_v12, %v274_v9  ;;  %v333_v23 = vmin.f32 %v329_v13, %v267_v8  ;;  %v268_v24 = vsub.f32 5.480639, %v262_v15  ;;  %v275_v25 = vmul.f32 %v789_v48, %v208_v14 }
  0x44   : > { %v603_v26 = vpop.eup %602  ;;  %v282_v27 = vmul.f32 %v792_v52, %v238_v18  ;;  %v330_v28 = vmin.f32 %v208_v14, %v238_v18  ;;  %v209_v29 = vsub.f32 5.480639, %v204_v19  ;;  %v234_v30 = vmul.f32 0.6931472, %v599_v16 }
  0x45   : > { %v605_v31 = vpop.eup %604  ;;  %v296_v32 = vadd.f32 %v292_v17, %v285_v22  ;;  %vm337_vm0 = vcmp.ge.f32.partialorder %v333_v23, 0.15  ;;  %v293_v33 = vmul.f32 %v795_v61, %v268_v24  ;;  %v264_v34 = vmul.f32 0.6931472, %v601_v21 }
  0x46   : > { %v607_v35 = vpop.eup %606  ;;  %v286_v36 = vadd.f32 %v282_v27, %v275_v25  ;;  %v334_v37 = vmin.f32 %v330_v28, %v268_v24  ;;  %v239_v38 = vsub.f32 5.480639, %v234_v30  ;;  %v276_v39 = vmul.f32 %v789_v48, %v209_v29 }
  0x47   : > { %v341_v40 = vsel %vm337_vm0, %v296_v32, -1.0  ;;  %v269_v41 = vsub.f32 5.480639, %v264_v34  ;;  %v206_v42 = vmul.f32 0.6931472, %v603_v26  ;;  %v310_v43 = vmul.f32 %v801_v2, %v237_v4 }
  0x48   : > { %349 = vst [vmem:[%s818_s13] sm:$0xff] %v341_v40  ;;  %v297_v44 = vadd.f32 %v293_v33, %v286_v36  ;;  %vm338_vm1 = vcmp.ge.f32.partialorder %v334_v37, 0.15  ;;  %v283_v45 = vmul.f32 %v792_v52, %v239_v38  ;;  %v331_v46 = vmin.f32 %v209_v29, %v239_v38 }
  0x49   : > { %v294_v47 = vmul.f32 %v795_v61, %v269_v41  ;;  %v210_v49 = vsub.f32 5.480639, %v206_v42  ;;  %v236_v50 = vmul.f32 0.6931472, %v605_v31  ;;  %v266_v51 = vmul.f32 0.6931472, %v607_v35 }
  0x4a   : > { %v342_v53 = vsel %vm338_vm1, %v297_v44, -1.0  ;;  %v287_v54 = vadd.f32 %v283_v45, %v276_v39  ;;  %v335_v55 = vmin.f32 %v331_v46, %v269_v41  ;;  %v314_v56 = vadd.f32 %v310_v43, %v303_v20 }
  0x4b   : > { %350 = vst [vmem:[%s818_s13 + $0x8] sm:$0xff] %v342_v53  ;;  %v240_v57 = vsub.f32 5.480639, %v236_v50  ;;  %v270_v58 = vsub.f32 5.480639, %v266_v51  ;;  %v277_v59 = vmul.f32 %v789_v48, %v210_v49  ;;  %v321_v60 = vmul.f32 %v804_v6, %v267_v8 }
  0x4c   : > { %v298_v63 = vadd.f32 %v294_v47, %v287_v54  ;;  %vm339_vm2 = vcmp.ge.f32.partialorder %v335_v55, 0.15  ;;  %v304_v0 = vmul.f32 %v798_v62, %v208_v14  ;;  %v311_v1 = vmul.f32 %v801_v2, %v238_v18 }
  0x4d   : > { %v284_v3 = vmul.f32 %v792_v52, %v240_v57  ;;  %v295_v4 = vmul.f32 %v795_v61, %v270_v58  ;;  %v332_v5 = vmin.f32 %v210_v49, %v240_v57  ;;  %v325_v7 = vadd.f32 %v321_v60, %v314_v56 }
  0x4e   : > { %v343_v9 = vsel %vm339_vm2, %v298_v63, -1.0  ;;  %v315_v10 = vadd.f32 %v311_v1, %v304_v0  ;;  %v322_v48 = vmul.f32 %v804_v6, %v268_v24  ;;  %v305_v8 = vmul.f32 %v798_v62, %v209_v29 }
  0x4f   : > { %351 = vst [vmem:[%s818_s13 + $0x10] sm:$0xff] %v343_v9  ;;  %v288_v11 = vadd.f32 %v284_v3, %v277_v59  ;;  %v336_v12 = vmin.f32 %v332_v5, %v270_v58  ;;  %v345_v13 = vsel %vm337_vm0, %v325_v7, 0.0  ;;  %v312_v52 = vmul.f32 %v801_v2, %v239_v38 }
  0x50   : > { %514 = vst [vmem:[%s818_s13 + $0x20] sm:$0xff] %v345_v13  ;;  %v326_v61 = vadd.f32 %v322_v48, %v315_v10  ;;  %v323_v14 = vmul.f32 %v804_v6, %v269_v41  ;;  %v306_v15 = vmul.f32 %v798_v62, %v210_v49  ;;  %v313_v16 = vmul.f32 %v801_v2, %v240_v57  ;;  %v412_v2 = vld [vmem:[%s818_s13] sm:$0xff] (%p745_p6) }
  0x51   : > { %v299_v17 = vadd.f32 %v295_v4, %v288_v11  ;;  %vm340_vm3 = vcmp.ge.f32.partialorder %v336_v12, 0.15  ;;  %v316_v18 = vadd.f32 %v312_v52, %v305_v8  ;;  %v324_v19 = vmul.f32 %v804_v6, %v270_v58  ;;  %413 = vst [vmem:[%s369_s23] sm:$0xff] (%p745_p6), %v412_v2 }
  0x52   : > { %v346_v20 = vsel %vm338_vm1, %v326_v61, 0.0  ;;  %v317_v21 = vadd.f32 %v313_v16, %v306_v15  ;;  %v414_v6 = vld [vmem:[%s818_s13 + $0x8] sm:$0xff] (%p745_p6) }
  0x53   : > { %v344_v22 = vsel %vm340_vm3, %v299_v17, -1.0  ;;  %515 = vst [vmem:[%s818_s13 + $0x28] sm:$0xff] %v346_v20  ;;  %v327_v23 = vadd.f32 %v323_v14, %v316_v18  ;;  %364 = sbr.rel (!%p745_p6) target bundleno = 96 (0x60), region = 66 }
  0x54   : > { %352 = vst [vmem:[%s818_s13 + $0x18] sm:$0xff] %v344_v22  ;;  %v328_v24 = vadd.f32 %v324_v19, %v317_v21 }
  0x55   : > { %v347_v25 = vsel %vm339_vm2, %v327_v23, 0.0  ;;  %415 = vst [vmem:[%s369_s23 + $0x8] sm:$0xff] (%p745_p6), %v414_v6 }
  0x56   : > { %516 = vst [vmem:[%s818_s13 + $0x30] sm:$0xff] %v347_v25  ;;  %v348_v62 = vsel %vm340_vm3, %v328_v24, 0.0  ;;  %v416_v26 = vld [vmem:[%s818_s13 + $0x10] sm:$0xff] (%p745_p6) }
  0x57   : > { %517 = vst [vmem:[%s818_s13 + $0x38] sm:$0xff] %v348_v62  ;;  %v420_v28 = vld [vmem:[%s818_s13 + $0x20] sm:$0xff] (%p745_p6) }
  0x58   : > { %417 = vst [vmem:[%s369_s23 + $0x10] sm:$0xff] %v416_v26 }
  0x59   : > { %421 = vst [vmem:[%s369_s23 + $0x40] sm:$0xff] %v420_v28 }
  0x5a   : > { %v422_v29 = vld [vmem:[%s818_s13 + $0x28] sm:$0xff] }
  0x5b   : > { %v418_v27 = vld [vmem:[%s818_s13 + $0x18] sm:$0xff]  ;;  %423 = vst [vmem:[%s369_s23 + $0x48] sm:$0xff] %v422_v29 }
  0x5c   : > { %419 = vst [vmem:[%s369_s23 + $0x18] sm:$0xff] %v418_v27 }
  0x5d   : > { %v424_v30 = vld [vmem:[%s818_s13 + $0x30] sm:$0xff] }
  0x5e   : > { %v426_v31 = vld [vmem:[%s818_s13 + $0x38] sm:$0xff]  ;;  %425 = vst [vmem:[%s369_s23 + $0x50] sm:$0xff] %v424_v30 }
  0x5f   : > { %427 = vst [vmem:[%s369_s23 + $0x58] sm:$0xff] %v426_v31 }
  0x60 PF: > { %s20_s19 = sadd.s32 1, %s676_s19   ;;  %s888_s13 = smov %s656_s14 }
  0x61   : > { %p17_p12 = scmp.ge.s32.totalorder %s20_s19, 6   ;;  %s889_s14 = smov %s753_s27 }
  0x62   : > { %s890_s15 = smov %s668_s17  ;;  %s891_s16 = smov %s672_s18 }
  0x63   : > { %s892_s17 = smov %s895_s0  ;;  %s893_s18 = smov %s899_s20 }
  0x64   :  { %19 = sbr.rel (!%p17_p12) target bundleno = 10 (0xa), region = 138 }

// kernel: custom-call.78
= control target key start
LH: loop header
LB: loop body
LE: loop exit
PB: predicated region body
PF: predicated region fallthrough
CT: control target
= control target key end

     0   :  { %s734_s9 = smov 0   ;;  %s736_s10 = smov 0   ;;  %s909_s0 = inlined_call_operand.vmem [shape: f32[2,4,2], index: 0, kind: input, shape index: {}]   ;;  %s910_s1 = inlined_call_operand.vmem [shape: f32[2,4,2], index: 1, kind: output, shape index: {0}]   ;;  %s911_s2 = inlined_call_operand.vmem [shape: f32[2,2], index: 2, kind: output, shape index: {1}]  }
   0x1   :  { %s738_s11 = smov 0   ;;  %s740_s12 = smov 0  }
   0x2   :  { %s742_s13 = smov 0  }
   0x3 LB: > { %s28_s14 = sadd.s32 1, %s707_s12  ;;  %s589_s15 = sadd.s32 4294967295, %s711_s13   ;;  %s711_s13 = sphi %s742_s13, %s9_s13   ;;  %s707_s12 = sphi %s740_s12, %s920_s12   ;;  %s703_s11 = sphi %s738_s11, %s919_s11   ;;  %s699_s10 = sphi %s736_s10, %s918_s10   ;;  %s695_s9 = sphi %s734_s9, %s917_s9  }
   0x4   : > { %p30_p0 = scmp.ge.s32.totalorder %s28_s14, 2  ;;  %s33_s16 = ssub.s32 0, %s707_s12 }
   0x5   : > { %s591_s17 = smin.u32 %s707_s12, %s33_s16  ;;  %p57_p1 = scmp.ne.s32.totalorder %s699_s10, %s695_s9 }
   0x6   : > { %s922_s14 = smov (%p30_p0, %s28_s14), 0  ;;  %s35_s18 = sshrl.u32 %s591_s17, 3 }
   0x7   : > { %s39_s19 = ssub.s32 0, %s922_s14  ;;  %p58_p2 = scmp.eq.s32.totalorder %s589_s15, 1 }
   0x8   : > { %s592_s20 = smin.u32 %s39_s19, %s922_s14  ;;  %s47_s24 = sadd.s32 1, %s699_s10 }
   0x9   : > { %s41_s21 = sshrl.u32 %s592_s20, 3  ;;  %p769_p3 = por %p58_p2, %p57_p1 }
   0xa   : > { %s44_s23 = ssub.s32 %s35_s18, %s41_s21  ;;  %p594_p5 = scmp.ge.s32.totalorder %s711_s13, 2 }
   0xb   : > { %p45_p4 = scmp.eq.s32.totalorder %s44_s23, 0  ;;  %s82_s26 = sand.u32 (!%p594_p5), 1, %s711_s13  }
   0xc   : > { %80 = sbr.rel (%p594_p5) target bundleno = 19 (0x13), region = 16  ;;  %s596_s27 = sshll.u32 (!%p594_p5), %s707_s12, 2 }
   0xd   : > { %s775_s25 = scalar_select %p45_p4, %s699_s10, %s47_s24  }
   0xe   : > { %s595_s28 = sshll.u32 (!%p594_p5), %s82_s26, 2  ;;  %s88_s3 = scalar_lea.vmem (!%p594_p5), %s909_s0, %s596_s27 }
   0xf   : > { %s84_s4 = scalar_lea.vmem (!%p594_p5), [#allocation1], %s595_s28 }
  0x11   : > { %v105_v0 = vld [vmem:[%s88_s3] sm:$0xf] }
  0x12   : > { %106 = vst [vmem:[%s84_s4] sm:$0xf] %v105_v0 }
  0x13 PF: > { %p597_p6 = scmp.ge.s32.totalorder %s711_s13, 1  ;;  %p123_p7 = scmp.lt.s32.totalorder %s711_s13, 3 }
  0x15   : > { %p124_p8 = pnand %p597_p6, %p123_p7 }
  0x17   : > { %127 = sbr.rel (%p124_p8) target bundleno = 342 (0x156), region = 50 }
  0x1c   : > { %s134_s5 = sand.u32 1, %s589_s15   ;;  %s144_s6 = sand.u32 1, %s695_s9   ;;  %v717_v2 = vmov 0.0  }
  0x1d   : > { %s598_s7 = sshll.u32 %s134_s5, 2  ;;  %s786_s8 = sshll.u32 %s144_s6, 1 }
  0x1e   : > { %s136_s16 = scalar_lea.vmem [#allocation1], %s598_s7  ;;  %s157_s17 = sand.u32 7, %s703_s11  }
  0x1f   : > { %v149_v1 = vld [vmem:[%s136_s16] sm:$0xf]  ;;  %s789_s18 = scalar_lea.vmem [#allocation4], %s157_s17  ;;  %s792_s19 = scalar_lea.vmem [#allocation3], %s598_s7 }
  0x20   : > { %150 = vst [vmem:[#allocation0] sm:$0xf] %v149_v1  ;;  %s146_s15 = scalar_lea.vmem [#allocation5], %s786_s8  ;;  %s795_s20 = smov 0  }
  0x21   : > { %161 = vst [vmem:[%s789_s18] sm:$0x1] %v717_v2 }
  0x27   : > { %v159_v3 = vld [vmem:[#allocation0] sm:$0xff] }
  0x28   : > { %160 = vst [vmem:[#allocation2] sm:$0xff] %v159_v3 }
  0x29 LB: >> { %v169_v4 = vlaneseq  ;;  %v804_v6 = vstv %s715_s20  ;;  %s201_s9 = scalar_lea.vmem [#allocation2], %s715_s20  ;;  %s294_s21 = smov [#allocation2]  ;;  %s715_s20 = sphi %s795_s20, %s167_s20  }
  0x2a   : >> { %s329_s23 = scalar_lea.vmem [#allocation6], %s715_s20  ;;  %s345_s24 = smov [#allocation2] }
  0x2b   : >> { %v801_v5 = vshrl.u32 %v169_v4, 7  ;;  %s346_s26 = smov [#allocation6] }
  0x2d   : >> { %vm173_vm0 = vcmp.gt.s32.totalorder %v801_v5, %v804_v6  ;;  %vm174_vm1 = vcmp.lt.s32.totalorder %v801_v5, 4  ;;  %v297_v5 = vmov %v801_v5 }
  0x2e   : >> { %vm175_vm2 = vmand %vm173_vm0, %vm174_vm1  ;;  %vm301_vm13 = vcmp.gt.s32.totalorder %v297_v5, %v804_v6  ;;  %vm302_vm14 = vcmp.lt.s32.totalorder %v297_v5, 4  ;;  %v349_v5 = vmov %v801_v5 }
  0x2f   : >> { %v168_v7 = vld [vmem:[#allocation2] sm:$0xff]  ;;  %v814_v20 = vld [vmem:[%s201_s9] ss:$0 sm:$0xff] }
  0x30   : >> { %v176_v8 = vsel %vm175_vm2, %v168_v7, 0.0  ;;  %v203_v23 = vand.u32 2147483647, %v814_v20  ;;  %vm272_vm12 = vcmp.lt.f32.partialorder %v814_v20, 0.0 }
  0x31   : >> { %v177_v9 = vmul.f32 %v176_v8, %v176_v8 }
  0x32   : >> { %v204_v27 = vmax.f32 %v203_v23, 0.0 }
  0x33   : >> { %v178_v10 = vrot.slane %v177_v9, 4 }
  0x35   : >> { %v179_v11 = vadd.f32 %v178_v10, %v177_v9 }
  0x37   : >> { %v180_v12 = vrot.slane %v179_v11, 2 }
  0x39   : >> { %v181_v13 = vadd.f32 %v180_v12, %v179_v11 }
  0x3b   : >> { %v182_v14 = vrot.slane %v181_v13, 1 }
  0x3d   : >> { %v809_v15 = vadd.f32 %v182_v14, %v181_v13 }
  0x3f   : >> { %659 = vrsqrt.f32 %v809_v15  ;;  %vm191_vm3 = vcmp.eq.f32.partialorder %v809_v15, inf  ;;  %v194_v24 = vand.u32 2147483648, %v809_v15  ;;  %vm193_vm4 = vcmp.eq.f32.partialorder %v809_v15, 0.0 }
  0x45   : >> { %v660_v16 = vpop.eup %659 }
  0x46   : >> { %v185_v17 = vmul.f32 %v660_v16, %v809_v15 }
  0x48   : >> { %v186_v18 = vmul.f32 %v660_v16, %v185_v17 }
  0x4a   : >> { %v187_v19 = vmul.f32 0.5, %v186_v18  ;;  %v298_v18 = vld [vmem:[%s294_s21] sm:$0xff] }
  0x4c   : >> { %v188_v21 = vsub.f32 1.5, %v187_v19 }
  0x4e   : >> { %v189_v22 = vmul.f32 %v660_v16, %v188_v21 }
  0x50   : >> { %v190_v25 = vmul.f32 %v189_v22, %v809_v15  ;;  %v323_v22 = vand.u32 127, %v169_v4 }
  0x52   : >> { %v192_v26 = vsel %vm191_vm3, %v809_v15, %v190_v25 }
  0x53   : >> { %v195_v28 = vsel %vm193_vm4, %v194_v24, %v192_v26 }
  0x54   : >> { %v205_v29 = vand.u32 2147483647, %v195_v28 }
  0x56   : >> { %v206_v30 = vmax.f32 %v204_v27, %v205_v29 }
  0x58   : >> { %661 = vrcp.f32 %v206_v30  ;;  %v218_v33 = vand.u32 2147483648, %v206_v30  ;;  %vm212_vm5 = vweird.f32 %v206_v30  ;;  %v216_v35 = vand.u32 2147483647, %v206_v30 }
  0x59   : >> { %vm257_vm11 = vcmp.eq.f32.partialorder %v206_v30, 0.0 }
  0x5a   : >> { %v219_v37 = vor.u32 1.1754944e-38, %v218_v33  ;;  %vm217_vm8 = vcmp.eq.f32.partialorder %v216_v35, 8.507059e+37 }
  0x5e   : >> { %v662_v31 = vpop.eup %661 }
  0x5f   : >> { %v208_v32 = vmul.f32 %v662_v31, %v206_v30  ;;  %vm213_vm6 = vweird.f32 %v662_v31 }
  0x60   : >> { %vm214_vm7 = vmor %vm212_vm5, %vm213_vm6 }
  0x61   : >> { %v209_v34 = vsub.f32 1.0, %v208_v32  ;;  %vm303_vm5 = vmand %vm301_vm13, %vm302_vm14 }
  0x62   : >> { %v304_v26 = vsel %vm303_vm5, %v298_v18, 0.0 }
  0x63   : >> { %v210_v36 = vmul.f32 %v662_v31, %v209_v34 }
  0x65   : >> { %v211_v38 = vadd.f32 %v662_v31, %v210_v36 }
  0x67   : >> { %v215_v39 = vsel %vm214_vm7, %v662_v31, %v211_v38  ;;  %v342_v38 = vld [vmem:[%s789_s18] ss:$0 sm:$0xff] }
  0x68   : >> { %v220_v40 = vsel %vm217_vm8, %v219_v37, %v215_v39  ;;  %v718_v37 = vmov 1.0   ;;  %v352_v39 = vld [vmem:[%s345_s24] sm:$0xff]  ;;  %s362_s24 = smov %s345_s24 }
  0x69   : >> { %v221_v41 = vmul.f32 %v220_v40, %v203_v23  ;;  %v237_v42 = vmul.f32 0.0, %v220_v40  ;;  %v254_v43 = vmul.f32 %v220_v40, %v205_v29  ;;  %s387_s27 = scalar_lea.vmem %s362_s24, %s715_s20  ;;  %s167_s20 = sadd.s32 1, %s715_s20  }
  0x6a   : >> { %p164_p9 = scmp.ge.s32.totalorder %s167_s20, 2  }
  0x6b   : >> { %v222_v44 = vmul.f32 %v221_v41, %v221_v41  ;;  %v238_v45 = vmul.f32 %v237_v42, %v237_v42  ;;  %v255_v46 = vmul.f32 %v254_v43, %v254_v43  ;;  %s604_s28 = sshll.u32 (%p164_p9), %s703_s11, 2 }
  0x6c   : > { %s418_s3 = scalar_lea.vmem (%p164_p9), %s910_s1, %s604_s28 }
  0x6d   : >> { %v239_v47 = vadd.f32 %v238_v45, %v222_v44 }
  0x6f   : >> { %v256_v48 = vadd.f32 %v255_v46, %v239_v47 }
  0x71   : >> { %663 = vrsqrt.f32 %v256_v48  ;;  %vm265_vm9 = vcmp.eq.f32.partialorder %v256_v48, inf  ;;  %v268_v55 = vand.u32 2147483648, %v256_v48  ;;  %vm267_vm10 = vcmp.eq.f32.partialorder %v256_v48, 0.0 }
  0x77   : >> { %v664_v49 = vpop.eup %663 }
  0x78   : >> { %v259_v50 = vmul.f32 %v664_v49, %v256_v48 }
  0x7a   : >> { %v260_v51 = vmul.f32 %v664_v49, %v259_v50 }
  0x7c   : >> { %v261_v52 = vmul.f32 0.5, %v260_v51 }
  0x7e   : >> { %v262_v53 = vsub.f32 1.5, %v261_v52  ;;  %v373_v52 = vld [vmem:[%s362_s24] sm:$0xff] }
  0x80   : >> { %v263_v54 = vmul.f32 %v664_v49, %v262_v53 }
  0x82   : >> { %v264_v56 = vmul.f32 %v263_v54, %v256_v48 }
  0x84   : >> { %v266_v57 = vsel %vm265_vm9, %v256_v48, %v264_v56  ;;  %vm846_vm9 = vcmp.eq.s32.totalorder %v323_v22, %v804_v6 }
  0x85   : >> { %v269_v58 = vsel %vm267_vm10, %v268_v55, %v266_v57  ;;  %vm354_vm10 = vcmp.lt.s32.totalorder %v349_v5, 4  ;;  %v366_v5 = vmov %v801_v5 }
  0x86   : >> { %v270_v59 = vmul.f32 %v269_v58, %v206_v30 }
  0x88   : >> { %v271_v60 = vsel %vm257_vm11, 0.0, %v270_v59  ;;  %vm375_vm11 = vcmp.gt.s32.totalorder %v323_v22, %v804_v6 }
  0x89   : >> { %v273_v61 = vxor.u32 2147483648, %v271_v60 }
  0x8b   : >> { %v274_v62 = vsel %vm272_vm12, %v271_v60, %v273_v61 }
  0x8c   : >> { %v828_v63 = vsel %vm193_vm4, %v814_v20, %v274_v62  ;;  %665 = vrcp.f32 %v274_v62  ;;  %vm281_vm15 = vweird.f32 %v274_v62  ;;  %v285_v11 = vand.u32 2147483647, %v274_v62 }
  0x8d   : >> { %v293_v0 = vsub.f32 %v814_v20, %v828_v63  ;;  %v287_v12 = vand.u32 2147483648, %v274_v62  ;;  %v275_v28 = vsub.f32 %v274_v62, %v814_v20 }
  0x8e   : >> { %vm286_vm8 = vcmp.eq.f32.partialorder %v285_v11, 8.507059e+37 }
  0x8f   : >> { %667 = vrcp.f32 %v293_v0  ;;  %v316_v9 = vand.u32 2147483648, %v293_v0  ;;  %vm310_vm1 = vweird.f32 %v293_v0  ;;  %v314_v14 = vand.u32 2147483647, %v293_v0 }
  0x90   : >> { %v288_v23 = vor.u32 1.1754944e-38, %v287_v12 }
  0x91   : >> { %v317_v21 = vor.u32 1.1754944e-38, %v316_v9  ;;  %vm315_vm7 = vcmp.eq.f32.partialorder %v314_v14, 8.507059e+37 }
  0x92   : >> { %v666_v1 = vpop.eup %665 }
  0x93   : >> { %v277_v2 = vmul.f32 %v666_v1, %v274_v62  ;;  %vm282_vm0 = vweird.f32 %v666_v1 }
  0x94   : >> { %vm834_vm3 = vmor %vm281_vm15, %vm282_vm0 }
  0x95   : >> { %v668_v3 = vpop.eup %667  ;;  %v278_v7 = vsub.f32 1.0, %v277_v2 }
  0x96   : >> { %v306_v8 = vmul.f32 %v668_v3, %v293_v0  ;;  %vm311_vm2 = vweird.f32 %v668_v3 }
  0x97   : >> { %v279_v10 = vmul.f32 %v666_v1, %v278_v7  ;;  %vm312_vm6 = vmor %vm310_vm1, %vm311_vm2 }
  0x98   : >> { %v307_v13 = vsub.f32 1.0, %v306_v8 }
  0x99   : >> { %v280_v16 = vadd.f32 %v666_v1, %v279_v10 }
  0x9a   : >> { %v308_v19 = vmul.f32 %v668_v3, %v307_v13 }
  0x9b   : >> { %v284_v25 = vsel %vm834_vm3, %v666_v1, %v280_v16 }
  0x9c   : >> { %v309_v24 = vadd.f32 %v668_v3, %v308_v19  ;;  %v289_v30 = vsel %vm286_vm8, %v288_v23, %v284_v25 }
  0x9d   : >> { %v290_v33 = vmul.f32 %v289_v30, %v275_v28 }
  0x9e   : >> { %v313_v27 = vsel %vm312_vm6, %v668_v3, %v309_v24 }
  0x9f   : >> { %v318_v29 = vsel %vm315_vm7, %v317_v21, %v313_v27  ;;  %v292_v20 = vsel %vm193_vm4, 0.0, %v290_v33 }
  0xa0   : >> { %v319_v31 = vmul.f32 %v318_v29, %v304_v26  ;;  %v335_v35 = vsel %vm846_vm9, %v292_v20, 0.0 }
  0xa2   : >> { %v320_v4 = vsel %vm193_vm4, 0.0, %v319_v31  ;;  %vm383_vm4 = vcmp.ge.s32.totalorder %v366_v5, %v804_v6 }
  0xa3   : >> { %v325_v34 = vsel %vm846_vm9, %v320_v4, 0.0  ;;  %vm384_vm12 = vmand %vm846_vm9, %vm383_vm4 }
  0xa4   : >> { %326 = vadd.xlane.f32.xlu0 %v325_v34 }
  0xac   : >> { %336 = vadd.xlane.f32.xlu0 %v335_v35 }
 0x117   : >> { %v327_v36 = vpop.xlane.xlu0 %326 }
 0x118   : >> { %328 = vst [vmem:[#allocation6] sm:$0xff] %v327_v36 }
 0x119   : >> { %330 = vst [vmem:[%s329_s23] sm:$0x1] %v718_v37 }
 0x11f   : >> { %v337_v40 = vpop.xlane.xlu0 %336 }
 0x120   : >> { %v351_v41 = vld [vmem:[%s346_s26] sm:$0xff]  ;;  %v343_v15 = vsel %vm846_vm9, %v337_v40, %v342_v38  ;;  %s363_s26 = smov %s346_s26 }
 0x121   : >> { %v353_v42 = vmul.f32 %v352_v39, %v351_v41  ;;  %344 = vst [vmem:[%s789_s18] sm:$0x1] %v343_v15  ;;  %v371_v51 = vld [vmem:[%s363_s26] sm:$0xff] }
 0x123   : >> { %v355_v43 = vsel %vm354_vm10, %v353_v42, 0.0 }
 0x124   : >> { %v356_v44 = vrot.slane %v355_v43, 4 }
 0x126   : >> { %v357_v45 = vadd.f32 %v356_v44, %v355_v43 }
 0x128   : >> { %v358_v46 = vrot.slane %v357_v45, 2  ;;  %v403_v6 = vld [vmem:[#allocation4] sm:$0x3] (%p164_p9) }
 0x129   : > { %406 = vst [vmem:[%s146_s15] sm:$0x3] (%p164_p9), %v403_v6 }
 0x12a   : >> { %v359_v47 = vadd.f32 %v358_v46, %v357_v45 }
 0x12c   : >> { %v360_v48 = vrot.slane %v359_v47, 1 }
 0x12e   : >> { %v361_v49 = vadd.f32 %v360_v48, %v359_v47 }
 0x130   : >> { %v367_v50 = vmul.f32 %v361_v49, %v337_v40 }
 0x132   : >> { %v372_v53 = vmul.f32 %v371_v51, %v367_v50 }
 0x134   : >> { %v376_v54 = vsub.f32 %v373_v52, %v372_v53 }
 0x136   : >> { %v377_v55 = vsel %vm375_vm11, %v376_v54, %v373_v52 }
 0x137   : >> { %v385_v56 = vsel %vm384_vm12, %v371_v51, %v377_v55 }
 0x138   : >> { %386 = vst [vmem:[%s362_s24] sm:$0xff] %v385_v56 }
 0x13d   : > { %166 = sbr.rel (!%p164_p9) target bundleno = 41 (0x29), region = 167 }
 0x13f   : >> { %v388_v57 = vld [vmem:[%s387_s27] ss:$0 sm:$0xff] }
 0x140   : >> { %v393_v58 = vsel %vm846_vm9, %v828_v63, %v388_v57 }
 0x141   : >> { %394 = vst [vmem:[%s387_s27] sm:$0x1] %v393_v58 }
 0x142   : > { %p455_p10 = scmp.lt.s32.totalorder (%p769_p3), %s703_s11, 0  ;;  %s456_s4 = ssub.s32 (%p769_p3), 0, %s703_s11  ;;  %v479_v60 = vld [vmem:[%s146_s15] sm:$0x3] (%p769_p3) }
 0x143   : > { %s605_s5 = smin.u32 (%p769_p3), %s703_s11, %s456_s4 }
 0x144   : > { %s458_s6 = sshrl.u32 (%p769_p3), %s605_s5, 3 }
 0x145   : > { %s459_s7 = ssub.s32 (%p769_p3), 0, %s458_s6 }
 0x148   : > { %v397_v5 = vld [vmem:[#allocation2] sm:$0xf] }
 0x149   : > { %400 = vst [vmem:[%s792_s19] sm:$0xf] %v397_v5 }
 0x14d   : > { %454 = sbr.rel (!%p769_p3) target bundleno = 342 (0x156), region = 91 }
 0x150   : > { %v435_v59 = vld [vmem:[%s792_s19] sm:$0xf] }
 0x151   : > { %436 = vst [vmem:[%s418_s3] sm:$0xf] %v435_v59 }
 0x152   : > { %s924_s7 = smov (!%p455_p10, %s459_s7), %s458_s6 }
 0x153   : > { %s606_s16 = sshll.u32 %s924_s7, 1 }
 0x154   : > { %s462_s19 = scalar_lea.vmem %s911_s2, %s606_s16 }
 0x155   : > { %480 = vst [vmem:[%s462_s19] sm:$0x3] %v479_v60 }
 0x156 PF: > { %s9_s13 = sadd.s32 1, %s711_s13   ;;  %s917_s9 = smov %s699_s10 }
 0x157   : > { %p6_p11 = scmp.ge.s32.totalorder %s9_s13, 4   ;;  %s918_s10 = smov %s775_s25 }
 0x158   : > { %s919_s11 = smov %s707_s12  ;;  %s920_s12 = smov %s922_s14 }
 0x159   :  { %8 = sbr.rel (!%p6_p11) target bundleno = 3 (0x3), region = 178 }

// kernel: custom-call.79
= control target key start
LH: loop header
LB: loop body
LE: loop exit
PB: predicated region body
PF: predicated region fallthrough
CT: control target
= control target key end

     0   :  { %s229_s6 = smov 0   ;;  %s253_s0 = inlined_call_operand.vmem [shape: f32[2,2,2], index: 0, kind: input, shape index: {}]   ;;  %s254_s1 = inlined_call_operand.vmem [shape: f32[2,2,2], index: 1, kind: output, shape index: {}]  }
   0x1 LB: > { %s191_s7 = sadd.s32 4294967295, %s217_s6   ;;  %p193_p0 = scmp.ge.s32.totalorder %s217_s6, 2  ;;  %s217_s6 = sphi %s229_s6, %s7_s6  }
   0x2   : > { %s23_s8 = sand.u32 (!%p193_p0), 1, %s217_s6   ;;  %s195_s9 = sshll.u32 (!%p193_p0), %s217_s6, 1 }
   0x3   : > { %21 = sbr.rel (%p193_p0) target bundleno = 10 (0xa), region = 16  ;;  %s194_s10 = sshll.u32 (!%p193_p0), %s23_s8, 1 }
   0x4   : > { %s27_s13 = scalar_lea.vmem (!%p193_p0), %s253_s0, %s195_s9  ;;  %s25_s14 = scalar_lea.vmem (!%p193_p0), [#allocation1], %s194_s10 }
   0x8   : > { %v44_v0 = vld [vmem:[%s27_s13] sm:$0x3] }
   0x9   : > { %45 = vst [vmem:[%s25_s14] sm:$0x3] %v44_v0 }
   0xa PF: > { %p196_p1 = scmp.ge.s32.totalorder %s217_s6, 1  ;;  %p62_p2 = scmp.lt.s32.totalorder %s217_s6, 3 }
   0xc   : > { %p63_p3 = pnand %p196_p1, %p62_p2 }
   0xd   : > { %s73_s15 = sand.u32 (!%p63_p3), 1, %s191_s7   ;;  %s200_s19 = sshll.u32 (!%p63_p3), %s191_s7, 1 }
   0xe   : > { %66 = sbr.rel (%p63_p3) target bundleno = 166 (0xa6), region = 50  ;;  %s197_s16 = sshll.u32 (!%p63_p3), %s73_s15, 1 }
   0xf   : > { %s75_s17 = scalar_lea.vmem (!%p63_p3), [#allocation1], %s197_s16  ;;  %s79_s18 = scalar_lea.vmem (!%p63_p3), [#allocation3], %s197_s16 }
  0x10   : > { %s119_s22 = scalar_lea.vmem (!%p63_p3), %s254_s1, %s200_s19 }
  0x13   : > { %v84_v1 = vlaneseq  ;;  %v82_v2 = vld [vmem:[%s75_s17] sm:$0x3]  ;;  %vm98_vm1 = vcmask 15360  }
  0x14   : > { %83 = vst [vmem:[#allocation0] sm:$0x3] %v82_v2 }
  0x15   : > { %v85_v3 = vand.u32 127, %v84_v1  ;;  %v87_v4 = vshrl.u32 %v84_v1, 7 }
  0x17   : > { %vm93_vm0 = vcmp.eq.s32.totalorder %v85_v3, 0  ;;  %vm89_vm2 = vcmp.eq.s32.totalorder %v85_v3, %v87_v4  ;;  %vm102_vm3 = vcmp.eq.s32.totalorder %v85_v3, 1 }
  0x1b   : > { %v90_v5 = vld [vmem:[#allocation0] sm:$0xff] }
  0x1c   : > { %v97_v6 = vld [vmem:[#allocation0 + $0x1] ss:$0 sm:$0xff]  ;;  %v94_v7 = vsel %vm93_vm0, %v90_v5, 1.0 }
  0x1d   : > { %v99_v8 = vsel %vm98_vm1, %v97_v6, 0.0  ;;  %v95_v9 = vsel %vm89_vm2, %v94_v7, 0.0 }
  0x1e   : > { %v103_v10 = vmul.f32 %v99_v8, %v95_v9 }
  0x20   : > { %104 = vadd.xlane.f32.xlu0 %v103_v10 }
  0x93   : > { %v105_v11 = vpop.xlane.xlu0 %104 }
  0x94   : > { %v106_v12 = vsel %vm102_vm3, %v105_v11, %v95_v9 }
  0x95   : > { %107 = vst [vmem:[#allocation2] sm:$0xff] %v106_v12 }
  0x9c   : > { %v110_v13 = vld [vmem:[#allocation2] sm:$0x3] }
  0x9d   : > { %113 = vst [vmem:[%s79_s18] sm:$0x3] %v110_v13 }
  0xa4   : > { %v136_v14 = vld [vmem:[%s79_s18] sm:$0x3] }
  0xa5   : > { %137 = vst [vmem:[%s119_s22] sm:$0x3] %v136_v14 }
  0xa6 PF: > { %s7_s6 = sadd.s32 1, %s217_s6  }
  0xa7   : > { %p4_p4 = scmp.ge.s32.totalorder %s7_s6, 4  }
  0xa9   :  { %6 = sbr.rel (!%p4_p4) target bundleno = 1 (0x1), region = 111 }

// kernel: custom-call.71
= control target key start
LH: loop header
LB: loop body
LE: loop exit
PB: predicated region body
PF: predicated region fallthrough
CT: control target
= control target key end

     0   :  { %s6_s0 = inlined_call_operand.hbm [shape: pred[2], index: 0, kind: output, shape index: {}]  }

// kernel: custom-call.76
= control target key start
LH: loop header
LB: loop body
LE: loop exit
PB: predicated region body
PF: predicated region fallthrough
CT: control target
= control target key end

     0   :  { %s341_s6 = smov 0   ;;  %s343_s7 = smov 0   ;;  %s388_s0 = inlined_call_operand.vmem [shape: f32[2,2,2], index: 0, kind: input, shape index: {}]   ;;  %s389_s1 = inlined_call_operand.vmem [shape: f32[2,2,2], index: 1, kind: output, shape index: {}]  }
   0x1   :  { %s345_s8 = smov 0  }
   0x2 LB: > { %s265_s9 = sadd.s32 4294967295, %s328_s8   ;;  %s26_s10 = sadd.s32 1, %s324_s7  ;;  %s328_s8 = sphi %s345_s8, %s7_s8   ;;  %s324_s7 = sphi %s343_s7, %s391_s7   ;;  %s320_s6 = sphi %s341_s6, %s390_s6  }
   0x3   : > { %p28_p0 = scmp.ge.s32.totalorder %s26_s10, 2  ;;  %p267_p1 = scmp.ge.s32.totalorder %s328_s8, 2 }
   0x4   : > { %s42_s11 = sand.u32 (!%p267_p1), 1, %s328_s8   ;;  %s269_s12 = sshll.u32 (!%p267_p1), %s324_s7, 1 }
   0x5   : > { %s393_s10 = smov (%p28_p0, %s26_s10), 0  ;;  %40 = sbr.rel (%p267_p1) target bundleno = 12 (0xc), region = 16 }
   0x6   : > { %s268_s13 = sshll.u32 (!%p267_p1), %s42_s11, 1  ;;  %s48_s16 = scalar_lea.vmem (!%p267_p1), %s388_s0, %s269_s12 }
   0x7   : > { %s44_s17 = scalar_lea.vmem (!%p267_p1), [#allocation1], %s268_s13 }
   0xa   : > { %v65_v0 = vld [vmem:[%s48_s16] sm:$0x3] }
   0xb   : > { %66 = vst [vmem:[%s44_s17] sm:$0x3] %v65_v0 }
   0xc PF: > { %p270_p2 = scmp.ge.s32.totalorder %s328_s8, 1  ;;  %p83_p3 = scmp.lt.s32.totalorder %s328_s8, 3 }
   0xe   : > { %p84_p4 = pnand %p270_p2, %p83_p3 }
   0xf   : > { %s368_s18 = sand.u32 (!%p84_p4), 1, %s265_s9   ;;  %s274_s22 = sshll.u32 (!%p84_p4), %s320_s6, 1 }
  0x10   : > { %87 = sbr.rel (%p84_p4) target bundleno = 339 (0x153), region = 50  ;;  %s271_s19 = sshll.u32 (!%p84_p4), %s368_s18, 1 }
  0x11   : > { %s96_s20 = scalar_lea.vmem (!%p84_p4), [#allocation1], %s271_s19  ;;  %s100_s21 = scalar_lea.vmem (!%p84_p4), [#allocation3], %s271_s19 }
  0x12   : > { %s177_s25 = scalar_lea.vmem (!%p84_p4), %s389_s1, %s274_s22 }
  0x15   : > { %v330_v1 = vmov 0.0   ;;  %v103_v5 = vld [vmem:[%s96_s20] sm:$0x3]  ;;  %vm106_vm3 = vcmask 7168   ;;  %vm133_vm5 = vcmask 15368   ;;  %vm159_vm6 = vcmask 1047553  }
  0x16   : > { %105 = vst [vmem:[#allocation2] sm:$0xff] %v330_v1  ;;  %vm160_vm9 = vmand %vm133_vm5, %vm159_vm6 }
  0x17   : > { %104 = vst [vmem:[#allocation0] sm:$0x3] %v103_v5 }
  0x1d   : > { %v107_v2 = vld [vmem:[#allocation2] ss:$0 sm:$0xff] }
  0x1e   : > { %v109_v3 = vmul.f32 %v107_v2, %v107_v2  ;;  %v125_v4 = vmul.f32 0.0, %v107_v2  ;;  %v108_v6 = vld [vmem:[#allocation0] ss:$0 sm:$0xff]  ;;  %v137_v24 = vld [vmem:[#allocation0 + $0x1] ss:$0 sm:$0xff] }
  0x1f   : > { %v123_v14 = vld [vmem:[#allocation0] sm:$0xff] }
  0x20   : > { %110 = vadd.xlane.f32.xlu0 %v109_v3 }
  0x28   : > { %126 = vadd.xlane.f32.xlu0 %v125_v4 }
  0x93   : > { %v111_v7 = vpop.xlane.xlu0 %110 }
  0x94   : > { %v112_v8 = vsub.f32 %v108_v6, %v111_v7 }
  0x96   : > { %302 = vrsqrt.f32 %v112_v8  ;;  %vm119_vm1 = vweird.f32 %v112_v8 }
  0x9b   : > { %v127_v13 = vpop.xlane.xlu0 %126 }
  0x9c   : > { %v303_v9 = vpop.eup %302  ;;  %v128_v16 = vsub.f32 %v123_v14, %v127_v13 }
  0x9d   : > { %v114_v10 = vmul.f32 %v303_v9, %v112_v8  ;;  %vm120_vm0 = vweird.f32 %v303_v9 }
  0x9e   : > { %vm121_vm2 = vmor %vm119_vm1, %vm120_vm0 }
  0x9f   : > { %v115_v11 = vmul.f32 %v303_v9, %v114_v10 }
  0xa1   : > { %v116_v12 = vmul.f32 0.5, %v115_v11 }
  0xa3   : > { %v117_v15 = vsub.f32 1.5, %v116_v12 }
  0xa5   : > { %v118_v17 = vmul.f32 %v303_v9, %v117_v15 }
  0xa7   : > { %v122_v18 = vsel %vm121_vm2, %v303_v9, %v118_v17 }
  0xa8   : > { %v129_v19 = vmul.f32 %v128_v16, %v122_v18 }
  0xaa   : > { %v130_v20 = vsel %vm106_vm3, %v129_v19, 0.0 }
  0xab   : > { %132 = vst [vmem:[#allocation2] sm:$0xff] %v130_v20 }
  0xb2   : > { %v135_v21 = vld [vmem:[#allocation2 + $0x1] ss:$0 sm:$0xff] }
  0xb3   : > { %v138_v22 = vmul.f32 %v135_v21, %v135_v21  ;;  %v154_v23 = vmul.f32 %v135_v21, %v130_v20 }
  0xb5   : > { %139 = vadd.xlane.f32.xlu1 %v138_v22 }
  0xbd   : > { %155 = vadd.xlane.f32.xlu1 %v154_v23 }
 0x128   : > { %v140_v25 = vpop.xlane.xlu1 %139 }
 0x129   : > { %v141_v26 = vsub.f32 %v137_v24, %v140_v25 }
 0x12b   : > { %304 = vrsqrt.f32 %v141_v26  ;;  %vm148_vm7 = vweird.f32 %v141_v26 }
 0x130   : > { %v156_v32 = vpop.xlane.xlu1 %155 }
 0x131   : > { %v305_v27 = vpop.eup %304  ;;  %v157_v34 = vsub.f32 %v123_v14, %v156_v32 }
 0x132   : > { %v143_v28 = vmul.f32 %v305_v27, %v141_v26  ;;  %vm149_vm4 = vweird.f32 %v305_v27 }
 0x133   : > { %vm150_vm8 = vmor %vm148_vm7, %vm149_vm4 }
 0x134   : > { %v144_v29 = vmul.f32 %v305_v27, %v143_v28 }
 0x136   : > { %v145_v30 = vmul.f32 0.5, %v144_v29 }
 0x138   : > { %v146_v31 = vsub.f32 1.5, %v145_v30 }
 0x13a   : > { %v147_v33 = vmul.f32 %v305_v27, %v146_v31 }
 0x13c   : > { %v151_v35 = vsel %vm150_vm8, %v305_v27, %v147_v33 }
 0x13d   : > { %v158_v36 = vmul.f32 %v157_v34, %v151_v35 }
 0x13f   : > { %v161_v37 = vsel %vm160_vm9, %v158_v36, 0.0 }
 0x140   : > { %v162_v38 = vadd.f32 %v161_v37, %v130_v20 }
 0x142   : > { %163 = vst [vmem:[#allocation2] sm:$0xff] %v162_v38 }
 0x149   : > { %v166_v39 = vld [vmem:[#allocation2] sm:$0x3] }
 0x14a   : > { %169 = vst [vmem:[%s100_s21] sm:$0x3] %v166_v39 }
 0x151   : > { %v194_v40 = vld [vmem:[%s100_s21] sm:$0x3] }
 0x152   : > { %195 = vst [vmem:[%s177_s25] sm:$0x3] %v194_v40 }
 0x153 PF: > { %s7_s8 = sadd.s32 1, %s328_s8   ;;  %s390_s6 = smov %s324_s7 }
 0x154   : > { %p4_p5 = scmp.ge.s32.totalorder %s7_s8, 4   ;;  %s391_s7 = smov %s393_s10 }
 0x156   :  { %6 = sbr.rel (!%p4_p5) target bundleno = 2 (0x2), region = 112 }

// kernel: custom-call.77
= control target key start
LH: loop header
LB: loop body
LE: loop exit
PB: predicated region body
PF: predicated region fallthrough
CT: control target
= control target key end

     0   :  { %s363_s6 = smov 0   ;;  %s365_s7 = smov 0   ;;  %s412_s0 = inlined_call_operand.vmem [shape: f32[2,1,2,2], index: 0, kind: input, shape index: {}]   ;;  %s413_s1 = inlined_call_operand.vmem [shape: f32[2,1,2,2], index: 1, kind: output, shape index: {}]  }
   0x1   :  { %s367_s8 = smov 0  }
   0x2 LB: > { %s289_s9 = sadd.s32 4294967295, %s350_s8   ;;  %s33_s10 = sadd.s32 1, %s346_s7  ;;  %s350_s8 = sphi %s367_s8, %s7_s8   ;;  %s346_s7 = sphi %s365_s7, %s415_s7   ;;  %s342_s6 = sphi %s363_s6, %s414_s6  }
   0x3   : > { %p35_p0 = scmp.ge.s32.totalorder %s33_s10, 2  ;;  %p291_p1 = scmp.ge.s32.totalorder %s350_s8, 2 }
   0x4   : > { %s49_s11 = sand.u32 (!%p291_p1), 1, %s350_s8   ;;  %s293_s12 = sshll.u32 (!%p291_p1), %s346_s7, 1 }
   0x5   : > { %s417_s10 = smov (%p35_p0, %s33_s10), 0  ;;  %47 = sbr.rel (%p291_p1) target bundleno = 12 (0xc), region = 16 }
   0x6   : > { %s292_s13 = sshll.u32 (!%p291_p1), %s49_s11, 1  ;;  %s56_s16 = scalar_lea.vmem (!%p291_p1), %s412_s0, %s293_s12 }
   0x7   : > { %s51_s17 = scalar_lea.vmem (!%p291_p1), [#allocation1], %s292_s13 }
   0xa   : > { %v73_v0 = vld [vmem:[%s56_s16] sm:$0x3] }
   0xb   : > { %74 = vst [vmem:[%s51_s17] sm:$0x3] %v73_v0 }
   0xc PF: > { %p294_p2 = scmp.ge.s32.totalorder %s350_s8, 1  ;;  %p91_p3 = scmp.lt.s32.totalorder %s350_s8, 3 }
   0xe   : > { %p92_p4 = pnand %p294_p2, %p91_p3 }
  0x10   : > { %95 = sbr.rel (%p92_p4) target bundleno = 318 (0x13e), region = 50 }
  0x15   : > { %s390_s18 = sand.u32 1, %s289_s9   ;;  %v113_v1 = vlaneseq  ;;  %v352_v20 = vmov -1.0   ;;  %s298_s22 = sshll.u32 %s342_s6, 1 }
  0x16   : > { %s295_s19 = sshll.u32 %s390_s18, 1  ;;  %s196_s25 = scalar_lea.vmem %s413_s1, %s298_s22 }
  0x17   : > { %s104_s20 = scalar_lea.vmem [#allocation1], %s295_s19  ;;  %v114_v3 = vand.u32 127, %v113_v1  ;;  %v117_v4 = vshrl.u32 %v113_v1, 7  ;;  %s108_s21 = scalar_lea.vmem [#allocation3], %s295_s19 }
  0x18   : > { %v111_v2 = vld [vmem:[%s104_s20] sm:$0x3] }
  0x19   : > { %112 = vst [vmem:[#allocation0] sm:$0x3] %v111_v2  ;;  %vm119_vm0 = vcmp.eq.s32.totalorder %v117_v4, %v114_v3  ;;  %vm115_vm1 = vcmp.lt.s32.totalorder %v114_v3, 2  ;;  %vm124_vm2 = vcmp.ge.s32.totalorder %v117_v4, %v114_v3  ;;  %vm151_vm8 = vcmp.eq.s32.totalorder %v114_v3, 0 }
  0x1a   : > { %vm125_vm3 = vmand %vm124_vm2, %vm115_vm1  ;;  %vm148_vm9 = vcmp.eq.s32.totalorder %v114_v3, %v117_v4  ;;  %v152_v21 = vsel %vm151_vm8, 1.0, %v352_v20  ;;  %vm159_vm10 = vcmp.eq.s32.totalorder %v114_v3, 1 }
  0x1b   : > { %v153_v22 = vsel %vm148_vm9, %v152_v21, 0.0 }
  0x20   : > { %v120_v5 = vld [vmem:[#allocation0] sm:$0xff] }
  0x21   : > { %v121_v6 = vsel %vm119_vm0, %v120_v5, 0.0  ;;  %v126_v15 = vsel %vm125_vm3, %v120_v5, 0.0 }
  0x22   : > { %122 = vadd.xlane.f32.xlu0 %v121_v6 }
  0x95   : > { %v123_v7 = vpop.xlane.xlu0 %122 }
  0x96   : > { %326 = vrcp.f32 %v123_v7  ;;  %v138_v11 = vand.u32 2147483648, %v123_v7  ;;  %v136_v13 = vand.u32 2147483647, %v123_v7  ;;  %vm132_vm5 = vweird.f32 %v123_v7 }
  0x98   : > { %v139_v16 = vor.u32 1.1754944e-38, %v138_v11  ;;  %vm137_vm7 = vcmp.eq.f32.partialorder %v136_v13, 8.507059e+37 }
  0x9c   : > { %v327_v8 = vpop.eup %326 }
  0x9d   : > { %v128_v9 = vmul.f32 %v327_v8, %v123_v7  ;;  %vm133_vm4 = vweird.f32 %v327_v8 }
  0x9e   : > { %vm134_vm6 = vmor %vm132_vm5, %vm133_vm4 }
  0x9f   : > { %v129_v10 = vsub.f32 1.0, %v128_v9 }
  0xa1   : > { %v130_v12 = vmul.f32 %v327_v8, %v129_v10 }
  0xa3   : > { %v131_v14 = vadd.f32 %v327_v8, %v130_v12 }
  0xa5   : > { %v135_v17 = vsel %vm134_vm6, %v327_v8, %v131_v14 }
  0xa6   : > { %v140_v18 = vsel %vm137_vm7, %v139_v16, %v135_v17 }
  0xa7   : > { %v141_v19 = vmul.f32 %v140_v18, %v126_v15 }
  0xa9   : > { %142 = vst [vmem:[#allocation4] sm:$0xff] %v141_v19 }
  0xb0   : > { %v155_v23 = vld [vmem:[#allocation4 + $0x1] ss:$0 sm:$0xff] }
  0xb1   : > { %v156_v24 = vxor.u32 2147483648, %v155_v23 }
  0xb3   : > { %v160_v25 = vmul.f32 %v156_v24, %v153_v22 }
  0xb5   : > { %161 = vadd.xlane.f32.xlu0 %v160_v25 }
 0x128   : > { %v162_v26 = vpop.xlane.xlu0 %161 }
 0x129   : > { %v163_v27 = vsel %vm159_vm10, %v162_v26, %v153_v22 }
 0x12a   : > { %v178_v28 = vmul.f32 %v163_v27, %v140_v18 }
 0x12c   : > { %v180_v29 = vsel %vm132_vm5, %v163_v27, %v178_v28 }
 0x12d   : > { %181 = vst [vmem:[#allocation2] sm:$0xff] %v180_v29 }
 0x134   : > { %v184_v30 = vld [vmem:[#allocation2] sm:$0x3] }
 0x135   : > { %187 = vst [vmem:[%s108_s21] sm:$0x3] %v184_v30 }
 0x13c   : > { %v213_v31 = vld [vmem:[%s108_s21] sm:$0x3] }
 0x13d   : > { %214 = vst [vmem:[%s196_s25] sm:$0x3] %v213_v31 }
 0x13e PF: > { %s7_s8 = sadd.s32 1, %s350_s8   ;;  %s414_s6 = smov %s346_s7 }
 0x13f   : > { %p4_p5 = scmp.ge.s32.totalorder %s7_s8, 4   ;;  %s415_s7 = smov %s417_s10 }
 0x141   :  { %6 = sbr.rel (!%p4_p5) target bundleno = 2 (0x2), region = 111 }

// kernel: reverse
= control target key start
LH: loop header
LB: loop body
LE: loop exit
PB: predicated region body
PF: predicated region fallthrough
CT: control target
= control target key end

     0   :  { %v42_v1 = vld [vmem:[#allocation1] sm:$0x3]  ;;  %v52_v3 = vlaneseq  ;;  %s120_s0 = inlined_call_operand.vmem [shape: f32[2,2], index: 0, kind: input, shape index: {}]   ;;  %s121_s1 = inlined_call_operand.vmem [shape: f32[2,2], index: 1, kind: output, shape index: {}]  }
   0x1   :  { %v19_v0 = vld [vmem:[%s120_s0] sm:$0x3]  ;;  %43 = vst [vmem:[#allocation0] sm:$0x3] %v42_v1 }
   0x2   :  { %20 = vst [vmem:[#allocation1 + $0x2] sm:$0x3] %v19_v0  ;;  %v53_v6 = vshrl.u32 %v52_v3, 7 }
   0x4   :  { %vm54_vm0 = vcmp.lt.s32.totalorder %v53_v6, 2 }
   0x8   :  { %v45_v4 = vld [vmem:[#allocation0 + $0x7] ss:$-1 sm:$0xff] }
   0x9   :  { %v39_v2 = vld [vmem:[#allocation1 + $0x2] sm:$0x3]  ;;  %v46_v5 = vrot.slane %v45_v4, 6 }
   0xa   :  { %41 = vst [vmem:[#allocation0 + $0x8] sm:$0x3] %v39_v2 }
   0xb   :  { %47 = vst [vmem:[#allocation2] sm:$0xff] %v46_v5 }
  0x11   :  { %v50_v7 = vld [vmem:[#allocation0 + $0xf] ss:$-1 sm:$0xff] }
  0x12   :  { %v51_v8 = vrot.slane %v50_v7, 6 }
  0x14   :  { %55 = vst.msk [vmem:[#allocation2] sm:$0xff] %vm54_vm0, %v51_v8 }
  0x1b   :  { %v58_v9 = vld [vmem:[#allocation2] sm:$0x3] }
  0x1c   :  { %61 = vst [vmem:[#allocation3] sm:$0x3] %v58_v9 }
  0x23   :  { %v78_v10 = vld [vmem:[#allocation3] sm:$0x3] }
  0x24   :  { %79 = vst [vmem:[%s121_s1] sm:$0x3] %v78_v10 }

// kernel: custom-call.20
= control target key start
LH: loop header
LB: loop body
LE: loop exit
PB: predicated region body
PF: predicated region fallthrough
CT: control target
= control target key end

     0   :  { %s734_s9 = smov 0   ;;  %s736_s10 = smov 0   ;;  %s909_s0 = inlined_call_operand.vmem [shape: f32[2,2,2], index: 0, kind: input, shape index: {}]   ;;  %s910_s1 = inlined_call_operand.vmem [shape: f32[2,2,2], index: 1, kind: output, shape index: {0}]   ;;  %s911_s2 = inlined_call_operand.vmem [shape: f32[2,2], index: 2, kind: output, shape index: {1}]  }
   0x1   :  { %s738_s11 = smov 0   ;;  %s740_s12 = smov 0  }
   0x2   :  { %s742_s13 = smov 0  }
   0x3 LB: > { %s28_s14 = sadd.s32 1, %s707_s12  ;;  %s589_s15 = sadd.s32 4294967295, %s711_s13   ;;  %s711_s13 = sphi %s742_s13, %s9_s13   ;;  %s707_s12 = sphi %s740_s12, %s920_s12   ;;  %s703_s11 = sphi %s738_s11, %s919_s11   ;;  %s699_s10 = sphi %s736_s10, %s918_s10   ;;  %s695_s9 = sphi %s734_s9, %s917_s9  }
   0x4   : > { %p30_p0 = scmp.ge.s32.totalorder %s28_s14, 2  ;;  %s33_s16 = ssub.s32 0, %s707_s12 }
   0x5   : > { %s591_s17 = smin.u32 %s707_s12, %s33_s16  ;;  %p57_p1 = scmp.ne.s32.totalorder %s699_s10, %s695_s9 }
   0x6   : > { %s922_s14 = smov (%p30_p0, %s28_s14), 0  ;;  %s35_s18 = sshrl.u32 %s591_s17, 3 }
   0x7   : > { %s39_s19 = ssub.s32 0, %s922_s14  ;;  %p58_p2 = scmp.eq.s32.totalorder %s589_s15, 1 }
   0x8   : > { %s592_s20 = smin.u32 %s39_s19, %s922_s14  ;;  %s47_s24 = sadd.s32 1, %s699_s10 }
   0x9   : > { %s41_s21 = sshrl.u32 %s592_s20, 3  ;;  %p769_p3 = por %p58_p2, %p57_p1 }
   0xa   : > { %s44_s23 = ssub.s32 %s35_s18, %s41_s21  ;;  %p594_p5 = scmp.ge.s32.totalorder %s711_s13, 2 }
   0xb   : > { %p45_p4 = scmp.eq.s32.totalorder %s44_s23, 0  ;;  %s82_s26 = sand.u32 (!%p594_p5), 1, %s711_s13  }
   0xc   : > { %80 = sbr.rel (%p594_p5) target bundleno = 19 (0x13), region = 16  ;;  %s596_s27 = sshll.u32 (!%p594_p5), %s707_s12, 1 }
   0xd   : > { %s775_s25 = scalar_select %p45_p4, %s699_s10, %s47_s24  }
   0xe   : > { %s595_s28 = sshll.u32 (!%p594_p5), %s82_s26, 1  ;;  %s88_s3 = scalar_lea.vmem (!%p594_p5), %s909_s0, %s596_s27 }
   0xf   : > { %s84_s4 = scalar_lea.vmem (!%p594_p5), [#allocation1], %s595_s28 }
  0x11   : > { %v105_v0 = vld [vmem:[%s88_s3] sm:$0x3] }
  0x12   : > { %106 = vst [vmem:[%s84_s4] sm:$0x3] %v105_v0 }
  0x13 PF: > { %p597_p6 = scmp.ge.s32.totalorder %s711_s13, 1  ;;  %p123_p7 = scmp.lt.s32.totalorder %s711_s13, 3 }
  0x15   : > { %p124_p8 = pnand %p597_p6, %p123_p7 }
  0x17   : > { %127 = sbr.rel (%p124_p8) target bundleno = 342 (0x156), region = 50 }
  0x1c   : > { %s134_s5 = sand.u32 1, %s589_s15   ;;  %s144_s6 = sand.u32 1, %s695_s9   ;;  %v717_v2 = vmov 0.0  }
  0x1d   : > { %s598_s7 = sshll.u32 %s134_s5, 1  ;;  %s786_s8 = sshll.u32 %s144_s6, 1 }
  0x1e   : > { %s136_s16 = scalar_lea.vmem [#allocation1], %s598_s7  ;;  %s157_s17 = sand.u32 7, %s703_s11  }
  0x1f   : > { %v149_v1 = vld [vmem:[%s136_s16] sm:$0x3]  ;;  %s789_s18 = scalar_lea.vmem [#allocation4], %s157_s17  ;;  %s792_s19 = scalar_lea.vmem [#allocation3], %s598_s7 }
  0x20   : > { %150 = vst [vmem:[#allocation0] sm:$0x3] %v149_v1  ;;  %s146_s15 = scalar_lea.vmem [#allocation5], %s786_s8  ;;  %s795_s20 = smov 0  }
  0x21   : > { %161 = vst [vmem:[%s789_s18] sm:$0x1] %v717_v2 }
  0x27   : > { %v159_v3 = vld [vmem:[#allocation0] sm:$0xff] }
  0x28   : > { %160 = vst [vmem:[#allocation2] sm:$0xff] %v159_v3 }
  0x29 LB: >> { %v169_v4 = vlaneseq  ;;  %v804_v6 = vstv %s715_s20  ;;  %s201_s9 = scalar_lea.vmem [#allocation2], %s715_s20  ;;  %s294_s21 = smov [#allocation2]  ;;  %s715_s20 = sphi %s795_s20, %s167_s20  }
  0x2a   : >> { %s329_s23 = scalar_lea.vmem [#allocation6], %s715_s20  ;;  %s345_s24 = smov [#allocation2] }
  0x2b   : >> { %v801_v5 = vshrl.u32 %v169_v4, 7  ;;  %s346_s26 = smov [#allocation6] }
  0x2d   : >> { %vm173_vm0 = vcmp.gt.s32.totalorder %v801_v5, %v804_v6  ;;  %vm174_vm1 = vcmp.lt.s32.totalorder %v801_v5, 2  ;;  %v297_v5 = vmov %v801_v5 }
  0x2e   : >> { %vm175_vm2 = vmand %vm173_vm0, %vm174_vm1  ;;  %vm301_vm13 = vcmp.gt.s32.totalorder %v297_v5, %v804_v6  ;;  %vm302_vm14 = vcmp.lt.s32.totalorder %v297_v5, 2  ;;  %v349_v5 = vmov %v801_v5 }
  0x2f   : >> { %v168_v7 = vld [vmem:[#allocation2] sm:$0xff]  ;;  %v814_v20 = vld [vmem:[%s201_s9] ss:$0 sm:$0xff] }
  0x30   : >> { %v176_v8 = vsel %vm175_vm2, %v168_v7, 0.0  ;;  %v203_v23 = vand.u32 2147483647, %v814_v20  ;;  %vm272_vm12 = vcmp.lt.f32.partialorder %v814_v20, 0.0 }
  0x31   : >> { %v177_v9 = vmul.f32 %v176_v8, %v176_v8 }
  0x32   : >> { %v204_v27 = vmax.f32 %v203_v23, 0.0 }
  0x33   : >> { %v178_v10 = vrot.slane %v177_v9, 4 }
  0x35   : >> { %v179_v11 = vadd.f32 %v178_v10, %v177_v9 }
  0x37   : >> { %v180_v12 = vrot.slane %v179_v11, 2 }
  0x39   : >> { %v181_v13 = vadd.f32 %v180_v12, %v179_v11 }
  0x3b   : >> { %v182_v14 = vrot.slane %v181_v13, 1 }
  0x3d   : >> { %v809_v15 = vadd.f32 %v182_v14, %v181_v13 }
  0x3f   : >> { %659 = vrsqrt.f32 %v809_v15  ;;  %vm191_vm3 = vcmp.eq.f32.partialorder %v809_v15, inf  ;;  %v194_v24 = vand.u32 2147483648, %v809_v15  ;;  %vm193_vm4 = vcmp.eq.f32.partialorder %v809_v15, 0.0 }
  0x45   : >> { %v660_v16 = vpop.eup %659 }
  0x46   : >> { %v185_v17 = vmul.f32 %v660_v16, %v809_v15 }
  0x48   : >> { %v186_v18 = vmul.f32 %v660_v16, %v185_v17 }
  0x4a   : >> { %v187_v19 = vmul.f32 0.5, %v186_v18  ;;  %v298_v18 = vld [vmem:[%s294_s21] sm:$0xff] }
  0x4c   : >> { %v188_v21 = vsub.f32 1.5, %v187_v19 }
  0x4e   : >> { %v189_v22 = vmul.f32 %v660_v16, %v188_v21 }
  0x50   : >> { %v190_v25 = vmul.f32 %v189_v22, %v809_v15  ;;  %v323_v22 = vand.u32 127, %v169_v4 }
  0x52   : >> { %v192_v26 = vsel %vm191_vm3, %v809_v15, %v190_v25 }
  0x53   : >> { %v195_v28 = vsel %vm193_vm4, %v194_v24, %v192_v26 }
  0x54   : >> { %v205_v29 = vand.u32 2147483647, %v195_v28 }
  0x56   : >> { %v206_v30 = vmax.f32 %v204_v27, %v205_v29 }
  0x58   : >> { %661 = vrcp.f32 %v206_v30  ;;  %v218_v33 = vand.u32 2147483648, %v206_v30  ;;  %vm212_vm5 = vweird.f32 %v206_v30  ;;  %v216_v35 = vand.u32 2147483647, %v206_v30 }
  0x59   : >> { %vm257_vm11 = vcmp.eq.f32.partialorder %v206_v30, 0.0 }
  0x5a   : >> { %v219_v37 = vor.u32 1.1754944e-38, %v218_v33  ;;  %vm217_vm8 = vcmp.eq.f32.partialorder %v216_v35, 8.507059e+37 }
  0x5e   : >> { %v662_v31 = vpop.eup %661 }
  0x5f   : >> { %v208_v32 = vmul.f32 %v662_v31, %v206_v30  ;;  %vm213_vm6 = vweird.f32 %v662_v31 }
  0x60   : >> { %vm214_vm7 = vmor %vm212_vm5, %vm213_vm6 }
  0x61   : >> { %v209_v34 = vsub.f32 1.0, %v208_v32  ;;  %vm303_vm5 = vmand %vm301_vm13, %vm302_vm14 }
  0x62   : >> { %v304_v26 = vsel %vm303_vm5, %v298_v18, 0.0 }
  0x63   : >> { %v210_v36 = vmul.f32 %v662_v31, %v209_v34 }
  0x65   : >> { %v211_v38 = vadd.f32 %v662_v31, %v210_v36 }
  0x67   : >> { %v215_v39 = vsel %vm214_vm7, %v662_v31, %v211_v38  ;;  %v342_v38 = vld [vmem:[%s789_s18] ss:$0 sm:$0xff] }
  0x68   : >> { %v220_v40 = vsel %vm217_vm8, %v219_v37, %v215_v39  ;;  %v718_v37 = vmov 1.0   ;;  %v352_v39 = vld [vmem:[%s345_s24] sm:$0xff]  ;;  %s362_s24 = smov %s345_s24 }
  0x69   : >> { %v221_v41 = vmul.f32 %v220_v40, %v203_v23  ;;  %v237_v42 = vmul.f32 0.0, %v220_v40  ;;  %v254_v43 = vmul.f32 %v220_v40, %v205_v29  ;;  %s387_s27 = scalar_lea.vmem %s362_s24, %s715_s20  ;;  %s167_s20 = sadd.s32 1, %s715_s20  }
  0x6a   : >> { %p164_p9 = scmp.ge.s32.totalorder %s167_s20, 2  }
  0x6b   : >> { %v222_v44 = vmul.f32 %v221_v41, %v221_v41  ;;  %v238_v45 = vmul.f32 %v237_v42, %v237_v42  ;;  %v255_v46 = vmul.f32 %v254_v43, %v254_v43  ;;  %s604_s28 = sshll.u32 (%p164_p9), %s703_s11, 1 }
  0x6c   : > { %s418_s3 = scalar_lea.vmem (%p164_p9), %s910_s1, %s604_s28 }
  0x6d   : >> { %v239_v47 = vadd.f32 %v238_v45, %v222_v44 }
  0x6f   : >> { %v256_v48 = vadd.f32 %v255_v46, %v239_v47 }
  0x71   : >> { %663 = vrsqrt.f32 %v256_v48  ;;  %vm265_vm9 = vcmp.eq.f32.partialorder %v256_v48, inf  ;;  %v268_v55 = vand.u32 2147483648, %v256_v48  ;;  %vm267_vm10 = vcmp.eq.f32.partialorder %v256_v48, 0.0 }
  0x77   : >> { %v664_v49 = vpop.eup %663 }
  0x78   : >> { %v259_v50 = vmul.f32 %v664_v49, %v256_v48 }
  0x7a   : >> { %v260_v51 = vmul.f32 %v664_v49, %v259_v50 }
  0x7c   : >> { %v261_v52 = vmul.f32 0.5, %v260_v51 }
  0x7e   : >> { %v262_v53 = vsub.f32 1.5, %v261_v52  ;;  %v373_v52 = vld [vmem:[%s362_s24] sm:$0xff] }
  0x80   : >> { %v263_v54 = vmul.f32 %v664_v49, %v262_v53 }
  0x82   : >> { %v264_v56 = vmul.f32 %v263_v54, %v256_v48 }
  0x84   : >> { %v266_v57 = vsel %vm265_vm9, %v256_v48, %v264_v56  ;;  %vm846_vm9 = vcmp.eq.s32.totalorder %v323_v22, %v804_v6 }
  0x85   : >> { %v269_v58 = vsel %vm267_vm10, %v268_v55, %v266_v57  ;;  %vm354_vm10 = vcmp.lt.s32.totalorder %v349_v5, 2  ;;  %v366_v5 = vmov %v801_v5 }
  0x86   : >> { %v270_v59 = vmul.f32 %v269_v58, %v206_v30 }
  0x88   : >> { %v271_v60 = vsel %vm257_vm11, 0.0, %v270_v59  ;;  %vm375_vm11 = vcmp.gt.s32.totalorder %v323_v22, %v804_v6 }
  0x89   : >> { %v273_v61 = vxor.u32 2147483648, %v271_v60 }
  0x8b   : >> { %v274_v62 = vsel %vm272_vm12, %v271_v60, %v273_v61 }
  0x8c   : >> { %v828_v63 = vsel %vm193_vm4, %v814_v20, %v274_v62  ;;  %665 = vrcp.f32 %v274_v62  ;;  %vm281_vm15 = vweird.f32 %v274_v62  ;;  %v285_v11 = vand.u32 2147483647, %v274_v62 }
  0x8d   : >> { %v293_v0 = vsub.f32 %v814_v20, %v828_v63  ;;  %v287_v12 = vand.u32 2147483648, %v274_v62  ;;  %v275_v28 = vsub.f32 %v274_v62, %v814_v20 }
  0x8e   : >> { %vm286_vm8 = vcmp.eq.f32.partialorder %v285_v11, 8.507059e+37 }
  0x8f   : >> { %667 = vrcp.f32 %v293_v0  ;;  %v316_v9 = vand.u32 2147483648, %v293_v0  ;;  %vm310_vm1 = vweird.f32 %v293_v0  ;;  %v314_v14 = vand.u32 2147483647, %v293_v0 }
  0x90   : >> { %v288_v23 = vor.u32 1.1754944e-38, %v287_v12 }
  0x91   : >> { %v317_v21 = vor.u32 1.1754944e-38, %v316_v9  ;;  %vm315_vm7 = vcmp.eq.f32.partialorder %v314_v14, 8.507059e+37 }
  0x92   : >> { %v666_v1 = vpop.eup %665 }
  0x93   : >> { %v277_v2 = vmul.f32 %v666_v1, %v274_v62  ;;  %vm282_vm0 = vweird.f32 %v666_v1 }
  0x94   : >> { %vm834_vm3 = vmor %vm281_vm15, %vm282_vm0 }
  0x95   : >> { %v668_v3 = vpop.eup %667  ;;  %v278_v7 = vsub.f32 1.0, %v277_v2 }
  0x96   : >> { %v306_v8 = vmul.f32 %v668_v3, %v293_v0  ;;  %vm311_vm2 = vweird.f32 %v668_v3 }
  0x97   : >> { %v279_v10 = vmul.f32 %v666_v1, %v278_v7  ;;  %vm312_vm6 = vmor %vm310_vm1, %vm311_vm2 }
  0x98   : >> { %v307_v13 = vsub.f32 1.0, %v306_v8 }
  0x99   : >> { %v280_v16 = vadd.f32 %v666_v1, %v279_v10 }
  0x9a   : >> { %v308_v19 = vmul.f32 %v668_v3, %v307_v13 }
  0x9b   : >> { %v284_v25 = vsel %vm834_vm3, %v666_v1, %v280_v16 }
  0x9c   : >> { %v309_v24 = vadd.f32 %v668_v3, %v308_v19  ;;  %v289_v30 = vsel %vm286_vm8, %v288_v23, %v284_v25 }
  0x9d   : >> { %v290_v33 = vmul.f32 %v289_v30, %v275_v28 }
  0x9e   : >> { %v313_v27 = vsel %vm312_vm6, %v668_v3, %v309_v24 }
  0x9f   : >> { %v318_v29 = vsel %vm315_vm7, %v317_v21, %v313_v27  ;;  %v292_v20 = vsel %vm193_vm4, 0.0, %v290_v33 }
  0xa0   : >> { %v319_v31 = vmul.f32 %v318_v29, %v304_v26  ;;  %v335_v35 = vsel %vm846_vm9, %v292_v20, 0.0 }
  0xa2   : >> { %v320_v4 = vsel %vm193_vm4, 0.0, %v319_v31  ;;  %vm383_vm4 = vcmp.ge.s32.totalorder %v366_v5, %v804_v6 }
  0xa3   : >> { %v325_v34 = vsel %vm846_vm9, %v320_v4, 0.0  ;;  %vm384_vm12 = vmand %vm846_vm9, %vm383_vm4 }
  0xa4   : >> { %326 = vadd.xlane.f32.xlu0 %v325_v34 }
  0xac   : >> { %336 = vadd.xlane.f32.xlu0 %v335_v35 }
 0x117   : >> { %v327_v36 = vpop.xlane.xlu0 %326 }
 0x118   : >> { %328 = vst [vmem:[#allocation6] sm:$0xff] %v327_v36 }
 0x119   : >> { %330 = vst [vmem:[%s329_s23] sm:$0x1] %v718_v37 }
 0x11f   : >> { %v337_v40 = vpop.xlane.xlu0 %336 }
 0x120   : >> { %v351_v41 = vld [vmem:[%s346_s26] sm:$0xff]  ;;  %v343_v15 = vsel %vm846_vm9, %v337_v40, %v342_v38  ;;  %s363_s26 = smov %s346_s26 }
 0x121   : >> { %v353_v42 = vmul.f32 %v352_v39, %v351_v41  ;;  %344 = vst [vmem:[%s789_s18] sm:$0x1] %v343_v15  ;;  %v371_v51 = vld [vmem:[%s363_s26] sm:$0xff] }
 0x123   : >> { %v355_v43 = vsel %vm354_vm10, %v353_v42, 0.0 }
 0x124   : >> { %v356_v44 = vrot.slane %v355_v43, 4 }
 0x126   : >> { %v357_v45 = vadd.f32 %v356_v44, %v355_v43 }
 0x128   : >> { %v358_v46 = vrot.slane %v357_v45, 2  ;;  %v403_v6 = vld [vmem:[#allocation4] sm:$0x3] (%p164_p9) }
 0x129   : > { %406 = vst [vmem:[%s146_s15] sm:$0x3] (%p164_p9), %v403_v6 }
 0x12a   : >> { %v359_v47 = vadd.f32 %v358_v46, %v357_v45 }
 0x12c   : >> { %v360_v48 = vrot.slane %v359_v47, 1 }
 0x12e   : >> { %v361_v49 = vadd.f32 %v360_v48, %v359_v47 }
 0x130   : >> { %v367_v50 = vmul.f32 %v361_v49, %v337_v40 }
 0x132   : >> { %v372_v53 = vmul.f32 %v371_v51, %v367_v50 }
 0x134   : >> { %v376_v54 = vsub.f32 %v373_v52, %v372_v53 }
 0x136   : >> { %v377_v55 = vsel %vm375_vm11, %v376_v54, %v373_v52 }
 0x137   : >> { %v385_v56 = vsel %vm384_vm12, %v371_v51, %v377_v55 }
 0x138   : >> { %386 = vst [vmem:[%s362_s24] sm:$0xff] %v385_v56 }
 0x13d   : > { %166 = sbr.rel (!%p164_p9) target bundleno = 41 (0x29), region = 167 }
 0x13f   : >> { %v388_v57 = vld [vmem:[%s387_s27] ss:$0 sm:$0xff] }
 0x140   : >> { %v393_v58 = vsel %vm846_vm9, %v828_v63, %v388_v57 }
 0x141   : >> { %394 = vst [vmem:[%s387_s27] sm:$0x1] %v393_v58 }
 0x142   : > { %p455_p10 = scmp.lt.s32.totalorder (%p769_p3), %s703_s11, 0  ;;  %s456_s4 = ssub.s32 (%p769_p3), 0, %s703_s11  ;;  %v479_v60 = vld [vmem:[%s146_s15] sm:$0x3] (%p769_p3) }
 0x143   : > { %s605_s5 = smin.u32 (%p769_p3), %s703_s11, %s456_s4 }
 0x144   : > { %s458_s6 = sshrl.u32 (%p769_p3), %s605_s5, 3 }
 0x145   : > { %s459_s7 = ssub.s32 (%p769_p3), 0, %s458_s6 }
 0x148   : > { %v397_v5 = vld [vmem:[#allocation2] sm:$0x3] }
 0x149   : > { %400 = vst [vmem:[%s792_s19] sm:$0x3] %v397_v5 }
 0x14d   : > { %454 = sbr.rel (!%p769_p3) target bundleno = 342 (0x156), region = 91 }
 0x150   : > { %v435_v59 = vld [vmem:[%s792_s19] sm:$0x3] }
 0x151   : > { %436 = vst [vmem:[%s418_s3] sm:$0x3] %v435_v59 }
 0x152   : > { %s924_s7 = smov (!%p455_p10, %s459_s7), %s458_s6 }
 0x153   : > { %s606_s16 = sshll.u32 %s924_s7, 1 }
 0x154   : > { %s462_s19 = scalar_lea.vmem %s911_s2, %s606_s16 }
 0x155   : > { %480 = vst [vmem:[%s462_s19] sm:$0x3] %v479_v60 }
 0x156 PF: > { %s9_s13 = sadd.s32 1, %s711_s13   ;;  %s917_s9 = smov %s699_s10 }
 0x157   : > { %p6_p11 = scmp.ge.s32.totalorder %s9_s13, 4   ;;  %s918_s10 = smov %s775_s25 }
 0x158   : > { %s919_s11 = smov %s707_s12  ;;  %s920_s12 = smov %s922_s14 }
 0x159   :  { %8 = sbr.rel (!%p6_p11) target bundleno = 3 (0x3), region = 178 }

// kernel: _macenko_forward.6
= control target key start
LH: loop header
LB: loop body
LE: loop exit
PB: predicated region body
PF: predicated region fallthrough
CT: control target
= control target key end

     0   :  { %s658_s12 = smov [#allocation3]   ;;  %s858_s0 = inlined_call_operand.vmem [shape: f32[2,6], index: 0, kind: input, shape index: {}]   ;;  %s859_s1 = inlined_call_operand.vmem [shape: s8[2,3,64,128], index: 1, kind: input, shape index: {}]   ;;  %s860_s2 = inlined_call_operand.vmem [shape: f32[2,2,64,128], index: 2, kind: output, shape index: {}]  }
   0x1   :  { %s8_s11 = sshll.u32 %s858_s0, 4  ;;  %s9_s11 = int_to_ptr.vmem [resolvable:$true] %s8_s11 }
   0x2   :  { %11 = dma.vmem_to_smem %s9_s11, 32, %s658_s12, [#allocation2] }
   0x3   :  { %628 = dma.done.wait [#allocation2], 32 }
   0x4   :  { %629 = vsyncadd [#allocation2], 4294967264 }
   0x5   :  { %14 = sfence }
   0x6   :  { %s677_s13 = smov 0   ;;  %s679_s14 = smov 0  }
   0x7   :  { %s681_s15 = smov 0   ;;  %s683_s16 = smov 0  }
   0x8   :  { %s685_s17 = smov 0   ;;  %s687_s18 = smov 0  }
   0x9   :  { %s689_s19 = smov 0  }
   0xa LB: > { %s29_s0 = sadd.s32 1, %s648_s17  ;;  %s32_s20 = sadd.s32 1, %s652_s18  ;;  %s656_s19 = sphi %s689_s19, %s20_s19   ;;  %s652_s18 = sphi %s687_s18, %s867_s18   ;;  %s648_s17 = sphi %s685_s17, %s866_s17   ;;  %s644_s16 = sphi %s683_s16, %s865_s16   ;;  %s640_s15 = sphi %s681_s15, %s864_s15   ;;  %s636_s14 = sphi %s679_s14, %s863_s14   ;;  %s632_s13 = sphi %s677_s13, %s862_s13  }
   0xb   : > { %p30_p0 = scmp.ge.s32.totalorder %s29_s0, 2  ;;  %s484_s21 = sadd.s32 4294967295, %s656_s19  }
   0xc   : > { %p48_p1 = scmp.ne.s32.totalorder %s636_s14, %s632_s13  ;;  %p49_p2 = scmp.eq.s32.totalorder %s656_s19, 0 }
   0xd   : > { %s869_s0 = smov (%p30_p0, %s29_s0), 0  ;;  %s871_s20 = smov (!%p30_p0, %s32_s20), %s652_s18 }
   0xe   : > { %p34_p3 = scmp.ge.s32.totalorder %s871_s20, 2  ;;  %p80_p4 = scmp.eq.s32.totalorder %s484_s21, 3 }
   0xf   : > { %s37_s22 = ssub.s32 %s648_s17, %s869_s0  ;;  %p50_p5 = por %p49_p2, %p48_p1 }
  0x10   : > { %s873_s20 = smov (%p34_p3, %s871_s20), 0  ;;  %p725_p6 = por %p80_p4, %p48_p1 }
  0x11   : > { %s36_s24 = ssub.s32 %s652_s18, %s873_s20  ;;  %s41_s26 = sadd.s32 1, %s636_s14 }
  0x12   : > { %s38_s25 = sor.u32 %s37_s22, %s36_s24  ;;  %p487_p8 = scmp.ge.s32.totalorder %s656_s19, 4 }
  0x13   : > { %p39_p7 = scmp.eq.s32.totalorder %s38_s25, 0 }
  0x14   : > { %102 = sbr.rel (%p487_p8) target bundleno = 35 (0x23), region = 16 }
  0x15   : > { %s733_s27 = scalar_select %p39_p7, %s636_s14, %s41_s26  }
  0x19   : > { %105 = sbr.rel (!%p50_p5) target bundleno = 35 (0x23), region = 20  ;;  %s107_s28 = sand.u32 (%p50_p5), 1, %s636_s14  }
  0x1a   : > { %s505_s29 = smul.u32 (%p50_p5), 6, %s652_s18 }
  0x1b   : > { %s504_s30 = smul.u32 (%p50_p5), 24, %s107_s28 }
  0x1c   : > { %s111_s3 = sadd.s32 (%p50_p5), %s648_s17, %s505_s29 }
  0x1d   : > { %s488_s4 = sshll.u32 (%p50_p5), %s111_s3, 3  ;;  %s109_s8 = scalar_lea.vmem (%p50_p5), [#allocation4], %s504_s30 }
  0x1e   : > { %s113_s7 = scalar_lea.vmem %s859_s1, %s488_s4 }
  0x1f   : > { %v146_v0 = vld [vmem:[%s113_s7] sm:$0xff]  ;;  %v148_v1 = vld [vmem:[%s113_s7 + $0x10] sm:$0xff] }
  0x20   : > { %v150_v2 = vld [vmem:[%s113_s7 + $0x20] sm:$0xff]  ;;  %147 = vst [vmem:[%s109_s8] sm:$0xff] %v146_v0 }
  0x21   : > { %149 = vst [vmem:[%s109_s8 + $0x8] sm:$0xff] %v148_v1 }
  0x22   : > { %151 = vst [vmem:[%s109_s8 + $0x10] sm:$0xff] %v150_v2 }
  0x23 PF: > { %p489_p9 = scmp.ge.s32.totalorder %s656_s19, 1  ;;  %p156_p10 = scmp.lt.s32.totalorder %s656_s19, 5 }
  0x25   : > { %p157_p11 = pnand %p489_p9, %p156_p10 }
  0x26   : > { %s163_s9 = sand.u32 (!%p157_p11), 1, %s632_s13   ;;  %s748_s12 = sshll.u32 (!%p157_p11), %s644_s16, 7 }
  0x27   : > { %160 = sbr.rel (%p157_p11) target bundleno = 92 (0x5c), region = 58  ;;  %s278_s21 = sadd.s32 (!%p157_p11), 1, %s748_s12 }
  0x28   : > { %s506_s10 = smul.u32 (!%p157_p11), 24, %s163_s9  ;;  %s289_s22 = sadd.s32 (!%p157_p11), 2, %s748_s12 }
  0x29   : > { %s753_s24 = sld [smem:[#allocation3 + %s748_s12]] (!%p157_p11)  ;;  %s300_s25 = sadd.s32 (!%p157_p11), 3, %s748_s12 }
  0x2a   : > { %s165_s11 = scalar_lea.vmem (!%p157_p11), [#allocation4], %s506_s10  ;;  %s756_s26 = sld [smem:[#allocation3 + %s278_s21]] (!%p157_p11) }
  0x2b   : > { %s307_s28 = sadd.s32 (!%p157_p11), 4, %s748_s12  ;;  %s759_s29 = sld [smem:[#allocation3 + %s289_s22]] (!%p157_p11) }
  0x2c   : > { %v182_v3 = vld [vmem:[%s165_s11] sm:$0xff]  ;;  %v491_v4 = vld [vmem:[%s165_s11 + $0x8] sm:$0xff]  ;;  %v492_v5 = vld [vmem:[%s165_s11 + $0x10] sm:$0xff]  ;;  %s318_s30 = sadd.s32 5, %s748_s12  ;;  %s762_s3 = sld [smem:[#allocation3 + %s300_s25]] }
  0x2d   : > { %v183_v6 = vunpack.c.0.s8 %v182_v3  ;;  %v213_v7 = vunpack.c.0.s8 %v491_v4  ;;  %v243_v8 = vunpack.c.0.s8 %v492_v5  ;;  %v184_v9 = vunpack.c.1.s8 %v182_v3  ;;  %s764_s4 = sld [smem:[#allocation3 + %s307_s28]]  ;;  %s490_s6 = sshll.u32 %s163_s9, 6 }
  0x2e   : > { %v214_v10 = vunpack.c.1.s8 %v491_v4  ;;  %v244_v11 = vunpack.c.1.s8 %v492_v5  ;;  %v185_v12 = vunpack.c.2.s8 %v182_v3  ;;  %v215_v20 = vunpack.c.2.s8 %v491_v4  ;;  %s766_s5 = sld [smem:[#allocation3 + %s318_s30]]  ;;  %s797_s13 = scalar_lea.vmem [#allocation5], %s490_s6 }
  0x2f   : > { %v187_v13 = vcvt.s32.f32 %v183_v6  ;;  %v217_v14 = vcvt.s32.f32 %v213_v7  ;;  %v247_v15 = vcvt.s32.f32 %v243_v8  ;;  %v188_v16 = vcvt.s32.f32 %v184_v9  ;;  %s499_s7 = sshll.u32 (%p725_p6), %s640_s15, 2  ;;  %s500_s8 = sshll.u32 (%p725_p6), %s644_s16, 4 }
  0x30   : > { %v218_v17 = vcvt.s32.f32 %v214_v10  ;;  %v248_v18 = vcvt.s32.f32 %v244_v11  ;;  %v189_v19 = vcvt.s32.f32 %v185_v12  ;;  %v219_v34 = vcvt.s32.f32 %v215_v20  ;;  %s347_s9 = sadd.s32 (%p725_p6), %s500_s8, %s499_s7 }
  0x31   : > { %v191_v21 = vadd.f32 128.0, %v187_v13  ;;  %v221_v22 = vadd.f32 128.0, %v217_v14  ;;  %v251_v23 = vadd.f32 128.0, %v247_v15  ;;  %v192_v24 = vadd.f32 128.0, %v188_v16  ;;  %s501_s10 = sshll.u32 (%p725_p6), %s347_s9, 3 }
  0x32   : > { %v222_v25 = vadd.f32 128.0, %v218_v17  ;;  %v252_v26 = vadd.f32 128.0, %v248_v18  ;;  %v193_v27 = vadd.f32 128.0, %v189_v19  ;;  %v245_v35 = vunpack.c.2.s8 %v492_v5  ;;  %s349_s23 = scalar_lea.vmem (%p725_p6), %s860_s2, %s501_s10 }
  0x33   : > { %v195_v28 = vmax.f32 %v191_v21, 1.0  ;;  %v225_v29 = vmax.f32 %v221_v22, 1.0  ;;  %v255_v30 = vmax.f32 %v251_v23, 1.0  ;;  %v196_v31 = vmax.f32 %v192_v24, 1.0 }
  0x34   : > { %v226_v32 = vmax.f32 %v222_v25, 1.0  ;;  %v256_v33 = vmax.f32 %v252_v26, 1.0  ;;  %v186_v36 = vunpack.c.3.s8 %v182_v3  ;;  %v197_v37 = vmax.f32 %v193_v27, 1.0 }
  0x35   : > { %564 = vlog2.f32 %v195_v28  ;;  %v216_v38 = vunpack.c.3.s8 %v491_v4  ;;  %v246_v39 = vunpack.c.3.s8 %v492_v5  ;;  %v223_v40 = vadd.f32 128.0, %v219_v34 }
  0x36   : > { %566 = vlog2.f32 %v225_v29  ;;  %v249_v41 = vcvt.s32.f32 %v245_v35  ;;  %v190_v42 = vcvt.s32.f32 %v186_v36  ;;  %v769_v48 = vstv %s753_s24 }
  0x37   : > { %568 = vlog2.f32 %v255_v30  ;;  %v220_v43 = vcvt.s32.f32 %v216_v38  ;;  %v250_v44 = vcvt.s32.f32 %v246_v39  ;;  %v227_v45 = vmax.f32 %v223_v40, 1.0 }
  0x38   : > { %570 = vlog2.f32 %v196_v31  ;;  %v253_v46 = vadd.f32 128.0, %v249_v41  ;;  %v194_v47 = vadd.f32 128.0, %v190_v42  ;;  %v772_v52 = vstv %s756_s26 }
  0x39   : > { %572 = vlog2.f32 %v226_v32  ;;  %v224_v49 = vadd.f32 128.0, %v220_v43  ;;  %v254_v50 = vadd.f32 128.0, %v250_v44  ;;  %v775_v61 = vstv %s759_s29 }
  0x3a   : > { %574 = vlog2.f32 %v256_v33  ;;  %v257_v53 = vmax.f32 %v253_v46, 1.0  ;;  %v198_v54 = vmax.f32 %v194_v47, 1.0  ;;  %v778_v62 = vstv %s762_s3 }
  0x3b   : > { %v565_v51 = vpop.eup %564  ;;  %576 = vlog2.f32 %v197_v37  ;;  %v228_v57 = vmax.f32 %v224_v49, 1.0  ;;  %v258_v58 = vmax.f32 %v254_v50, 1.0  ;;  %v781_v2 = vstv %s764_s4 }
  0x3c   : > { %v567_v55 = vpop.eup %566  ;;  %v200_v56 = vmul.f32 0.6931472, %v565_v51  ;;  %578 = vlog2.f32 %v227_v45  ;;  %v784_v6 = vstv %s766_s5 }
  0x3d   : > { %v569_v59 = vpop.eup %568  ;;  %v230_v60 = vmul.f32 0.6931472, %v567_v55  ;;  %580 = vlog2.f32 %v257_v53 }
  0x3e   : > { %v571_v63 = vpop.eup %570  ;;  %v207_v0 = vsub.f32 5.480639, %v200_v56  ;;  %v260_v1 = vmul.f32 0.6931472, %v569_v59  ;;  %582 = vlog2.f32 %v198_v54 }
  0x3f   : > { %v573_v3 = vpop.eup %572  ;;  %v237_v4 = vsub.f32 5.480639, %v230_v60  ;;  %v202_v5 = vmul.f32 0.6931472, %v571_v63  ;;  %584 = vlog2.f32 %v228_v57 }
  0x40   : > { %v575_v7 = vpop.eup %574  ;;  %v267_v8 = vsub.f32 5.480639, %v260_v1  ;;  %v274_v9 = vmul.f32 %v769_v48, %v207_v0  ;;  %v232_v10 = vmul.f32 0.6931472, %v573_v3  ;;  %586 = vlog2.f32 %v258_v58 }
  0x41   : > { %v577_v11 = vpop.eup %576  ;;  %v281_v12 = vmul.f32 %v772_v52, %v237_v4  ;;  %v208_v13 = vsub.f32 5.480639, %v202_v5  ;;  %v262_v14 = vmul.f32 0.6931472, %v575_v7  ;;  %v303_v15 = vmul.f32 %v778_v62, %v207_v0 }
  0x42   : > { %v579_v16 = vpop.eup %578  ;;  %v292_v17 = vmul.f32 %v775_v61, %v267_v8  ;;  %v238_v18 = vsub.f32 5.480639, %v232_v10  ;;  %v204_v19 = vmul.f32 0.6931472, %v577_v11  ;;  %v310_v20 = vmul.f32 %v781_v2, %v237_v4 }
  0x43   : > { %v581_v21 = vpop.eup %580  ;;  %v285_v22 = vadd.f32 %v281_v12, %v274_v9  ;;  %v268_v23 = vsub.f32 5.480639, %v262_v14  ;;  %v275_v24 = vmul.f32 %v769_v48, %v208_v13  ;;  %v234_v25 = vmul.f32 0.6931472, %v579_v16 }
  0x44   : > { %v583_v26 = vpop.eup %582  ;;  %v282_v27 = vmul.f32 %v772_v52, %v238_v18  ;;  %v209_v28 = vsub.f32 5.480639, %v204_v19  ;;  %v264_v29 = vmul.f32 0.6931472, %v581_v21  ;;  %v314_v30 = vadd.f32 %v310_v20, %v303_v15 }
  0x45   : > { %v585_v31 = vpop.eup %584  ;;  %v296_v32 = vadd.f32 %v292_v17, %v285_v22  ;;  %v293_v33 = vmul.f32 %v775_v61, %v268_v23  ;;  %v239_v34 = vsub.f32 5.480639, %v234_v25  ;;  %v206_v35 = vmul.f32 0.6931472, %v583_v26 }
  0x46   : > { %v587_v36 = vpop.eup %586  ;;  %v286_v37 = vadd.f32 %v282_v27, %v275_v24  ;;  %v269_v38 = vsub.f32 5.480639, %v264_v29  ;;  %v276_v39 = vmul.f32 %v769_v48, %v209_v28  ;;  %v236_v40 = vmul.f32 0.6931472, %v585_v31 }
  0x47   : > { %329 = vst [vmem:[%s797_s13] sm:$0xff] %v296_v32  ;;  %v283_v41 = vmul.f32 %v772_v52, %v239_v34  ;;  %v210_v42 = vsub.f32 5.480639, %v206_v35  ;;  %v266_v43 = vmul.f32 0.6931472, %v587_v36  ;;  %v321_v44 = vmul.f32 %v784_v6, %v267_v8 }
  0x48   : > { %v297_v45 = vadd.f32 %v293_v33, %v286_v37  ;;  %v294_v46 = vmul.f32 %v775_v61, %v269_v38  ;;  %v240_v47 = vsub.f32 5.480639, %v236_v40  ;;  %v304_v49 = vmul.f32 %v778_v62, %v208_v13 }
  0x49   : > { %v287_v50 = vadd.f32 %v283_v41, %v276_v39  ;;  %v270_v51 = vsub.f32 5.480639, %v266_v43  ;;  %v277_v53 = vmul.f32 %v769_v48, %v210_v42  ;;  %v325_v54 = vadd.f32 %v321_v44, %v314_v30 }
  0x4a   : > { %330 = vst [vmem:[%s797_s13 + $0x8] sm:$0xff] %v297_v45  ;;  %v284_v55 = vmul.f32 %v772_v52, %v240_v47  ;;  %v311_v56 = vmul.f32 %v781_v2, %v238_v18  ;;  %v322_v57 = vmul.f32 %v784_v6, %v268_v23  ;;  %v305_v58 = vmul.f32 %v778_v62, %v209_v28 }
  0x4b   : > { %v298_v59 = vadd.f32 %v294_v46, %v287_v50  ;;  %v295_v60 = vmul.f32 %v775_v61, %v270_v51  ;;  %494 = vst [vmem:[%s797_s13 + $0x20] sm:$0xff] %v325_v54  ;;  %v312_v63 = vmul.f32 %v781_v2, %v239_v34  ;;  %v323_v48 = vmul.f32 %v784_v6, %v269_v38 }
  0x4c   : > { %v288_v0 = vadd.f32 %v284_v55, %v277_v53  ;;  %v315_v52 = vadd.f32 %v311_v56, %v304_v49  ;;  %v306_v1 = vmul.f32 %v778_v62, %v210_v42  ;;  %v313_v3 = vmul.f32 %v781_v2, %v240_v47 }
  0x4d   : > { %331 = vst [vmem:[%s797_s13 + $0x10] sm:$0xff] %v298_v59  ;;  %v316_v4 = vadd.f32 %v312_v63, %v305_v58  ;;  %v324_v5 = vmul.f32 %v784_v6, %v270_v51 }
  0x4e   : > { %v299_v7 = vadd.f32 %v295_v60, %v288_v0  ;;  %v326_v61 = vadd.f32 %v322_v57, %v315_v52  ;;  %v317_v8 = vadd.f32 %v313_v3, %v306_v1  ;;  %v392_v62 = vld [vmem:[%s797_s13] sm:$0xff] (%p725_p6) }
  0x4f   : > { %v327_v9 = vadd.f32 %v323_v48, %v316_v4  ;;  %344 = sbr.rel (!%p725_p6) target bundleno = 92 (0x5c), region = 66  ;;  %393 = vst [vmem:[%s349_s23] sm:$0xff] (%p725_p6), %v392_v62 }
  0x50   : > { %332 = vst [vmem:[%s797_s13 + $0x18] sm:$0xff] %v299_v7  ;;  %v328_v10 = vadd.f32 %v324_v5, %v317_v8 }
  0x51   : > { %495 = vst [vmem:[%s797_s13 + $0x28] sm:$0xff] %v326_v61  ;;  %v394_v2 = vld [vmem:[%s797_s13 + $0x8] sm:$0xff] (%p725_p6) }
  0x52   : > { %496 = vst [vmem:[%s797_s13 + $0x30] sm:$0xff] %v327_v9  ;;  %v400_v12 = vld [vmem:[%s797_s13 + $0x20] sm:$0xff] (%p725_p6) }
  0x53   : > { %497 = vst [vmem:[%s797_s13 + $0x38] sm:$0xff] %v328_v10 }
  0x54   : > { %v396_v6 = vld [vmem:[%s797_s13 + $0x10] sm:$0xff]  ;;  %395 = vst [vmem:[%s349_s23 + $0x8] sm:$0xff] %v394_v2 }
  0x55   : > { %397 = vst [vmem:[%s349_s23 + $0x10] sm:$0xff] %v396_v6 }
  0x56   : > { %401 = vst [vmem:[%s349_s23 + $0x40] sm:$0xff] %v400_v12 }
  0x57   : > { %v398_v11 = vld [vmem:[%s797_s13 + $0x18] sm:$0xff] }
  0x58   : > { %v402_v13 = vld [vmem:[%s797_s13 + $0x28] sm:$0xff]  ;;  %399 = vst [vmem:[%s349_s23 + $0x18] sm:$0xff] %v398_v11 }
  0x59   : > { %v404_v14 = vld [vmem:[%s797_s13 + $0x30] sm:$0xff]  ;;  %403 = vst [vmem:[%s349_s23 + $0x48] sm:$0xff] %v402_v13 }
  0x5a   : > { %v406_v15 = vld [vmem:[%s797_s13 + $0x38] sm:$0xff]  ;;  %405 = vst [vmem:[%s349_s23 + $0x50] sm:$0xff] %v404_v14 }
  0x5b   : > { %407 = vst [vmem:[%s349_s23 + $0x58] sm:$0xff] %v406_v15 }
  0x5c PF: > { %s20_s19 = sadd.s32 1, %s656_s19   ;;  %s862_s13 = smov %s636_s14 }
  0x5d   : > { %p17_p12 = scmp.ge.s32.totalorder %s20_s19, 6   ;;  %s863_s14 = smov %s733_s27 }
  0x5e   : > { %s864_s15 = smov %s648_s17  ;;  %s865_s16 = smov %s652_s18 }
  0x5f   : > { %s866_s17 = smov %s869_s0  ;;  %s867_s18 = smov %s873_s20 }
  0x60   :  { %19 = sbr.rel (!%p17_p12) target bundleno = 10 (0xa), region = 138 }

// kernel: _macenko_forward.7
= control target key start
LH: loop header
LB: loop body
LE: loop exit
PB: predicated region body
PF: predicated region fallthrough
CT: control target
= control target key end

     0   :  { %s898_s12 = smov [#allocation3]   ;;  %s1193_s0 = inlined_call_operand.vmem [shape: f32[2,9], index: 0, kind: input, shape index: {}]   ;;  %s1194_s1 = inlined_call_operand.vmem [shape: s8[2,3,64,128], index: 1, kind: input, shape index: {}]   ;;  %s1195_s2 = inlined_call_operand.vmem [shape: s8[2,3,64,128], index: 2, kind: output, shape index: {}]  }
   0x1   :  { %s8_s11 = sshll.u32 %s1193_s0, 4  ;;  %s9_s11 = int_to_ptr.vmem [resolvable:$true] %s8_s11 }
   0x2   :  { %11 = dma.vmem_to_smem %s9_s11, 32, %s898_s12, [#allocation2] }
   0x3   :  { %868 = dma.done.wait [#allocation2], 32 }
   0x4   :  { %869 = vsyncadd [#allocation2], 4294967264 }
   0x5   :  { %14 = sfence }
   0x6   :  { %s917_s13 = smov 0   ;;  %s919_s14 = smov 0  }
   0x7   :  { %s921_s15 = smov 0   ;;  %s923_s16 = smov 0  }
   0x8   :  { %s925_s17 = smov 0   ;;  %s927_s18 = smov 0  }
   0x9   :  { %s929_s19 = smov 0  }
   0xa LB: > { %s29_s0 = sadd.s32 1, %s888_s17  ;;  %s32_s20 = sadd.s32 1, %s892_s18  ;;  %s896_s19 = sphi %s929_s19, %s20_s19   ;;  %s892_s18 = sphi %s927_s18, %s1202_s18   ;;  %s888_s17 = sphi %s925_s17, %s1201_s17   ;;  %s884_s16 = sphi %s923_s16, %s1200_s16   ;;  %s880_s15 = sphi %s921_s15, %s1199_s15   ;;  %s876_s14 = sphi %s919_s14, %s1198_s14   ;;  %s872_s13 = sphi %s917_s13, %s1197_s13  }
   0xb   : > { %p30_p0 = scmp.ge.s32.totalorder %s29_s0, 2  ;;  %s638_s21 = sadd.s32 4294967295, %s896_s19  }
   0xc   : > { %p48_p1 = scmp.ne.s32.totalorder %s876_s14, %s872_s13  ;;  %p49_p2 = scmp.eq.s32.totalorder %s896_s19, 0 }
   0xd   : > { %s1204_s0 = smov (%p30_p0, %s29_s0), 0  ;;  %s1206_s20 = smov (!%p30_p0, %s32_s20), %s892_s18 }
   0xe   : > { %p34_p3 = scmp.ge.s32.totalorder %s1206_s20, 2  ;;  %p80_p4 = scmp.eq.s32.totalorder %s638_s21, 3 }
   0xf   : > { %s37_s22 = ssub.s32 %s888_s17, %s1204_s0  ;;  %p50_p5 = por %p49_p2, %p48_p1 }
  0x10   : > { %s1208_s20 = smov (%p34_p3, %s1206_s20), 0  ;;  %p965_p6 = por %p80_p4, %p48_p1 }
  0x11   : > { %s36_s24 = ssub.s32 %s892_s18, %s1208_s20  ;;  %s41_s26 = sadd.s32 1, %s876_s14 }
  0x12   : > { %s38_s25 = sor.u32 %s37_s22, %s36_s24  ;;  %p641_p8 = scmp.ge.s32.totalorder %s896_s19, 4 }
  0x13   : > { %p39_p7 = scmp.eq.s32.totalorder %s38_s25, 0 }
  0x14   : > { %102 = sbr.rel (%p641_p8) target bundleno = 35 (0x23), region = 16 }
  0x15   : > { %s973_s27 = scalar_select %p39_p7, %s876_s14, %s41_s26  }
  0x19   : > { %105 = sbr.rel (!%p50_p5) target bundleno = 35 (0x23), region = 20  ;;  %s107_s28 = sand.u32 (%p50_p5), 1, %s876_s14  }
  0x1a   : > { %s660_s29 = smul.u32 (%p50_p5), 6, %s892_s18 }
  0x1b   : > { %s659_s30 = smul.u32 (%p50_p5), 24, %s107_s28 }
  0x1c   : > { %s111_s3 = sadd.s32 (%p50_p5), %s888_s17, %s660_s29 }
  0x1d   : > { %s642_s4 = sshll.u32 (%p50_p5), %s111_s3, 3  ;;  %s109_s8 = scalar_lea.vmem (%p50_p5), [#allocation4], %s659_s30 }
  0x1e   : > { %s113_s7 = scalar_lea.vmem %s1194_s1, %s642_s4 }
  0x1f   : > { %v146_v0 = vld [vmem:[%s113_s7] sm:$0xff]  ;;  %v148_v1 = vld [vmem:[%s113_s7 + $0x10] sm:$0xff] }
  0x20   : > { %v150_v2 = vld [vmem:[%s113_s7 + $0x20] sm:$0xff]  ;;  %147 = vst [vmem:[%s109_s8] sm:$0xff] %v146_v0 }
  0x21   : > { %149 = vst [vmem:[%s109_s8 + $0x8] sm:$0xff] %v148_v1 }
  0x22   : > { %151 = vst [vmem:[%s109_s8 + $0x10] sm:$0xff] %v150_v2 }
  0x23 PF: > { %p643_p9 = scmp.ge.s32.totalorder %s896_s19, 1  ;;  %p156_p10 = scmp.lt.s32.totalorder %s896_s19, 5 }
  0x25   : > { %p157_p11 = pnand %p643_p9, %p156_p10 }
  0x26   : > { %s163_s9 = sand.u32 (!%p157_p11), 1, %s872_s13   ;;  %s986_s10 = sshll.u32 (!%p157_p11), %s884_s16, 7 }
  0x27   : > { %160 = sbr.rel (%p157_p11) target bundleno = 143 (0x8f), region = 58  ;;  %s278_s12 = sadd.s32 (!%p157_p11), 1, %s986_s10 }
  0x28   : > { %s988_s11 = smul.u32 (!%p157_p11), 24, %s163_s9  ;;  %s992_s21 = sld [smem:[#allocation3 + %s986_s10]] (!%p157_p11) }
  0x29   : > { %s995_s24 = sld [smem:[#allocation3 + %s278_s12]] (!%p157_p11)  ;;  %s289_s13 = sadd.s32 (!%p157_p11), 2, %s986_s10 }
  0x2a   : > { %s165_s22 = scalar_lea.vmem (!%p157_p11), [#allocation4], %s988_s11  ;;  %s336_s25 = sadd.s32 (!%p157_p11), 3, %s986_s10 }
  0x2b   : > { %s343_s26 = sadd.s32 (!%p157_p11), 4, %s986_s10  ;;  %s1000_s28 = sld [smem:[#allocation3 + %s289_s13]] (!%p157_p11) }
  0x2c   : > { %v182_v3 = vld [vmem:[%s165_s22] sm:$0xff]  ;;  %v644_v4 = vld [vmem:[%s165_s22 + $0x8] sm:$0xff]  ;;  %v645_v5 = vld [vmem:[%s165_s22 + $0x10] sm:$0xff]  ;;  %s354_s29 = sadd.s32 5, %s986_s10  ;;  %s1003_s30 = sld [smem:[#allocation3 + %s336_s25]] }
  0x2d   : > { %v183_v6 = vunpack.c.0.s8 %v182_v3  ;;  %v213_v7 = vunpack.c.0.s8 %v644_v4  ;;  %v243_v8 = vunpack.c.0.s8 %v645_v5  ;;  %v184_v9 = vunpack.c.1.s8 %v182_v3  ;;  %s402_s3 = sadd.s32 6, %s986_s10  ;;  %s1009_s4 = sld [smem:[#allocation3 + %s343_s26]] }
  0x2e   : > { %v214_v10 = vunpack.c.1.s8 %v644_v4  ;;  %v244_v11 = vunpack.c.1.s8 %v645_v5  ;;  %v185_v12 = vunpack.c.2.s8 %v182_v3  ;;  %v215_v13 = vunpack.c.2.s8 %v644_v4  ;;  %s409_s5 = sadd.s32 7, %s986_s10  ;;  %s1015_s6 = sld [smem:[#allocation3 + %s354_s29]] }
  0x2f   : > { %v187_v14 = vcvt.s32.f32 %v183_v6  ;;  %v217_v15 = vcvt.s32.f32 %v213_v7  ;;  %v247_v16 = vcvt.s32.f32 %v243_v8  ;;  %v188_v17 = vcvt.s32.f32 %v184_v9  ;;  %s420_s7 = sadd.s32 8, %s986_s10  ;;  %s1018_s8 = sld [smem:[#allocation3 + %s402_s3]] }
  0x30   : > { %v218_v18 = vcvt.s32.f32 %v214_v10  ;;  %v248_v19 = vcvt.s32.f32 %v244_v11  ;;  %v189_v20 = vcvt.s32.f32 %v185_v12  ;;  %v219_v24 = vcvt.s32.f32 %v215_v13  ;;  %s1020_s9 = sld [smem:[#allocation3 + %s409_s5]]  ;;  %s1130_s10 = scalar_lea.vmem [#allocation5], %s988_s11 }
  0x31   : > { %v191_v21 = vadd.f32 128.0, %v187_v14  ;;  %v221_v22 = vadd.f32 128.0, %v217_v15  ;;  %v251_v23 = vadd.f32 128.0, %v247_v16  ;;  %v192_v25 = vadd.f32 128.0, %v188_v17  ;;  %s1022_s12 = sld [smem:[#allocation3 + %s420_s7]]  ;;  %s655_s11 = sshll.u32 (%p965_p6), %s880_s15, 2 }
  0x32   : > { %v222_v26 = vadd.f32 128.0, %v218_v18  ;;  %v252_v27 = vadd.f32 128.0, %v248_v19  ;;  %v1007_v31 = vstv %s992_s21  ;;  %v1013_v32 = vstv %s995_s24  ;;  %s722_s21 = smul.u32 (%p965_p6), 24, %s884_s16 }
  0x33   : > { %v195_v28 = vmax.f32 %v191_v21, 1.0  ;;  %v225_v29 = vmax.f32 %v221_v22, 1.0  ;;  %v255_v30 = vmax.f32 %v251_v23, 1.0  ;;  %v196_v33 = vmax.f32 %v192_v25, 1.0 }
  0x34   : > { %v226_v34 = vmax.f32 %v222_v26, 1.0  ;;  %v193_v35 = vadd.f32 128.0, %v189_v20  ;;  %v223_v36 = vadd.f32 128.0, %v219_v24  ;;  %v245_v37 = vunpack.c.2.s8 %v645_v5  ;;  %s477_s22 = sadd.s32 (%p965_p6), %s722_s21, %s655_s11 }
  0x35   : > { %780 = vlog2.f32 %v195_v28  ;;  %v186_v38 = vunpack.c.3.s8 %v182_v3  ;;  %v256_v39 = vmax.f32 %v252_v27, 1.0  ;;  %v216_v40 = vunpack.c.3.s8 %v644_v4  ;;  %s656_s24 = sshll.u32 (%p965_p6), %s477_s22, 1 }
  0x36   : > { %782 = vlog2.f32 %v225_v29  ;;  %v246_v41 = vunpack.c.3.s8 %v645_v5  ;;  %v197_v42 = vmax.f32 %v193_v35, 1.0  ;;  %v249_v43 = vcvt.s32.f32 %v245_v37  ;;  %s479_s26 = scalar_lea.vmem (%p965_p6), %s1195_s2, %s656_s24 }
  0x37   : > { %784 = vlog2.f32 %v255_v30  ;;  %v190_v44 = vcvt.s32.f32 %v186_v38  ;;  %v227_v45 = vmax.f32 %v223_v36, 1.0  ;;  %v220_v46 = vcvt.s32.f32 %v216_v40 }
  0x38   : > { %786 = vlog2.f32 %v196_v33  ;;  %v250_v47 = vcvt.s32.f32 %v246_v41  ;;  %v1025_v48 = vstv %s1000_s28  ;;  %v253_v49 = vadd.f32 128.0, %v249_v43 }
  0x39   : > { %788 = vlog2.f32 %v226_v34  ;;  %v194_v50 = vadd.f32 128.0, %v190_v44  ;;  %v224_v51 = vadd.f32 128.0, %v220_v46  ;;  %v1028_v53 = vstv %s1003_s30 }
  0x3a   : > { %790 = vlog2.f32 %v256_v39  ;;  %v254_v52 = vadd.f32 128.0, %v250_v47  ;;  %v257_v55 = vmax.f32 %v253_v49, 1.0  ;;  %v1031_v57 = vstv %s1009_s4 }
  0x3b   : > { %v781_v54 = vpop.eup %780  ;;  %792 = vlog2.f32 %v197_v42  ;;  %v198_v56 = vmax.f32 %v194_v50, 1.0  ;;  %v228_v60 = vmax.f32 %v224_v51, 1.0  ;;  %v1034_v0 = vstv %s1015_s6 }
  0x3c   : > { %v783_v58 = vpop.eup %782  ;;  %v200_v59 = vmul.f32 0.6931472, %v781_v54  ;;  %794 = vlog2.f32 %v227_v45  ;;  %v258_v61 = vmax.f32 %v254_v52, 1.0  ;;  %v1037_v1 = vstv %s1018_s8 }
  0x3d   : > { %v785_v62 = vpop.eup %784  ;;  %v230_v63 = vmul.f32 0.6931472, %v783_v58  ;;  %796 = vlog2.f32 %v257_v55  ;;  %v1042_v5 = vstv %s1020_s9  ;;  %v1047_v9 = vstv %s1022_s12 }
  0x3e   : > { %v787_v2 = vpop.eup %786  ;;  %v1039_v3 = vsub.f32 5.480639, %v200_v59  ;;  %v260_v4 = vmul.f32 0.6931472, %v785_v62  ;;  %798 = vlog2.f32 %v198_v56 }
  0x3f   : > { %v789_v6 = vpop.eup %788  ;;  %v1044_v7 = vsub.f32 5.480639, %v230_v63  ;;  %v202_v8 = vmul.f32 0.6931472, %v787_v2  ;;  %800 = vlog2.f32 %v228_v60 }
  0x40   : > { %v791_v10 = vpop.eup %790  ;;  %v1049_v11 = vsub.f32 5.480639, %v260_v4  ;;  %v274_v12 = vmul.f32 %v1007_v31, %v1039_v3  ;;  %v232_v13 = vmul.f32 0.6931472, %v789_v6  ;;  %802 = vlog2.f32 %v258_v61 }
  0x41   : > { %v793_v14 = vpop.eup %792  ;;  %v281_v15 = vmul.f32 %v1013_v32, %v1044_v7  ;;  %v1055_v16 = vsub.f32 5.480639, %v202_v8  ;;  %v262_v17 = vmul.f32 0.6931472, %v791_v10  ;;  %v339_v18 = vmul.f32 %v1028_v53, %v1039_v3 }
  0x42   : > { %v795_v19 = vpop.eup %794  ;;  %v292_v20 = vmul.f32 %v1025_v48, %v1049_v11  ;;  %v1061_v21 = vsub.f32 5.480639, %v232_v13  ;;  %v204_v22 = vmul.f32 0.6931472, %v793_v14  ;;  %v346_v23 = vmul.f32 %v1031_v57, %v1044_v7 }
  0x43   : > { %v797_v24 = vpop.eup %796  ;;  %v285_v25 = vadd.f32 %v281_v15, %v274_v12  ;;  %v1065_v26 = vsub.f32 5.480639, %v262_v17  ;;  %v275_v27 = vmul.f32 %v1007_v31, %v1055_v16  ;;  %v234_v28 = vmul.f32 0.6931472, %v795_v19 }
  0x44   : > { %v799_v29 = vpop.eup %798  ;;  %v282_v30 = vmul.f32 %v1013_v32, %v1061_v21  ;;  %v1071_v33 = vsub.f32 5.480639, %v204_v22  ;;  %v264_v34 = vmul.f32 0.6931472, %v797_v24  ;;  %v350_v35 = vadd.f32 %v346_v23, %v339_v18 }
  0x45   : > { %v801_v36 = vpop.eup %800  ;;  %v296_v37 = vadd.f32 %v292_v20, %v285_v25  ;;  %v293_v38 = vmul.f32 %v1025_v48, %v1065_v26  ;;  %v1075_v39 = vsub.f32 5.480639, %v234_v28  ;;  %v206_v40 = vmul.f32 0.6931472, %v799_v29 }
  0x46   : > { %v803_v41 = vpop.eup %802  ;;  %v286_v42 = vadd.f32 %v282_v30, %v275_v27  ;;  %v1077_v43 = vsub.f32 5.480639, %v264_v34  ;;  %v276_v44 = vmul.f32 %v1007_v31, %v1071_v33  ;;  %v236_v45 = vmul.f32 0.6931472, %v801_v36 }
  0x47   : > { %v300_v46 = vsub.f32 5.480639, %v296_v37  ;;  %v283_v47 = vmul.f32 %v1013_v32, %v1075_v39  ;;  %v1083_v49 = vsub.f32 5.480639, %v206_v40  ;;  %v266_v50 = vmul.f32 0.6931472, %v803_v41 }
  0x48   : > { %v297_v51 = vadd.f32 %v293_v38, %v286_v42  ;;  %v294_v52 = vmul.f32 %v1025_v48, %v1077_v43  ;;  %v1087_v54 = vsub.f32 5.480639, %v236_v45  ;;  %v357_v55 = vmul.f32 %v1034_v0, %v1049_v11 }
  0x49   : > { %v304_v56 = vmul.f32 1.442695, %v300_v46  ;;  %v287_v58 = vadd.f32 %v283_v47, %v276_v44  ;;  %v1091_v59 = vsub.f32 5.480639, %v266_v50  ;;  %v277_v60 = vmul.f32 %v1007_v31, %v1083_v49 }
  0x4a   : > { %v301_v61 = vsub.f32 5.480639, %v297_v51  ;;  %v284_v62 = vmul.f32 %v1013_v32, %v1087_v54  ;;  %v361_v63 = vadd.f32 %v357_v55, %v350_v35  ;;  %v340_v2 = vmul.f32 %v1028_v53, %v1055_v16 }
  0x4b   : > { %804 = vpow2.f32 %v304_v56  ;;  %v298_v4 = vadd.f32 %v294_v52, %v287_v58  ;;  %v295_v6 = vmul.f32 %v1025_v48, %v1091_v59  ;;  %v347_v8 = vmul.f32 %v1031_v57, %v1061_v21 }
  0x4c   : > { %v306_v10 = vmul.f32 1.442695, %v301_v61  ;;  %v288_v12 = vadd.f32 %v284_v62, %v277_v60  ;;  %v365_v13 = vsub.f32 5.480639, %v361_v63  ;;  %v358_v31 = vmul.f32 %v1034_v0, %v1065_v26 }
  0x4d   : > { %v302_v14 = vsub.f32 5.480639, %v298_v4  ;;  %v351_v32 = vadd.f32 %v347_v8, %v340_v2  ;;  %v341_v15 = vmul.f32 %v1028_v53, %v1071_v33  ;;  %v348_v17 = vmul.f32 %v1031_v57, %v1075_v39 }
  0x4e   : > { %806 = vpow2.f32 %v306_v10  ;;  %v299_v18 = vadd.f32 %v295_v6, %v288_v12  ;;  %v369_v48 = vmul.f32 1.442695, %v365_v13  ;;  %v359_v19 = vmul.f32 %v1034_v0, %v1077_v43 }
  0x4f   : > { %v308_v20 = vmul.f32 1.442695, %v302_v14  ;;  %v362_v22 = vadd.f32 %v358_v31, %v351_v32  ;;  %v352_v23 = vadd.f32 %v348_v17, %v341_v15  ;;  %v342_v24 = vmul.f32 %v1028_v53, %v1083_v49 }
  0x50   : > { %v303_v25 = vsub.f32 5.480639, %v299_v18  ;;  %808 = vpow2.f32 %v369_v48  ;;  %v349_v27 = vmul.f32 %v1031_v57, %v1087_v54  ;;  %v360_v28 = vmul.f32 %v1034_v0, %v1091_v59 }
  0x51   : > { %v805_v29 = vpop.eup %804  ;;  %810 = vpow2.f32 %v308_v20  ;;  %v366_v30 = vsub.f32 5.480639, %v362_v22  ;;  %v363_v34 = vadd.f32 %v359_v19, %v352_v23  ;;  %v405_v35 = vmul.f32 %v1037_v1, %v1039_v3 }
  0x52   : > { %vm312_vm0 = vcmp.gt.f32.partialorder %v805_v29, 255.0  ;;  %v310_v36 = vmul.f32 1.442695, %v303_v25  ;;  %v353_v37 = vadd.f32 %v349_v27, %v342_v24  ;;  %v412_v53 = vmul.f32 %v1042_v5, %v1044_v7 }
  0x53   : > { %v316_v38 = vsel %vm312_vm0, 254.0, %v805_v29  ;;  %v371_v40 = vmul.f32 1.442695, %v366_v30  ;;  %v367_v41 = vsub.f32 5.480639, %v363_v34  ;;  %v1123_v57 = vmul.f32 %v1047_v9, %v1049_v11 }
  0x54   : > { %v807_v0 = vpop.eup %806  ;;  %vm662_vm1 = vcmp.lt.s32.totalorder %v316_v38, 0  ;;  %v663_v42 = vceil.f32 %v316_v38  ;;  %v664_v44 = vfloor.f32 %v316_v38  ;;  %812 = vpow2.f32 %v310_v36 }
  0x55   : > { %vm313_vm2 = vcmp.gt.f32.partialorder %v807_v0, 255.0  ;;  %814 = vpow2.f32 %v371_v40  ;;  %v373_v3 = vmul.f32 1.442695, %v367_v41  ;;  %v364_v45 = vadd.f32 %v360_v28, %v353_v37 }
  0x56   : > { %v809_v46 = vpop.eup %808  ;;  %v665_v47 = vsel %vm662_vm1, %v663_v42, %v664_v44  ;;  %v317_v50 = vsel %vm313_vm2, 254.0, %v807_v0  ;;  %v416_v7 = vadd.f32 %v412_v53, %v405_v35  ;;  %v1127_v51 = vmul.f32 %v1037_v1, %v1055_v16 }
  0x57   : > { %v811_v52 = vpop.eup %810  ;;  %v666_v11 = vcvt.f32.s32 %v665_v47  ;;  %vm667_vm3 = vcmp.lt.s32.totalorder %v317_v50, 0  ;;  %v668_v55 = vceil.f32 %v317_v50  ;;  %v669_v56 = vfloor.f32 %v317_v50 }
  0x58   : > { %vm314_vm4 = vcmp.gt.f32.partialorder %v811_v52, 255.0  ;;  %vm377_vm5 = vcmp.gt.f32.partialorder %v809_v46, 255.0  ;;  %816 = vpow2.f32 %v373_v3  ;;  %v368_v58 = vsub.f32 5.480639, %v364_v45 }
  0x59   : > { %v324_v60 = vpack.c.b16 %v666_v11, %v666_v11  ;;  %v670_v61 = vsel %vm667_vm3, %v668_v55, %v669_v56  ;;  %v318_v62 = vsel %vm314_vm4, 254.0, %v811_v52  ;;  %v381_v63 = vsel %vm377_vm5, 254.0, %v809_v46 }
  0x5a   : > { %v813_v2 = vpop.eup %812  ;;  %v671_v4 = vcvt.f32.s32 %v670_v61  ;;  %vm672_vm6 = vcmp.lt.s32.totalorder %v318_v62, 0  ;;  %v673_v6 = vceil.f32 %v318_v62  ;;  %v674_v16 = vfloor.f32 %v318_v62 }
  0x5b   : > { %v815_v8 = vpop.eup %814  ;;  %v325_v10 = vpack.c.b8 %v324_v60, %v324_v60  ;;  %vm315_vm7 = vcmp.gt.f32.partialorder %v813_v2, 255.0  ;;  %vm682_vm8 = vcmp.lt.s32.totalorder %v381_v63, 0  ;;  %v683_v12 = vceil.f32 %v381_v63 }
  0x5c   : > { %v326_v13 = vpack.c.b16 %v671_v4, %v671_v4  ;;  %v675_v31 = vsel %vm672_vm6, %v673_v6, %v674_v16  ;;  %v319_v14 = vsel %vm315_vm7, 254.0, %v813_v2  ;;  %v684_v32 = vfloor.f32 %v381_v63 }
  0x5d   : > { %332 = vst [vmem:[%s1130_s10] sm:$0x3] %v325_v10  ;;  %v676_v15 = vcvt.f32.s32 %v675_v31  ;;  %vm677_vm9 = vcmp.lt.s32.totalorder %v319_v14, 0  ;;  %v678_v17 = vceil.f32 %v319_v14  ;;  %v679_v18 = vfloor.f32 %v319_v14 }
  0x5e   : > { %v817_v48 = vpop.eup %816  ;;  %v327_v19 = vpack.c.b8 %v326_v13, %v326_v13  ;;  %v685_v20 = vsel %vm682_vm8, %v683_v12, %v684_v32  ;;  %vm378_vm10 = vcmp.gt.f32.partialorder %v815_v8, 255.0  ;;  %v375_v22 = vmul.f32 1.442695, %v368_v58 }
  0x5f   : > { %v328_v23 = vpack.c.b16 %v676_v15, %v676_v15  ;;  %v680_v24 = vsel %vm677_vm9, %v678_v17, %v679_v18  ;;  %v686_v25 = vcvt.f32.s32 %v685_v20  ;;  %v382_v27 = vsel %vm378_vm10, 254.0, %v815_v8 }
  0x60   : > { %333 = vst [vmem:[%s1130_s10 + $0x2] sm:$0x3] %v327_v19  ;;  %v681_v28 = vcvt.f32.s32 %v680_v24  ;;  %vm687_vm11 = vcmp.lt.s32.totalorder %v382_v27, 0  ;;  %v688_v29 = vceil.f32 %v382_v27  ;;  %v689_v30 = vfloor.f32 %v382_v27 }
  0x61   : > { %v329_v34 = vpack.c.b8 %v328_v23, %v328_v23  ;;  %v389_v35 = vpack.c.b16 %v686_v25, %v686_v25  ;;  %vm379_vm12 = vcmp.gt.f32.partialorder %v817_v48, 255.0  ;;  %818 = vpow2.f32 %v375_v22 }
  0x62   : > { %v330_v36 = vpack.c.b16 %v681_v28, %v681_v28  ;;  %v690_v37 = vsel %vm687_vm11, %v688_v29, %v689_v30  ;;  %v383_v53 = vsel %vm379_vm12, 254.0, %v817_v48  ;;  %v427_v38 = vadd.f32 %v1123_v57, %v416_v7 }
  0x63   : > { %334 = vst [vmem:[%s1130_s10 + $0x4] sm:$0x3] %v329_v34  ;;  %v390_v40 = vpack.c.b8 %v389_v35, %v389_v35  ;;  %v691_v41 = vcvt.f32.s32 %v690_v37  ;;  %vm692_vm13 = vcmp.lt.s32.totalorder %v383_v53, 0  ;;  %v693_v0 = vceil.f32 %v383_v53 }
  0x64   : > { %v331_v42 = vpack.c.b8 %v330_v36, %v330_v36  ;;  %v694_v44 = vfloor.f32 %v383_v53  ;;  %v431_v3 = vsub.f32 5.480639, %v427_v38  ;;  %v413_v45 = vmul.f32 %v1042_v5, %v1061_v21 }
  0x65   : > { %647 = vst [vmem:[%s1130_s10 + $0x8] sm:$0x3] %v390_v40  ;;  %v391_v46 = vpack.c.b16 %v691_v41, %v691_v41  ;;  %v424_v47 = vmul.f32 %v1047_v9, %v1065_v26  ;;  %v407_v50 = vmul.f32 %v1037_v1, %v1071_v33  ;;  %v414_v57 = vmul.f32 %v1042_v5, %v1075_v39 }
  0x66   : > { %335 = vst [vmem:[%s1130_s10 + $0x6] sm:$0x3] %v331_v42  ;;  %v695_v7 = vsel %vm692_vm13, %v693_v0, %v694_v44  ;;  %v435_v52 = vmul.f32 1.442695, %v431_v3  ;;  %v417_v11 = vadd.f32 %v413_v45, %v1127_v51  ;;  %v425_v21 = vmul.f32 %v1047_v9, %v1077_v43 }
  0x67   : > { %v819_v55 = vpop.eup %818  ;;  %v392_v56 = vpack.c.b8 %v391_v46, %v391_v46  ;;  %v696_v58 = vcvt.f32.s32 %v695_v7  ;;  %v418_v60 = vadd.f32 %v414_v57, %v407_v50  ;;  %v408_v26 = vmul.f32 %v1037_v1, %v1083_v49 }
  0x68   : > { %vm380_vm14 = vcmp.gt.f32.partialorder %v819_v55, 255.0  ;;  %820 = vpow2.f32 %v435_v52  ;;  %v428_v33 = vadd.f32 %v424_v47, %v417_v11  ;;  %v415_v39 = vmul.f32 %v1042_v5, %v1087_v54 }
  0x69   : > { %648 = vst [vmem:[%s1130_s10 + $0xa] sm:$0x3] %v392_v56  ;;  %v393_v61 = vpack.c.b16 %v696_v58, %v696_v58  ;;  %v384_v51 = vsel %vm380_vm14, 254.0, %v819_v55  ;;  %v429_v62 = vadd.f32 %v425_v21, %v418_v60  ;;  %v426_v43 = vmul.f32 %v1047_v9, %v1091_v59 }
  0x6a   : > { %vm697_vm15 = vcmp.lt.s32.totalorder %v384_v51, 0  ;;  %v698_v63 = vceil.f32 %v384_v51  ;;  %v699_v2 = vfloor.f32 %v384_v51  ;;  %v432_v4 = vsub.f32 5.480639, %v428_v33 }
  0x6b   : > { %v394_v6 = vpack.c.b8 %v393_v61, %v393_v61  ;;  %v433_v1 = vsub.f32 5.480639, %v429_v62  ;;  %v419_v49 = vadd.f32 %v415_v39, %v408_v26 }
  0x6c   : > { %v700_v16 = vsel %vm697_vm15, %v698_v63, %v699_v2  ;;  %v437_v8 = vmul.f32 1.442695, %v432_v4 }
  0x6d   : > { %649 = vst [vmem:[%s1130_s10 + $0xc] sm:$0x3] %v394_v6  ;;  %v701_v10 = vcvt.f32.s32 %v700_v16  ;;  %v439_v5 = vmul.f32 1.442695, %v433_v1  ;;  %v430_v54 = vadd.f32 %v426_v43, %v419_v49  ;;  %v496_v50 = vld [vmem:[%s1130_s10] sm:$0xff] (%p965_p6)  }
  0x6e   : > { %v821_v12 = vpop.eup %820  ;;  %822 = vpow2.f32 %v437_v8  ;;  %497 = vst [vmem:[%s479_s26] sm:$0xff] (%p965_p6), %v496_v50  }
  0x6f   : > { %v395_v13 = vpack.c.b16 %v701_v10, %v701_v10  ;;  %vm443_vm0 = vcmp.gt.f32.partialorder %v821_v12, 255.0  ;;  %824 = vpow2.f32 %v439_v5  ;;  %v434_v9 = vsub.f32 5.480639, %v430_v54 }
  0x70   : > { %v447_v59 = vsel %vm443_vm0, 254.0, %v821_v12 }
  0x71   : > { %v396_v31 = vpack.c.b8 %v395_v13, %v395_v13  ;;  %vm702_vm1 = vcmp.lt.s32.totalorder %v447_v59, 0  ;;  %v703_v14 = vceil.f32 %v447_v59  ;;  %v704_v32 = vfloor.f32 %v447_v59 }
  0x72   : > { %v441_v15 = vmul.f32 1.442695, %v434_v9 }
  0x73   : > { %650 = vst [vmem:[%s1130_s10 + $0xe] sm:$0x3] %v396_v31  ;;  %v705_v17 = vsel %vm702_vm1, %v703_v14, %v704_v32 }
  0x74   : > { %v823_v18 = vpop.eup %822  ;;  %v706_v48 = vcvt.f32.s32 %v705_v17  ;;  %826 = vpow2.f32 %v441_v15 }
  0x75   : > { %v825_v19 = vpop.eup %824  ;;  %vm444_vm2 = vcmp.gt.f32.partialorder %v823_v18, 255.0 }
  0x76   : > { %v455_v20 = vpack.c.b16 %v706_v48, %v706_v48  ;;  %v448_v22 = vsel %vm444_vm2, 254.0, %v823_v18  ;;  %vm445_vm3 = vcmp.gt.f32.partialorder %v825_v19, 255.0 }
  0x77   : > { %vm707_vm4 = vcmp.lt.s32.totalorder %v448_v22, 0  ;;  %v708_v23 = vceil.f32 %v448_v22  ;;  %v709_v24 = vfloor.f32 %v448_v22  ;;  %v449_v25 = vsel %vm445_vm3, 254.0, %v825_v19 }
  0x78   : > { %v456_v27 = vpack.c.b8 %v455_v20, %v455_v20  ;;  %vm712_vm5 = vcmp.lt.s32.totalorder %v449_v25, 0  ;;  %v713_v28 = vceil.f32 %v449_v25  ;;  %v714_v29 = vfloor.f32 %v449_v25 }
  0x79   : > { %v710_v30 = vsel %vm707_vm4, %v708_v23, %v709_v24 }
  0x7a   : > { %v827_v34 = vpop.eup %826  ;;  %651 = vst [vmem:[%s1130_s10 + $0x10] sm:$0x3] %v456_v27  ;;  %v711_v35 = vcvt.f32.s32 %v710_v30  ;;  %v715_v36 = vsel %vm712_vm5, %v713_v28, %v714_v29  ;;  %v504_v57 = vld [vmem:[%s1130_s10 + $0x8] sm:$0xff] (%p965_p6)  }
  0x7b   : > { %v716_v37 = vcvt.f32.s32 %v715_v36  ;;  %vm446_vm6 = vcmp.gt.f32.partialorder %v827_v34, 255.0  ;;  %505 = vst [vmem:[%s479_s26 + $0x10] sm:$0xff] (%p965_p6), %v504_v57  }
  0x7c   : > { %v457_v53 = vpack.c.b16 %v711_v35, %v711_v35  ;;  %v450_v38 = vsel %vm446_vm6, 254.0, %v827_v34 }
  0x7d   : > { %v459_v40 = vpack.c.b16 %v716_v37, %v716_v37  ;;  %vm717_vm7 = vcmp.lt.s32.totalorder %v450_v38, 0  ;;  %v718_v41 = vceil.f32 %v450_v38  ;;  %v719_v0 = vfloor.f32 %v450_v38 }
  0x7e   : > { %v458_v42 = vpack.c.b8 %v457_v53, %v457_v53 }
  0x7f   : > { %v460_v44 = vpack.c.b8 %v459_v40, %v459_v40  ;;  %v720_v3 = vsel %vm717_vm7, %v718_v41, %v719_v0 }
  0x80   : > { %652 = vst [vmem:[%s1130_s10 + $0x12] sm:$0x3] %v458_v42  ;;  %v721_v45 = vcvt.f32.s32 %v720_v3 }
  0x81   : > { %653 = vst [vmem:[%s1130_s10 + $0x14] sm:$0x3] %v460_v44 }
  0x82   : > { %v461_v46 = vpack.c.b16 %v721_v45, %v721_v45  ;;  %474 = sbr.rel (!%p965_p6) target bundleno = 143 (0x8f), region = 66 }
  0x84   : > { %v462_v47 = vpack.c.b8 %v461_v46, %v461_v46 }
  0x86   : > { %654 = vst [vmem:[%s1130_s10 + $0x16] sm:$0x3] %v462_v47 }
  0x8d   : > { %v512_v7 = vld [vmem:[%s1130_s10 + $0x10] sm:$0xff]  }
  0x8e   : > { %513 = vst [vmem:[%s479_s26 + $0x20] sm:$0xff] %v512_v7  }
  0x8f PF: > { %s20_s19 = sadd.s32 1, %s896_s19   ;;  %s1197_s13 = smov %s876_s14 }
  0x90   : > { %p17_p12 = scmp.ge.s32.totalorder %s20_s19, 6   ;;  %s1198_s14 = smov %s973_s27 }
  0x91   : > { %s1199_s15 = smov %s888_s17  ;;  %s1200_s16 = smov %s892_s18 }
  0x92   : > { %s1201_s17 = smov %s1204_s0  ;;  %s1202_s18 = smov %s1208_s20 }
  0x93   :  { %19 = sbr.rel (!%p17_p12) target bundleno = 10 (0xa), region = 142 }

</bundles_post_ra>
